<compile_context>
chip_gen: v6e
topology: v6e:2x2x1
jax: 0.10.0
libtpu: 0.0.40
codegen_flags: <defaults>
</compile_context>

<pallas_src>
import functools

import numpy as np

import jax
import jax.numpy as jnp
from jax.experimental import pallas as pl

# ----------------------------- configuration --------------------------------
INPUT_DIM = 32
HIDDEN_DIM = 16                      # per-head hidden dim
N_HEADS = 4
HD = N_HEADS * HIDDEN_DIM            # 64 (lane-dense feature width)
REL_INPUT_DIM = 8
REL_HIDDEN_DIM = 8
NEG_SLOPE = 0.2
NEG_INF = -1e30

NTYPES = {"user": 12, "item": 10}
NTYPE_ORDER = list(NTYPES.keys())
NTYPE_INDEX = {nt: i for i, nt in enumerate(NTYPE_ORDER)}
CANONICAL_ETYPES = [
    ("user", "follows", "user"),
    ("user", "buys", "item"),
    ("item", "rev_buys", "user"),
]
N_PAD = ((max(NTYPES.values()) + 7) // 8) * 8    # common padded node count (16)
N_NTYPES = len(NTYPE_ORDER)
N_ETYPES = len(CANONICAL_ETYPES)

# static per-etype src/dst ntype indices and dst-type groups (baked into the kernel)
SRC_IDX = tuple(NTYPE_INDEX[s] for (s, _, _) in CANONICAL_ETYPES)
DST_IDX = tuple(NTYPE_INDEX[d] for (_, _, d) in CANONICAL_ETYPES)
_dg = {}
for _i, (_s, _e, _d) in enumerate(CANONICAL_ETYPES):
    _dg.setdefault(_d, []).append(_i)
DST_GROUPS = tuple(tuple(v) for v in _dg.values())

# head-selection constants:
#   HEAD_MASK[h, l] = 1.0 iff lane l belongs to head h      (H, HD)
#   HEAD_SEL[l, h]  = HEAD_MASK[h, l]                       (HD, H)
HEAD_MASK_NP = (np.arange(HD)[None, :] // HIDDEN_DIM ==
                np.arange(N_HEADS)[:, None]).astype(np.float32)
HEAD_SEL_NP = np.ascontiguousarray(HEAD_MASK_NP.T)


# ------------------------------ small helpers --------------------------------
def _fast_reciprocal(x):
    # EUP approximate reciprocal; fall back on older jax.
    if hasattr(pl, "reciprocal"):
        return pl.reciprocal(x, approx=True)
    return 1.0 / x


# ------------------------------ fused Pallas kernel --------------------------
def _r_hgnn_fused_kernel(x_ref, w_nt_ref, b_nt_ref, w_att_ref, b_att_ref,
                         att_src_ref, att_dst_ref, mask_ref, w_cross_ref,
                         head_sel_ref, head_mask_ref,
                         ft_ref, out_ref,
                         *, src_idx, dst_idx, dst_groups,
                         negative_slope, n_heads, head_dim):
    f32 = jnp.float32
    hd = n_heads * head_dim
    n_nt = ft_ref.shape[0]
    n_et = out_ref.shape[0]

    head_sel = head_sel_ref[...]            # (HD, H)  block-diagonal ones selector
    head_mask = head_mask_ref[...]          # (H, HD)

    def leaky(v):
        return jnp.where(v >= 0, v, negative_slope * v)

    # ---- 1) per-ntype node transformation; results stay live in registers ----
    ft = []
    for t in range(n_nt):
        ft_t = (jnp.dot(x_ref[t], w_nt_ref[t], preferred_element_type=f32)
                + b_nt_ref[t])                                              # (Np, HD)
        ft.append(ft_t)
        ft_ref[t] = ft_t.astype(ft_ref.dtype)                               # full-width store

    # ---- 2) relation-aware attention per canonical etype (unrolled) ----
    att_out = []
    for e in range(n_et):
        # fused (node transform  o  relation-specific src transform) from raw features
        feat_src = (jnp.dot(x_ref[src_idx[e]], w_att_ref[e],
                            preferred_element_type=f32) + b_att_ref[e])     # (Np, HD)
        feat_dst = ft[dst_idx[e]]                                           # (Np, HD)

        # head-batched logits on the MXU
        e_dst = jnp.dot(feat_dst * att_dst_ref[e], head_sel,
                        preferred_element_type=f32)                         # (Np, H)
        att_src_rows = att_src_ref[e] * head_mask                           # (H, HD)
        e_src = jnp.einsum("hd,sd->hs", att_src_rows, feat_src,
                           preferred_element_type=f32)                      # (H, Np)
        mask_e = mask_ref[e]                                                # (Np, Np) additive

        out_acc = jnp.zeros((feat_dst.shape[0], hd), f32)
        for hh in range(n_heads):
            scores = leaky(e_dst[:, hh:hh + 1] + e_src[hh:hh + 1, :]) + mask_e
            m = jnp.max(scores, axis=-1, keepdims=True)
            m = jnp.where(m < -1e29, f32(0.0), m)          # dst nodes without edges
            p = jnp.exp(scores - m)                        # exactly 0 on masked entries
            den = jnp.sum(p, axis=-1, keepdims=True)
            a = p * _fast_reciprocal(jnp.maximum(den, f32(1e-20)))          # edge softmax
            # head-masked src features keep the aggregation lane-dense (single acc)
            out_acc = out_acc + jnp.dot(a, feat_src * head_mask[hh:hh + 1, :],
                                        preferred_element_type=f32)
        att_out.append(jnp.maximum(out_acc, 0.0))                           # ReLU

    # ---- 3) relation crossing per destination ntype; one full-width store per etype ----
    for group in dst_groups:
        if len(group) == 1:
            e = group[0]
            out_ref[e] = att_out[e].astype(out_ref.dtype)
            continue
        feats = [att_out[r] for r in group]
        for e in group:                                    # each etype has its own weight
            logits = [leaky(jnp.dot(f * w_cross_ref[e], head_sel,
                                    preferred_element_type=f32))
                      for f in feats]                      # each (Np, H)
            m = functools.reduce(jnp.maximum, logits)      # softmax over relations
            exps = [jnp.exp(l - m) for l in logits]
            inv = _fast_reciprocal(jnp.maximum(
                functools.reduce(lambda a_, b_: a_ + b_, exps), f32(1e-20)))
            res = jnp.zeros_like(feats[0])
            for f, ex in zip(feats, exps):
                attn_wide = jnp.dot(ex * inv, head_mask,
                                    preferred_element_type=f32)             # (Np, HD)
                res = res + f * attn_wide
            out_ref[e] = res.astype(out_ref.dtype)


def pallas_r_hgnn_fused(x_stacked, w_nt_t, b_nt, w_att, b_att,
                        att_src, att_dst, mask, w_cross):
    """One fused call; whole problem fits in VMEM so no grid / BlockSpecs needed."""
    kern = functools.partial(
        _r_hgnn_fused_kernel,
        src_idx=SRC_IDX, dst_idx=DST_IDX, dst_groups=DST_GROUPS,
        negative_slope=NEG_SLOPE, n_heads=N_HEADS, head_dim=HIDDEN_DIM)
    head_sel = jnp.asarray(HEAD_SEL_NP)
    head_mask = jnp.asarray(HEAD_MASK_NP)
    ft, out = pl.pallas_call(
        kern,
        out_shape=(jax.ShapeDtypeStruct((N_NTYPES, N_PAD, HD), jnp.float32),
                   jax.ShapeDtypeStruct((N_ETYPES, N_PAD, HD), jnp.float32)),
    )(x_stacked, w_nt_t, b_nt, w_att, b_att, att_src, att_dst, mask, w_cross,
      head_sel, head_mask)
    return ft, out


# ------------------------------ parameter setup ------------------------------
def _xavier_normal(key, shape, gain=1.0):
    fan_out, fan_in = shape[0], shape[1]
    std = gain * (2.0 / (fan_in + fan_out)) ** 0.5
    return std * jax.random.normal(key, shape, dtype=jnp.float32)


def init_params(key):
    """Raw parameters are created torch-Linear style, then pre-stacked / pre-transposed /
    pre-fused once (review: hoist all restaging out of the jitted forward)."""
    gain = 2.0 ** 0.5  # relu gain
    keys = iter(jax.random.split(key, 64))

    w_node, b_node = {}, {}
    for nt in NTYPE_ORDER:
        w_node[nt] = _xavier_normal(next(keys), (HD, INPUT_DIM), gain)      # (out, in)
        b_node[nt] = jnp.zeros((HD,), jnp.float32)

    w_src, b_src, rel_w, w_rp, b_rp, w_cross = {}, {}, {}, {}, {}, {}
    for (_, et, _) in CANONICAL_ETYPES:
        w_src[et] = _xavier_normal(next(keys), (HD, HD), 1.0)
        b_src[et] = jnp.zeros((HD,), jnp.float32)
        rel_w[et] = _xavier_normal(next(keys),
                                   (REL_INPUT_DIM, N_HEADS * 2 * HIDDEN_DIM), gain)
        w_rp[et] = _xavier_normal(next(keys),
                                  (N_HEADS * REL_HIDDEN_DIM, REL_INPUT_DIM), gain)
        b_rp[et] = jnp.zeros((N_HEADS * REL_HIDDEN_DIM,), jnp.float32)
        w_cross[et] = _xavier_normal(next(keys), (N_HEADS, HIDDEN_DIM), gain)

    params = {
        "w_nt_t": jnp.stack([w_node[nt].T for nt in NTYPE_ORDER]),          # (T, in, HD)
        "b_nt": jnp.stack([b_node[nt][None, :] for nt in NTYPE_ORDER]),     # (T, 1, HD)
        # algebraic fusion of node transform + relation-specific src transform:
        #   feat_src = x_src @ (W_node^T @ W_src^T) + (b_node @ W_src^T + b_src)
        "w_att": jnp.stack([w_node[s].T @ w_src[et].T
                            for (s, et, _) in CANONICAL_ETYPES]),           # (E, in, HD)
        "b_att": jnp.stack([(b_node[s] @ w_src[et].T + b_src[et])[None, :]
                            for (s, et, _) in CANONICAL_ETYPES]),           # (E, 1, HD)
        "rel_w": jnp.stack([rel_w[et] for (_, et, _) in CANONICAL_ETYPES]), # (E, rin, 2HD)
        "w_rp_t": jnp.stack([w_rp[et].T for (_, et, _) in CANONICAL_ETYPES]),  # (E, rin, H*rh)
        "b_rp": jnp.stack([b_rp[et] for (_, et, _) in CANONICAL_ETYPES]),   # (E, H*rh)
        "w_cross": jnp.stack([w_cross[et].reshape(1, HD)
                              for (_, et, _) in CANONICAL_ETYPES]),         # (E, 1, HD)
    }
    return params


def build_additive_mask(adj):
    """Precompute the (E, N_PAD, N_PAD) additive edge mask once per graph (static adj)."""
    masks = []
    for (s, e, d) in CANONICAL_ETYPES:
        ns, nd = NTYPES[s], NTYPES[d]
        a = np.asarray(adj[(s, e, d)], dtype=np.float32)                    # (nd, ns)
        m = np.full((N_PAD, N_PAD), NEG_INF, np.float32)
        m[:nd, :ns] = np.where(a > 0.5, np.float32(0.0), np.float32(NEG_INF))
        masks.append(m)
    return jnp.asarray(np.stack(masks, axis=0))


# ------------------------------ layer forward --------------------------------
def r_hgnn_layer_forward(h, relation_embedding, params, mask):
    f32 = jnp.float32

    # pad & stack raw node features: (T, N_PAD, INPUT_DIM)
    x_stacked = jnp.stack(
        [jnp.pad(h[nt].astype(f32), ((0, N_PAD - NTYPES[nt]), (0, 0)))
         for nt in NTYPE_ORDER], axis=0)

    # relation-embedding -> per-head attention vectors (tiny 1-row matmuls: plain XLA)
    emb = jnp.stack([relation_embedding[e] for (_, e, _) in CANONICAL_ETYPES],
                    axis=0).astype(f32)                                     # (E, rel_in)
    rel_att = jnp.einsum("ei,eio->eo", emb, params["rel_w"]).reshape(
        N_ETYPES, N_HEADS, 2 * HIDDEN_DIM)
    att_dst = rel_att[:, :, :HIDDEN_DIM].reshape(N_ETYPES, 1, HD)           # [dst | src]
    att_src = rel_att[:, :, HIDDEN_DIM:].reshape(N_ETYPES, 1, HD)

    # one fused Pallas call: node transform + relation attention + relation crossing
    ft, out = pallas_r_hgnn_fused(
        x_stacked, params["w_nt_t"], params["b_nt"], params["w_att"], params["b_att"],
        att_src, att_dst, mask, params["w_cross"])

    dst_nodes_after_transformation = {
        nt: ft[NTYPE_INDEX[nt], :NTYPES[nt], :] for nt in NTYPE_ORDER}
    output_features_dict = {
        key: out[i, :NTYPES[key[2]], :] for i, key in enumerate(CANONICAL_ETYPES)}

    # (norm=False -> no LayerNorm; dropout eval-mode identity)

    # relation embedding propagation (1-row matmuls: plain XLA)
    rel_out = jnp.einsum("ei,eio->eo", emb, params["w_rp_t"]) + params["b_rp"]
    relation_embedding_dict = {
        e: rel_out[i] for i, (_, e, _) in enumerate(CANONICAL_ETYPES)}

    return output_features_dict, relation_embedding_dict, dst_nodes_after_transformation


# ---------------------------------- main --------------------------------------
if __name__ == "__main__":
    key = jax.random.PRNGKey(0)
    k_param, k_feat, k_rel, k_adj = jax.random.split(key, 4)

    params = init_params(k_param)

    # node features per ntype
    feat_keys = jax.random.split(k_feat, len(NTYPES))
    h = {
        ntype: jax.random.normal(fk, (n, INPUT_DIM), dtype=jnp.float32)
        for fk, (ntype, n) in zip(feat_keys, NTYPES.items())
    }

    # relation embeddings per etype
    rel_keys = jax.random.split(k_rel, len(CANONICAL_ETYPES))
    relation_embedding = {
        etype: jax.random.normal(rk, (REL_INPUT_DIM,), dtype=jnp.float32)
        for rk, (_, etype, _) in zip(rel_keys, CANONICAL_ETYPES)
    }

    # dense adjacency masks (N_dst, N_src) per canonical etype
    adj_keys = jax.random.split(k_adj, len(CANONICAL_ETYPES))
    adj = {}
    for ak, (stype, etype, dtype) in zip(adj_keys, CANONICAL_ETYPES):
        n_src, n_dst = NTYPES[stype], NTYPES[dtype]
        adj[(stype, etype, dtype)] = jax.random.bernoulli(
            ak, 0.4, (n_dst, n_src)).astype(jnp.float32)

    # additive edge mask built once per (static) graph, outside the jitted forward
    mask = build_additive_mask(adj)

    fwd = jax.jit(r_hgnn_layer_forward)
    out_feats, rel_embs, dst_transformed = fwd(h, relation_embedding, params, mask)
    jax.block_until_ready((out_feats, rel_embs, dst_transformed))

    # light sanity checks on shapes / finiteness
    for (s, e, d), v in out_feats.items():
        assert v.shape == (NTYPES[d], HD)
        assert bool(jnp.all(jnp.isfinite(v)))
    for e, v in rel_embs.items():
        assert v.shape == (N_HEADS * REL_HIDDEN_DIM,)
        assert bool(jnp.all(jnp.isfinite(v)))
    for nt, v in dst_transformed.items():
        assert v.shape == (NTYPES[nt], HD)
        assert bool(jnp.all(jnp.isfinite(v)))

    print("KERNEL_OK")
</pallas_src>

<mosaic_0001>
module attributes {stable_mosaic.version = 11 : i64} {
  func.func @_r_hgnn_fused_kernel(%arg0: memref<2x16x32xf32, #tpu.memory_space<vmem>>, %arg1: memref<2x32x64xf32, #tpu.memory_space<vmem>>, %arg2: memref<2x1x64xf32, #tpu.memory_space<vmem>>, %arg3: memref<3x32x64xf32, #tpu.memory_space<vmem>>, %arg4: memref<3x1x64xf32, #tpu.memory_space<vmem>>, %arg5: memref<3x1x64xf32, #tpu.memory_space<vmem>>, %arg6: memref<3x1x64xf32, #tpu.memory_space<vmem>>, %arg7: memref<3x16x16xf32, #tpu.memory_space<vmem>>, %arg8: memref<3x1x64xf32, #tpu.memory_space<vmem>>, %arg9: memref<64x4xf32, #tpu.memory_space<vmem>>, %arg10: memref<4x64xf32, #tpu.memory_space<vmem>>, %arg11: memref<2x16x64xf32, #tpu.memory_space<vmem>>, %arg12: memref<3x16x64xf32, #tpu.memory_space<vmem>>) attributes {dimension_semantics = [], scalar_prefetch = 0 : i64, scratch_operands = 0 : i64, tpu.core_type = #tpu.core_type<tc>} {
    %c0 = arith.constant 0 : index
    %c0_0 = arith.constant 0 : index
    %0 = vector.load %arg9[%c0, %c0_0] : memref<64x4xf32, #tpu.memory_space<vmem>>, vector<64x4xf32>
    %c0_1 = arith.constant 0 : index
    %c0_2 = arith.constant 0 : index
    %1 = vector.load %arg10[%c0_1, %c0_2] : memref<4x64xf32, #tpu.memory_space<vmem>>, vector<4x64xf32>
    %c0_3 = arith.constant 0 : index
    %c0_4 = arith.constant 0 : index
    %c0_5 = arith.constant 0 : index
    %2 = vector.load %arg0[%c0_3, %c0_4, %c0_5] : memref<2x16x32xf32, #tpu.memory_space<vmem>>, vector<1x16x32xf32>
    %3 = vector.shape_cast %2 : vector<1x16x32xf32> to vector<16x32xf32>
    %c0_6 = arith.constant 0 : index
    %c0_7 = arith.constant 0 : index
    %c0_8 = arith.constant 0 : index
    %4 = vector.load %arg1[%c0_6, %c0_7, %c0_8] : memref<2x32x64xf32, #tpu.memory_space<vmem>>, vector<1x32x64xf32>
    %5 = vector.shape_cast %4 : vector<1x32x64xf32> to vector<32x64xf32>
    %cst = arith.constant dense<0.000000e+00> : vector<16x64xf32>
    %6 = tpu.matmul %3, %5, %cst {dimension_numbers = #tpu.dot_dimension_numbers<[1], [0], [0], [1], [0, 0, 1, 1], [], []>} : vector<16x32xf32>, vector<32x64xf32>, vector<16x64xf32> -> vector<16x64xf32>
    %c0_9 = arith.constant 0 : index
    %c0_10 = arith.constant 0 : index
    %c0_11 = arith.constant 0 : index
    %7 = vector.load %arg2[%c0_9, %c0_10, %c0_11] : memref<2x1x64xf32, #tpu.memory_space<vmem>>, vector<1x1x64xf32>
    %8 = vector.shape_cast %7 : vector<1x1x64xf32> to vector<1x64xf32>
    %9 = vector.broadcast %8 : vector<1x64xf32> to vector<16x64xf32>
    %10 = arith.addf %6, %9 : vector<16x64xf32>
    %c0_12 = arith.constant 0 : index
    %c0_13 = arith.constant 0 : index
    %c0_14 = arith.constant 0 : index
    %11 = vector.load %arg11[%c0_12, %c0_13, %c0_14] : memref<2x16x64xf32, #tpu.memory_space<vmem>>, vector<1x16x64xf32>
    %12 = vector.shape_cast %11 : vector<1x16x64xf32> to vector<16x64xf32>
    %13 = vector.shape_cast %10 : vector<16x64xf32> to vector<1x16x64xf32>
    tpu.vector_store %arg11[%c0_12, %c0_13, %c0_14], %13 {strides = array<i32>} : memref<2x16x64xf32, #tpu.memory_space<vmem>>, vector<1x16x64xf32>,
    %c1 = arith.constant 1 : index
    %c0_15 = arith.constant 0 : index
    %c0_16 = arith.constant 0 : index
    %14 = vector.load %arg0[%c1, %c0_15, %c0_16] : memref<2x16x32xf32, #tpu.memory_space<vmem>>, vector<1x16x32xf32>
    %15 = vector.shape_cast %14 : vector<1x16x32xf32> to vector<16x32xf32>
    %c1_17 = arith.constant 1 : index
    %c0_18 = arith.constant 0 : index
    %c0_19 = arith.constant 0 : index
    %16 = vector.load %arg1[%c1_17, %c0_18, %c0_19] : memref<2x32x64xf32, #tpu.memory_space<vmem>>, vector<1x32x64xf32>
    %17 = vector.shape_cast %16 : vector<1x32x64xf32> to vector<32x64xf32>
    %cst_20 = arith.constant dense<0.000000e+00> : vector<16x64xf32>
    %18 = tpu.matmul %15, %17, %cst_20 {dimension_numbers = #tpu.dot_dimension_numbers<[1], [0], [0], [1], [0, 0, 1, 1], [], []>} : vector<16x32xf32>, vector<32x64xf32>, vector<16x64xf32> -> vector<16x64xf32>
    %c1_21 = arith.constant 1 : index
    %c0_22 = arith.constant 0 : index
    %c0_23 = arith.constant 0 : index
    %19 = vector.load %arg2[%c1_21, %c0_22, %c0_23] : memref<2x1x64xf32, #tpu.memory_space<vmem>>, vector<1x1x64xf32>
    %20 = vector.shape_cast %19 : vector<1x1x64xf32> to vector<1x64xf32>
    %21 = vector.broadcast %20 : vector<1x64xf32> to vector<16x64xf32>
    %22 = arith.addf %18, %21 : vector<16x64xf32>
    %c1_24 = arith.constant 1 : index
    %c0_25 = arith.constant 0 : index
    %c0_26 = arith.constant 0 : index
    %23 = vector.load %arg11[%c1_24, %c0_25, %c0_26] : memref<2x16x64xf32, #tpu.memory_space<vmem>>, vector<1x16x64xf32>
    %24 = vector.shape_cast %23 : vector<1x16x64xf32> to vector<16x64xf32>
    %25 = vector.shape_cast %22 : vector<16x64xf32> to vector<1x16x64xf32>
    tpu.vector_store %arg11[%c1_24, %c0_25, %c0_26], %25 {strides = array<i32>} : memref<2x16x64xf32, #tpu.memory_space<vmem>>, vector<1x16x64xf32>,
    %c0_27 = arith.constant 0 : index
    %c0_28 = arith.constant 0 : index
    %c0_29 = arith.constant 0 : index
    %26 = vector.load %arg0[%c0_27, %c0_28, %c0_29] : memref<2x16x32xf32, #tpu.memory_space<vmem>>, vector<1x16x32xf32>
    %27 = vector.shape_cast %26 : vector<1x16x32xf32> to vector<16x32xf32>
    %c0_30 = arith.constant 0 : index
    %c0_31 = arith.constant 0 : index
    %c0_32 = arith.constant 0 : index
    %28 = vector.load %arg3[%c0_30, %c0_31, %c0_32] : memref<3x32x64xf32, #tpu.memory_space<vmem>>, vector<1x32x64xf32>
    %29 = vector.shape_cast %28 : vector<1x32x64xf32> to vector<32x64xf32>
    %cst_33 = arith.constant dense<0.000000e+00> : vector<16x64xf32>
    %30 = tpu.matmul %27, %29, %cst_33 {dimension_numbers = #tpu.dot_dimension_numbers<[1], [0], [0], [1], [0, 0, 1, 1], [], []>} : vector<16x32xf32>, vector<32x64xf32>, vector<16x64xf32> -> vector<16x64xf32>
    %c0_34 = arith.constant 0 : index
    %c0_35 = arith.constant 0 : index
    %c0_36 = arith.constant 0 : index
    %31 = vector.load %arg4[%c0_34, %c0_35, %c0_36] : memref<3x1x64xf32, #tpu.memory_space<vmem>>, vector<1x1x64xf32>
    %32 = vector.shape_cast %31 : vector<1x1x64xf32> to vector<1x64xf32>
    %33 = vector.broadcast %32 : vector<1x64xf32> to vector<16x64xf32>
    %34 = arith.addf %30, %33 : vector<16x64xf32>
    %c0_37 = arith.constant 0 : index
    %c0_38 = arith.constant 0 : index
    %c0_39 = arith.constant 0 : index
    %35 = vector.load %arg6[%c0_37, %c0_38, %c0_39] : memref<3x1x64xf32, #tpu.memory_space<vmem>>, vector<1x1x64xf32>
    %36 = vector.shape_cast %35 : vector<1x1x64xf32> to vector<1x64xf32>
    %37 = vector.broadcast %36 : vector<1x64xf32> to vector<16x64xf32>
    %38 = arith.mulf %10, %37 : vector<16x64xf32>
    %cst_40 = arith.constant dense<0.000000e+00> : vector<16x4xf32>
    %39 = tpu.matmul %38, %0, %cst_40 {dimension_numbers = #tpu.dot_dimension_numbers<[1], [0], [0], [1], [0, 0, 1, 1], [], []>} : vector<16x64xf32>, vector<64x4xf32>, vector<16x4xf32> -> vector<16x4xf32>
    %c0_41 = arith.constant 0 : index
    %c0_42 = arith.constant 0 : index
    %c0_43 = arith.constant 0 : index
    %40 = vector.load %arg5[%c0_41, %c0_42, %c0_43] : memref<3x1x64xf32, #tpu.memory_space<vmem>>, vector<1x1x64xf32>
    %41 = vector.shape_cast %40 : vector<1x1x64xf32> to vector<1x64xf32>
    %42 = vector.broadcast %41 : vector<1x64xf32> to vector<4x64xf32>
    %43 = arith.mulf %42, %1 : vector<4x64xf32>
    "tpu.trace_start"() <{level = 10 : i32, message = "hd,sd->hs"}> : () -> ()
    %cst_44 = arith.constant dense<0.000000e+00> : vector<4x16xf32>
    %44 = tpu.matmul %43, %34, %cst_44 {dimension_numbers = #tpu.dot_dimension_numbers<[1], [1], [0], [0], [0, 0, 1, 0], [], []>} : vector<4x64xf32>, vector<16x64xf32>, vector<4x16xf32> -> vector<4x16xf32>
    "tpu.trace_stop"() : () -> ()
    %c0_45 = arith.constant 0 : index
    %c0_46 = arith.constant 0 : index
    %c0_47 = arith.constant 0 : index
    %45 = vector.load %arg7[%c0_45, %c0_46, %c0_47] : memref<3x16x16xf32, #tpu.memory_space<vmem>>, vector<1x16x16xf32>
    %46 = vector.shape_cast %45 : vector<1x16x16xf32> to vector<16x16xf32>
    %cst_48 = arith.constant 0.000000e+00 : f32
    %47 = vector.broadcast %cst_48 : f32 to vector<16x64xf32>
    %48 = vector.extract_strided_slice %39 {offsets = [0, 0], sizes = [16, 1], strides = [1, 1]} : vector<16x4xf32> to vector<16x1xf32>
    %49 = vector.extract_strided_slice %44 {offsets = [0, 0], sizes = [1, 16], strides = [1, 1]} : vector<4x16xf32> to vector<1x16xf32>
    %50 = vector.broadcast %48 : vector<16x1xf32> to vector<16x16xf32>
    %51 = vector.broadcast %49 : vector<1x16xf32> to vector<16x16xf32>
    %52 = arith.addf %50, %51 : vector<16x16xf32>
    %cst_49 = arith.constant 0.000000e+00 : f32
    %53 = vector.broadcast %cst_49 : f32 to vector<16x16xf32>
    %54 = arith.cmpf oge, %52, %53 : vector<16x16xf32>
    %cst_50 = arith.constant 2.000000e-01 : f32
    %55 = vector.broadcast %cst_50 : f32 to vector<16x16xf32>
    %56 = arith.mulf %55, %52 : vector<16x16xf32>
    %57 = arith.select %54, %52, %56 : vector<16x16xi1>, vector<16x16xf32>
    %58 = arith.addf %57, %46 : vector<16x16xf32>
    %cst_51 = arith.constant dense<0xFF800000> : vector<16xf32>
    %59 = vector.multi_reduction <maximumf>, %58, %cst_51 [1] : vector<16x16xf32> to vector<16xf32>
    %60 = vector.shape_cast %59 : vector<16xf32> to vector<16x1xf32>
    %cst_52 = arith.constant -1.000000e+29 : f32
    %61 = vector.broadcast %cst_52 : f32 to vector<16x1xf32>
    %62 = arith.cmpf olt, %60, %61 : vector<16x1xf32>
    %cst_53 = arith.constant 0.000000e+00 : f32
    %63 = vector.broadcast %cst_53 : f32 to vector<16x1xf32>
    %64 = arith.select %62, %63, %60 : vector<16x1xi1>, vector<16x1xf32>
    %65 = vector.broadcast %64 : vector<16x1xf32> to vector<16x16xf32>
    %66 = arith.subf %58, %65 : vector<16x16xf32>
    %67 = math.exp %66 : vector<16x16xf32>
    %cst_54 = arith.constant dense<0.000000e+00> : vector<16xf32>
    %68 = vector.multi_reduction <add>, %67, %cst_54 [1] : vector<16x16xf32> to vector<16xf32>
    %69 = vector.shape_cast %68 : vector<16xf32> to vector<16x1xf32>
    %cst_55 = arith.constant 9.99999968E-21 : f32
    %70 = vector.broadcast %cst_55 : f32 to vector<16x1xf32>
    %71 = arith.maximumf %69, %70 : vector<16x1xf32>
    %72 = tpu.reciprocal %71 {approx = true} : vector<16x1xf32> -> vector<16x1xf32>
    %73 = vector.broadcast %72 : vector<16x1xf32> to vector<16x16xf32>
    %74 = arith.mulf %67, %73 : vector<16x16xf32>
    %75 = vector.extract_strided_slice %1 {offsets = [0, 0], sizes = [1, 64], strides = [1, 1]} : vector<4x64xf32> to vector<1x64xf32>
    %76 = vector.broadcast %75 : vector<1x64xf32> to vector<16x64xf32>
    %77 = arith.mulf %34, %76 : vector<16x64xf32>
    %cst_56 = arith.constant dense<0.000000e+00> : vector<16x64xf32>
    %78 = tpu.matmul %74, %77, %cst_56 {dimension_numbers = #tpu.dot_dimension_numbers<[1], [0], [0], [1], [0, 0, 1, 1], [], []>} : vector<16x16xf32>, vector<16x64xf32>, vector<16x64xf32> -> vector<16x64xf32>
    %79 = arith.addf %47, %78 : vector<16x64xf32>
    %80 = vector.extract_strided_slice %39 {offsets = [0, 1], sizes = [16, 1], strides = [1, 1]} : vector<16x4xf32> to vector<16x1xf32>
    %81 = vector.extract_strided_slice %44 {offsets = [1, 0], sizes = [1, 16], strides = [1, 1]} : vector<4x16xf32> to vector<1x16xf32>
    %82 = vector.broadcast %80 : vector<16x1xf32> to vector<16x16xf32>
    %83 = vector.broadcast %81 : vector<1x16xf32> to vector<16x16xf32>
    %84 = arith.addf %82, %83 : vector<16x16xf32>
    %cst_57 = arith.constant 0.000000e+00 : f32
    %85 = vector.broadcast %cst_57 : f32 to vector<16x16xf32>
    %86 = arith.cmpf oge, %84, %85 : vector<16x16xf32>
    %cst_58 = arith.constant 2.000000e-01 : f32
    %87 = vector.broadcast %cst_58 : f32 to vector<16x16xf32>
    %88 = arith.mulf %87, %84 : vector<16x16xf32>
    %89 = arith.select %86, %84, %88 : vector<16x16xi1>, vector<16x16xf32>
    %90 = arith.addf %89, %46 : vector<16x16xf32>
    %cst_59 = arith.constant dense<0xFF800000> : vector<16xf32>
    %91 = vector.multi_reduction <maximumf>, %90, %cst_59 [1] : vector<16x16xf32> to vector<16xf32>
    %92 = vector.shape_cast %91 : vector<16xf32> to vector<16x1xf32>
    %cst_60 = arith.constant -1.000000e+29 : f32
    %93 = vector.broadcast %cst_60 : f32 to vector<16x1xf32>
    %94 = arith.cmpf olt, %92, %93 : vector<16x1xf32>
    %cst_61 = arith.constant 0.000000e+00 : f32
    %95 = vector.broadcast %cst_61 : f32 to vector<16x1xf32>
    %96 = arith.select %94, %95, %92 : vector<16x1xi1>, vector<16x1xf32>
    %97 = vector.broadcast %96 : vector<16x1xf32> to vector<16x16xf32>
    %98 = arith.subf %90, %97 : vector<16x16xf32>
    %99 = math.exp %98 : vector<16x16xf32>
    %cst_62 = arith.constant dense<0.000000e+00> : vector<16xf32>
    %100 = vector.multi_reduction <add>, %99, %cst_62 [1] : vector<16x16xf32> to vector<16xf32>
    %101 = vector.shape_cast %100 : vector<16xf32> to vector<16x1xf32>
    %cst_63 = arith.constant 9.99999968E-21 : f32
    %102 = vector.broadcast %cst_63 : f32 to vector<16x1xf32>
    %103 = arith.maximumf %101, %102 : vector<16x1xf32>
    %104 = tpu.reciprocal %103 {approx = true} : vector<16x1xf32> -> vector<16x1xf32>
    %105 = vector.broadcast %104 : vector<16x1xf32> to vector<16x16xf32>
    %106 = arith.mulf %99, %105 : vector<16x16xf32>
    %107 = vector.extract_strided_slice %1 {offsets = [1, 0], sizes = [1, 64], strides = [1, 1]} : vector<4x64xf32> to vector<1x64xf32>
    %108 = vector.broadcast %107 : vector<1x64xf32> to vector<16x64xf32>
    %109 = arith.mulf %34, %108 : vector<16x64xf32>
    %cst_64 = arith.constant dense<0.000000e+00> : vector<16x64xf32>
    %110 = tpu.matmul %106, %109, %cst_64 {dimension_numbers = #tpu.dot_dimension_numbers<[1], [0], [0], [1], [0, 0, 1, 1], [], []>} : vector<16x16xf32>, vector<16x64xf32>, vector<16x64xf32> -> vector<16x64xf32>
    %111 = arith.addf %79, %110 : vector<16x64xf32>
    %112 = vector.extract_strided_slice %39 {offsets = [0, 2], sizes = [16, 1], strides = [1, 1]} : vector<16x4xf32> to vector<16x1xf32>
    %113 = vector.extract_strided_slice %44 {offsets = [2, 0], sizes = [1, 16], strides = [1, 1]} : vector<4x16xf32> to vector<1x16xf32>
    %114 = vector.broadcast %112 : vector<16x1xf32> to vector<16x16xf32>
    %115 = vector.broadcast %113 : vector<1x16xf32> to vector<16x16xf32>
    %116 = arith.addf %114, %115 : vector<16x16xf32>
    %cst_65 = arith.constant 0.000000e+00 : f32
    %117 = vector.broadcast %cst_65 : f32 to vector<16x16xf32>
    %118 = arith.cmpf oge, %116, %117 : vector<16x16xf32>
    %cst_66 = arith.constant 2.000000e-01 : f32
    %119 = vector.broadcast %cst_66 : f32 to vector<16x16xf32>
    %120 = arith.mulf %119, %116 : vector<16x16xf32>
    %121 = arith.select %118, %116, %120 : vector<16x16xi1>, vector<16x16xf32>
    %122 = arith.addf %121, %46 : vector<16x16xf32>
    %cst_67 = arith.constant dense<0xFF800000> : vector<16xf32>
    %123 = vector.multi_reduction <maximumf>, %122, %cst_67 [1] : vector<16x16xf32> to vector<16xf32>
    %124 = vector.shape_cast %123 : vector<16xf32> to vector<16x1xf32>
    %cst_68 = arith.constant -1.000000e+29 : f32
    %125 = vector.broadcast %cst_68 : f32 to vector<16x1xf32>
    %126 = arith.cmpf olt, %124, %125 : vector<16x1xf32>
    %cst_69 = arith.constant 0.000000e+00 : f32
    %127 = vector.broadcast %cst_69 : f32 to vector<16x1xf32>
    %128 = arith.select %126, %127, %124 : vector<16x1xi1>, vector<16x1xf32>
    %129 = vector.broadcast %128 : vector<16x1xf32> to vector<16x16xf32>
    %130 = arith.subf %122, %129 : vector<16x16xf32>
    %131 = math.exp %130 : vector<16x16xf32>
    %cst_70 = arith.constant dense<0.000000e+00> : vector<16xf32>
    %132 = vector.multi_reduction <add>, %131, %cst_70 [1] : vector<16x16xf32> to vector<16xf32>
    %133 = vector.shape_cast %132 : vector<16xf32> to vector<16x1xf32>
    %cst_71 = arith.constant 9.99999968E-21 : f32
    %134 = vector.broadcast %cst_71 : f32 to vector<16x1xf32>
    %135 = arith.maximumf %133, %134 : vector<16x1xf32>
    %136 = tpu.reciprocal %135 {approx = true} : vector<16x1xf32> -> vector<16x1xf32>
    %137 = vector.broadcast %136 : vector<16x1xf32> to vector<16x16xf32>
    %138 = arith.mulf %131, %137 : vector<16x16xf32>
    %139 = vector.extract_strided_slice %1 {offsets = [2, 0], sizes = [1, 64], strides = [1, 1]} : vector<4x64xf32> to vector<1x64xf32>
    %140 = vector.broadcast %139 : vector<1x64xf32> to vector<16x64xf32>
    %141 = arith.mulf %34, %140 : vector<16x64xf32>
    %cst_72 = arith.constant dense<0.000000e+00> : vector<16x64xf32>
    %142 = tpu.matmul %138, %141, %cst_72 {dimension_numbers = #tpu.dot_dimension_numbers<[1], [0], [0], [1], [0, 0, 1, 1], [], []>} : vector<16x16xf32>, vector<16x64xf32>, vector<16x64xf32> -> vector<16x64xf32>
    %143 = arith.addf %111, %142 : vector<16x64xf32>
    %144 = vector.extract_strided_slice %39 {offsets = [0, 3], sizes = [16, 1], strides = [1, 1]} : vector<16x4xf32> to vector<16x1xf32>
    %145 = vector.extract_strided_slice %44 {offsets = [3, 0], sizes = [1, 16], strides = [1, 1]} : vector<4x16xf32> to vector<1x16xf32>
    %146 = vector.broadcast %144 : vector<16x1xf32> to vector<16x16xf32>
    %147 = vector.broadcast %145 : vector<1x16xf32> to vector<16x16xf32>
    %148 = arith.addf %146, %147 : vector<16x16xf32>
    %cst_73 = arith.constant 0.000000e+00 : f32
    %149 = vector.broadcast %cst_73 : f32 to vector<16x16xf32>
    %150 = arith.cmpf oge, %148, %149 : vector<16x16xf32>
    %cst_74 = arith.constant 2.000000e-01 : f32
    %151 = vector.broadcast %cst_74 : f32 to vector<16x16xf32>
    %152 = arith.mulf %151, %148 : vector<16x16xf32>
    %153 = arith.select %150, %148, %152 : vector<16x16xi1>, vector<16x16xf32>
    %154 = arith.addf %153, %46 : vector<16x16xf32>
    %cst_75 = arith.constant dense<0xFF800000> : vector<16xf32>
    %155 = vector.multi_reduction <maximumf>, %154, %cst_75 [1] : vector<16x16xf32> to vector<16xf32>
    %156 = vector.shape_cast %155 : vector<16xf32> to vector<16x1xf32>
    %cst_76 = arith.constant -1.000000e+29 : f32
    %157 = vector.broadcast %cst_76 : f32 to vector<16x1xf32>
    %158 = arith.cmpf olt, %156, %157 : vector<16x1xf32>
    %cst_77 = arith.constant 0.000000e+00 : f32
    %159 = vector.broadcast %cst_77 : f32 to vector<16x1xf32>
    %160 = arith.select %158, %159, %156 : vector<16x1xi1>, vector<16x1xf32>
    %161 = vector.broadcast %160 : vector<16x1xf32> to vector<16x16xf32>
    %162 = arith.subf %154, %161 : vector<16x16xf32>
    %163 = math.exp %162 : vector<16x16xf32>
    %cst_78 = arith.constant dense<0.000000e+00> : vector<16xf32>
    %164 = vector.multi_reduction <add>, %163, %cst_78 [1] : vector<16x16xf32> to vector<16xf32>
    %165 = vector.shape_cast %164 : vector<16xf32> to vector<16x1xf32>
    %cst_79 = arith.constant 9.99999968E-21 : f32
    %166 = vector.broadcast %cst_79 : f32 to vector<16x1xf32>
    %167 = arith.maximumf %165, %166 : vector<16x1xf32>
    %168 = tpu.reciprocal %167 {approx = true} : vector<16x1xf32> -> vector<16x1xf32>
    %169 = vector.broadcast %168 : vector<16x1xf32> to vector<16x16xf32>
    %170 = arith.mulf %163, %169 : vector<16x16xf32>
    %171 = vector.extract_strided_slice %1 {offsets = [3, 0], sizes = [1, 64], strides = [1, 1]} : vector<4x64xf32> to vector<1x64xf32>
    %172 = vector.broadcast %171 : vector<1x64xf32> to vector<16x64xf32>
    %173 = arith.mulf %34, %172 : vector<16x64xf32>
    %cst_80 = arith.constant dense<0.000000e+00> : vector<16x64xf32>
    %174 = tpu.matmul %170, %173, %cst_80 {dimension_numbers = #tpu.dot_dimension_numbers<[1], [0], [0], [1], [0, 0, 1, 1], [], []>} : vector<16x16xf32>, vector<16x64xf32>, vector<16x64xf32> -> vector<16x64xf32>
    %175 = arith.addf %143, %174 : vector<16x64xf32>
    %cst_81 = arith.constant 0.000000e+00 : f32
    %176 = vector.broadcast %cst_81 : f32 to vector<16x64xf32>
    %177 = arith.maximumf %175, %176 : vector<16x64xf32>
    %c0_82 = arith.constant 0 : index
    %c0_83 = arith.constant 0 : index
    %c0_84 = arith.constant 0 : index
    %178 = vector.load %arg0[%c0_82, %c0_83, %c0_84] : memref<2x16x32xf32, #tpu.memory_space<vmem>>, vector<1x16x32xf32>
    %179 = vector.shape_cast %178 : vector<1x16x32xf32> to vector<16x32xf32>
    %c1_85 = arith.constant 1 : index
    %c0_86 = arith.constant 0 : index
    %c0_87 = arith.constant 0 : index
    %180 = vector.load %arg3[%c1_85, %c0_86, %c0_87] : memref<3x32x64xf32, #tpu.memory_space<vmem>>, vector<1x32x64xf32>
    %181 = vector.shape_cast %180 : vector<1x32x64xf32> to vector<32x64xf32>
    %cst_88 = arith.constant dense<0.000000e+00> : vector<16x64xf32>
    %182 = tpu.matmul %179, %181, %cst_88 {dimension_numbers = #tpu.dot_dimension_numbers<[1], [0], [0], [1], [0, 0, 1, 1], [], []>} : vector<16x32xf32>, vector<32x64xf32>, vector<16x64xf32> -> vector<16x64xf32>
    %c1_89 = arith.constant 1 : index
    %c0_90 = arith.constant 0 : index
    %c0_91 = arith.constant 0 : index
    %183 = vector.load %arg4[%c1_89, %c0_90, %c0_91] : memref<3x1x64xf32, #tpu.memory_space<vmem>>, vector<1x1x64xf32>
    %184 = vector.shape_cast %183 : vector<1x1x64xf32> to vector<1x64xf32>
    %185 = vector.broadcast %184 : vector<1x64xf32> to vector<16x64xf32>
    %186 = arith.addf %182, %185 : vector<16x64xf32>
    %c1_92 = arith.constant 1 : index
    %c0_93 = arith.constant 0 : index
    %c0_94 = arith.constant 0 : index
    %187 = vector.load %arg6[%c1_92, %c0_93, %c0_94] : memref<3x1x64xf32, #tpu.memory_space<vmem>>, vector<1x1x64xf32>
    %188 = vector.shape_cast %187 : vector<1x1x64xf32> to vector<1x64xf32>
    %189 = vector.broadcast %188 : vector<1x64xf32> to vector<16x64xf32>
    %190 = arith.mulf %22, %189 : vector<16x64xf32>
    %cst_95 = arith.constant dense<0.000000e+00> : vector<16x4xf32>
    %191 = tpu.matmul %190, %0, %cst_95 {dimension_numbers = #tpu.dot_dimension_numbers<[1], [0], [0], [1], [0, 0, 1, 1], [], []>} : vector<16x64xf32>, vector<64x4xf32>, vector<16x4xf32> -> vector<16x4xf32>
    %c1_96 = arith.constant 1 : index
    %c0_97 = arith.constant 0 : index
    %c0_98 = arith.constant 0 : index
    %192 = vector.load %arg5[%c1_96, %c0_97, %c0_98] : memref<3x1x64xf32, #tpu.memory_space<vmem>>, vector<1x1x64xf32>
    %193 = vector.shape_cast %192 : vector<1x1x64xf32> to vector<1x64xf32>
    %194 = vector.broadcast %193 : vector<1x64xf32> to vector<4x64xf32>
    %195 = arith.mulf %194, %1 : vector<4x64xf32>
    "tpu.trace_start"() <{level = 10 : i32, message = "hd,sd->hs"}> : () -> ()
    %cst_99 = arith.constant dense<0.000000e+00> : vector<4x16xf32>
    %196 = tpu.matmul %195, %186, %cst_99 {dimension_numbers = #tpu.dot_dimension_numbers<[1], [1], [0], [0], [0, 0, 1, 0], [], []>} : vector<4x64xf32>, vector<16x64xf32>, vector<4x16xf32> -> vector<4x16xf32>
    "tpu.trace_stop"() : () -> ()
    %c1_100 = arith.constant 1 : index
    %c0_101 = arith.constant 0 : index
    %c0_102 = arith.constant 0 : index
    %197 = vector.load %arg7[%c1_100, %c0_101, %c0_102] : memref<3x16x16xf32, #tpu.memory_space<vmem>>, vector<1x16x16xf32>
    %198 = vector.shape_cast %197 : vector<1x16x16xf32> to vector<16x16xf32>
    %cst_103 = arith.constant 0.000000e+00 : f32
    %199 = vector.broadcast %cst_103 : f32 to vector<16x64xf32>
    %200 = vector.extract_strided_slice %191 {offsets = [0, 0], sizes = [16, 1], strides = [1, 1]} : vector<16x4xf32> to vector<16x1xf32>
    %201 = vector.extract_strided_slice %196 {offsets = [0, 0], sizes = [1, 16], strides = [1, 1]} : vector<4x16xf32> to vector<1x16xf32>
    %202 = vector.broadcast %200 : vector<16x1xf32> to vector<16x16xf32>
    %203 = vector.broadcast %201 : vector<1x16xf32> to vector<16x16xf32>
    %204 = arith.addf %202, %203 : vector<16x16xf32>
    %cst_104 = arith.constant 0.000000e+00 : f32
    %205 = vector.broadcast %cst_104 : f32 to vector<16x16xf32>
    %206 = arith.cmpf oge, %204, %205 : vector<16x16xf32>
    %cst_105 = arith.constant 2.000000e-01 : f32
    %207 = vector.broadcast %cst_105 : f32 to vector<16x16xf32>
    %208 = arith.mulf %207, %204 : vector<16x16xf32>
    %209 = arith.select %206, %204, %208 : vector<16x16xi1>, vector<16x16xf32>
    %210 = arith.addf %209, %198 : vector<16x16xf32>
    %cst_106 = arith.constant dense<0xFF800000> : vector<16xf32>
    %211 = vector.multi_reduction <maximumf>, %210, %cst_106 [1] : vector<16x16xf32> to vector<16xf32>
    %212 = vector.shape_cast %211 : vector<16xf32> to vector<16x1xf32>
    %cst_107 = arith.constant -1.000000e+29 : f32
    %213 = vector.broadcast %cst_107 : f32 to vector<16x1xf32>
    %214 = arith.cmpf olt, %212, %213 : vector<16x1xf32>
    %cst_108 = arith.constant 0.000000e+00 : f32
    %215 = vector.broadcast %cst_108 : f32 to vector<16x1xf32>
    %216 = arith.select %214, %215, %212 : vector<16x1xi1>, vector<16x1xf32>
    %217 = vector.broadcast %216 : vector<16x1xf32> to vector<16x16xf32>
    %218 = arith.subf %210, %217 : vector<16x16xf32>
    %219 = math.exp %218 : vector<16x16xf32>
    %cst_109 = arith.constant dense<0.000000e+00> : vector<16xf32>
    %220 = vector.multi_reduction <add>, %219, %cst_109 [1] : vector<16x16xf32> to vector<16xf32>
    %221 = vector.shape_cast %220 : vector<16xf32> to vector<16x1xf32>
    %cst_110 = arith.constant 9.99999968E-21 : f32
    %222 = vector.broadcast %cst_110 : f32 to vector<16x1xf32>
    %223 = arith.maximumf %221, %222 : vector<16x1xf32>
    %224 = tpu.reciprocal %223 {approx = true} : vector<16x1xf32> -> vector<16x1xf32>
    %225 = vector.broadcast %224 : vector<16x1xf32> to vector<16x16xf32>
    %226 = arith.mulf %219, %225 : vector<16x16xf32>
    %227 = vector.extract_strided_slice %1 {offsets = [0, 0], sizes = [1, 64], strides = [1, 1]} : vector<4x64xf32> to vector<1x64xf32>
    %228 = vector.broadcast %227 : vector<1x64xf32> to vector<16x64xf32>
    %229 = arith.mulf %186, %228 : vector<16x64xf32>
    %cst_111 = arith.constant dense<0.000000e+00> : vector<16x64xf32>
    %230 = tpu.matmul %226, %229, %cst_111 {dimension_numbers = #tpu.dot_dimension_numbers<[1], [0], [0], [1], [0, 0, 1, 1], [], []>} : vector<16x16xf32>, vector<16x64xf32>, vector<16x64xf32> -> vector<16x64xf32>
    %231 = arith.addf %199, %230 : vector<16x64xf32>
    %232 = vector.extract_strided_slice %191 {offsets = [0, 1], sizes = [16, 1], strides = [1, 1]} : vector<16x4xf32> to vector<16x1xf32>
    %233 = vector.extract_strided_slice %196 {offsets = [1, 0], sizes = [1, 16], strides = [1, 1]} : vector<4x16xf32> to vector<1x16xf32>
    %234 = vector.broadcast %232 : vector<16x1xf32> to vector<16x16xf32>
    %235 = vector.broadcast %233 : vector<1x16xf32> to vector<16x16xf32>
    %236 = arith.addf %234, %235 : vector<16x16xf32>
    %cst_112 = arith.constant 0.000000e+00 : f32
    %237 = vector.broadcast %cst_112 : f32 to vector<16x16xf32>
    %238 = arith.cmpf oge, %236, %237 : vector<16x16xf32>
    %cst_113 = arith.constant 2.000000e-01 : f32
    %239 = vector.broadcast %cst_113 : f32 to vector<16x16xf32>
    %240 = arith.mulf %239, %236 : vector<16x16xf32>
    %241 = arith.select %238, %236, %240 : vector<16x16xi1>, vector<16x16xf32>
    %242 = arith.addf %241, %198 : vector<16x16xf32>
    %cst_114 = arith.constant dense<0xFF800000> : vector<16xf32>
    %243 = vector.multi_reduction <maximumf>, %242, %cst_114 [1] : vector<16x16xf32> to vector<16xf32>
    %244 = vector.shape_cast %243 : vector<16xf32> to vector<16x1xf32>
    %cst_115 = arith.constant -1.000000e+29 : f32
    %245 = vector.broadcast %cst_115 : f32 to vector<16x1xf32>
    %246 = arith.cmpf olt, %244, %245 : vector<16x1xf32>
    %cst_116 = arith.constant 0.000000e+00 : f32
    %247 = vector.broadcast %cst_116 : f32 to vector<16x1xf32>
    %248 = arith.select %246, %247, %244 : vector<16x1xi1>, vector<16x1xf32>
    %249 = vector.broadcast %248 : vector<16x1xf32> to vector<16x16xf32>
    %250 = arith.subf %242, %249 : vector<16x16xf32>
    %251 = math.exp %250 : vector<16x16xf32>
    %cst_117 = arith.constant dense<0.000000e+00> : vector<16xf32>
    %252 = vector.multi_reduction <add>, %251, %cst_117 [1] : vector<16x16xf32> to vector<16xf32>
    %253 = vector.shape_cast %252 : vector<16xf32> to vector<16x1xf32>
    %cst_118 = arith.constant 9.99999968E-21 : f32
    %254 = vector.broadcast %cst_118 : f32 to vector<16x1xf32>
    %255 = arith.maximumf %253, %254 : vector<16x1xf32>
    %256 = tpu.reciprocal %255 {approx = true} : vector<16x1xf32> -> vector<16x1xf32>
    %257 = vector.broadcast %256 : vector<16x1xf32> to vector<16x16xf32>
    %258 = arith.mulf %251, %257 : vector<16x16xf32>
    %259 = vector.extract_strided_slice %1 {offsets = [1, 0], sizes = [1, 64], strides = [1, 1]} : vector<4x64xf32> to vector<1x64xf32>
    %260 = vector.broadcast %259 : vector<1x64xf32> to vector<16x64xf32>
    %261 = arith.mulf %186, %260 : vector<16x64xf32>
    %cst_119 = arith.constant dense<0.000000e+00> : vector<16x64xf32>
    %262 = tpu.matmul %258, %261, %cst_119 {dimension_numbers = #tpu.dot_dimension_numbers<[1], [0], [0], [1], [0, 0, 1, 1], [], []>} : vector<16x16xf32>, vector<16x64xf32>, vector<16x64xf32> -> vector<16x64xf32>
    %263 = arith.addf %231, %262 : vector<16x64xf32>
    %264 = vector.extract_strided_slice %191 {offsets = [0, 2], sizes = [16, 1], strides = [1, 1]} : vector<16x4xf32> to vector<16x1xf32>
    %265 = vector.extract_strided_slice %196 {offsets = [2, 0], sizes = [1, 16], strides = [1, 1]} : vector<4x16xf32> to vector<1x16xf32>
    %266 = vector.broadcast %264 : vector<16x1xf32> to vector<16x16xf32>
    %267 = vector.broadcast %265 : vector<1x16xf32> to vector<16x16xf32>
    %268 = arith.addf %266, %267 : vector<16x16xf32>
    %cst_120 = arith.constant 0.000000e+00 : f32
    %269 = vector.broadcast %cst_120 : f32 to vector<16x16xf32>
    %270 = arith.cmpf oge, %268, %269 : vector<16x16xf32>
    %cst_121 = arith.constant 2.000000e-01 : f32
    %271 = vector.broadcast %cst_121 : f32 to vector<16x16xf32>
    %272 = arith.mulf %271, %268 : vector<16x16xf32>
    %273 = arith.select %270, %268, %272 : vector<16x16xi1>, vector<16x16xf32>
    %274 = arith.addf %273, %198 : vector<16x16xf32>
    %cst_122 = arith.constant dense<0xFF800000> : vector<16xf32>
    %275 = vector.multi_reduction <maximumf>, %274, %cst_122 [1] : vector<16x16xf32> to vector<16xf32>
    %276 = vector.shape_cast %275 : vector<16xf32> to vector<16x1xf32>
    %cst_123 = arith.constant -1.000000e+29 : f32
    %277 = vector.broadcast %cst_123 : f32 to vector<16x1xf32>
    %278 = arith.cmpf olt, %276, %277 : vector<16x1xf32>
    %cst_124 = arith.constant 0.000000e+00 : f32
    %279 = vector.broadcast %cst_124 : f32 to vector<16x1xf32>
    %280 = arith.select %278, %279, %276 : vector<16x1xi1>, vector<16x1xf32>
    %281 = vector.broadcast %280 : vector<16x1xf32> to vector<16x16xf32>
    %282 = arith.subf %274, %281 : vector<16x16xf32>
    %283 = math.exp %282 : vector<16x16xf32>
    %cst_125 = arith.constant dense<0.000000e+00> : vector<16xf32>
    %284 = vector.multi_reduction <add>, %283, %cst_125 [1] : vector<16x16xf32> to vector<16xf32>
    %285 = vector.shape_cast %284 : vector<16xf32> to vector<16x1xf32>
    %cst_126 = arith.constant 9.99999968E-21 : f32
    %286 = vector.broadcast %cst_126 : f32 to vector<16x1xf32>
    %287 = arith.maximumf %285, %286 : vector<16x1xf32>
    %288 = tpu.reciprocal %287 {approx = true} : vector<16x1xf32> -> vector<16x1xf32>
    %289 = vector.broadcast %288 : vector<16x1xf32> to vector<16x16xf32>
    %290 = arith.mulf %283, %289 : vector<16x16xf32>
    %291 = vector.extract_strided_slice %1 {offsets = [2, 0], sizes = [1, 64], strides = [1, 1]} : vector<4x64xf32> to vector<1x64xf32>
    %292 = vector.broadcast %291 : vector<1x64xf32> to vector<16x64xf32>
    %293 = arith.mulf %186, %292 : vector<16x64xf32>
    %cst_127 = arith.constant dense<0.000000e+00> : vector<16x64xf32>
    %294 = tpu.matmul %290, %293, %cst_127 {dimension_numbers = #tpu.dot_dimension_numbers<[1], [0], [0], [1], [0, 0, 1, 1], [], []>} : vector<16x16xf32>, vector<16x64xf32>, vector<16x64xf32> -> vector<16x64xf32>
    %295 = arith.addf %263, %294 : vector<16x64xf32>
    %296 = vector.extract_strided_slice %191 {offsets = [0, 3], sizes = [16, 1], strides = [1, 1]} : vector<16x4xf32> to vector<16x1xf32>
    %297 = vector.extract_strided_slice %196 {offsets = [3, 0], sizes = [1, 16], strides = [1, 1]} : vector<4x16xf32> to vector<1x16xf32>
    %298 = vector.broadcast %296 : vector<16x1xf32> to vector<16x16xf32>
    %299 = vector.broadcast %297 : vector<1x16xf32> to vector<16x16xf32>
    %300 = arith.addf %298, %299 : vector<16x16xf32>
    %cst_128 = arith.constant 0.000000e+00 : f32
    %301 = vector.broadcast %cst_128 : f32 to vector<16x16xf32>
    %302 = arith.cmpf oge, %300, %301 : vector<16x16xf32>
    %cst_129 = arith.constant 2.000000e-01 : f32
    %303 = vector.broadcast %cst_129 : f32 to vector<16x16xf32>
    %304 = arith.mulf %303, %300 : vector<16x16xf32>
    %305 = arith.select %302, %300, %304 : vector<16x16xi1>, vector<16x16xf32>
    %306 = arith.addf %305, %198 : vector<16x16xf32>
    %cst_130 = arith.constant dense<0xFF800000> : vector<16xf32>
    %307 = vector.multi_reduction <maximumf>, %306, %cst_130 [1] : vector<16x16xf32> to vector<16xf32>
    %308 = vector.shape_cast %307 : vector<16xf32> to vector<16x1xf32>
    %cst_131 = arith.constant -1.000000e+29 : f32
    %309 = vector.broadcast %cst_131 : f32 to vector<16x1xf32>
    %310 = arith.cmpf olt, %308, %309 : vector<16x1xf32>
    %cst_132 = arith.constant 0.000000e+00 : f32
    %311 = vector.broadcast %cst_132 : f32 to vector<16x1xf32>
    %312 = arith.select %310, %311, %308 : vector<16x1xi1>, vector<16x1xf32>
    %313 = vector.broadcast %312 : vector<16x1xf32> to vector<16x16xf32>
    %314 = arith.subf %306, %313 : vector<16x16xf32>
    %315 = math.exp %314 : vector<16x16xf32>
    %cst_133 = arith.constant dense<0.000000e+00> : vector<16xf32>
    %316 = vector.multi_reduction <add>, %315, %cst_133 [1] : vector<16x16xf32> to vector<16xf32>
    %317 = vector.shape_cast %316 : vector<16xf32> to vector<16x1xf32>
    %cst_134 = arith.constant 9.99999968E-21 : f32
    %318 = vector.broadcast %cst_134 : f32 to vector<16x1xf32>
    %319 = arith.maximumf %317, %318 : vector<16x1xf32>
    %320 = tpu.reciprocal %319 {approx = true} : vector<16x1xf32> -> vector<16x1xf32>
    %321 = vector.broadcast %320 : vector<16x1xf32> to vector<16x16xf32>
    %322 = arith.mulf %315, %321 : vector<16x16xf32>
    %323 = vector.extract_strided_slice %1 {offsets = [3, 0], sizes = [1, 64], strides = [1, 1]} : vector<4x64xf32> to vector<1x64xf32>
    %324 = vector.broadcast %323 : vector<1x64xf32> to vector<16x64xf32>
    %325 = arith.mulf %186, %324 : vector<16x64xf32>
    %cst_135 = arith.constant dense<0.000000e+00> : vector<16x64xf32>
    %326 = tpu.matmul %322, %325, %cst_135 {dimension_numbers = #tpu.dot_dimension_numbers<[1], [0], [0], [1], [0, 0, 1, 1], [], []>} : vector<16x16xf32>, vector<16x64xf32>, vector<16x64xf32> -> vector<16x64xf32>
    %327 = arith.addf %295, %326 : vector<16x64xf32>
    %cst_136 = arith.constant 0.000000e+00 : f32
    %328 = vector.broadcast %cst_136 : f32 to vector<16x64xf32>
    %329 = arith.maximumf %327, %328 : vector<16x64xf32>
    %c1_137 = arith.constant 1 : index
    %c0_138 = arith.constant 0 : index
    %c0_139 = arith.constant 0 : index
    %330 = vector.load %arg0[%c1_137, %c0_138, %c0_139] : memref<2x16x32xf32, #tpu.memory_space<vmem>>, vector<1x16x32xf32>
    %331 = vector.shape_cast %330 : vector<1x16x32xf32> to vector<16x32xf32>
    %c2 = arith.constant 2 : index
    %c0_140 = arith.constant 0 : index
    %c0_141 = arith.constant 0 : index
    %332 = vector.load %arg3[%c2, %c0_140, %c0_141] : memref<3x32x64xf32, #tpu.memory_space<vmem>>, vector<1x32x64xf32>
    %333 = vector.shape_cast %332 : vector<1x32x64xf32> to vector<32x64xf32>
    %cst_142 = arith.constant dense<0.000000e+00> : vector<16x64xf32>
    %334 = tpu.matmul %331, %333, %cst_142 {dimension_numbers = #tpu.dot_dimension_numbers<[1], [0], [0], [1], [0, 0, 1, 1], [], []>} : vector<16x32xf32>, vector<32x64xf32>, vector<16x64xf32> -> vector<16x64xf32>
    %c2_143 = arith.constant 2 : index
    %c0_144 = arith.constant 0 : index
    %c0_145 = arith.constant 0 : index
    %335 = vector.load %arg4[%c2_143, %c0_144, %c0_145] : memref<3x1x64xf32, #tpu.memory_space<vmem>>, vector<1x1x64xf32>
    %336 = vector.shape_cast %335 : vector<1x1x64xf32> to vector<1x64xf32>
    %337 = vector.broadcast %336 : vector<1x64xf32> to vector<16x64xf32>
    %338 = arith.addf %334, %337 : vector<16x64xf32>
    %c2_146 = arith.constant 2 : index
    %c0_147 = arith.constant 0 : index
    %c0_148 = arith.constant 0 : index
    %339 = vector.load %arg6[%c2_146, %c0_147, %c0_148] : memref<3x1x64xf32, #tpu.memory_space<vmem>>, vector<1x1x64xf32>
    %340 = vector.shape_cast %339 : vector<1x1x64xf32> to vector<1x64xf32>
    %341 = vector.broadcast %340 : vector<1x64xf32> to vector<16x64xf32>
    %342 = arith.mulf %10, %341 : vector<16x64xf32>
    %cst_149 = arith.constant dense<0.000000e+00> : vector<16x4xf32>
    %343 = tpu.matmul %342, %0, %cst_149 {dimension_numbers = #tpu.dot_dimension_numbers<[1], [0], [0], [1], [0, 0, 1, 1], [], []>} : vector<16x64xf32>, vector<64x4xf32>, vector<16x4xf32> -> vector<16x4xf32>
    %c2_150 = arith.constant 2 : index
    %c0_151 = arith.constant 0 : index
    %c0_152 = arith.constant 0 : index
    %344 = vector.load %arg5[%c2_150, %c0_151, %c0_152] : memref<3x1x64xf32, #tpu.memory_space<vmem>>, vector<1x1x64xf32>
    %345 = vector.shape_cast %344 : vector<1x1x64xf32> to vector<1x64xf32>
    %346 = vector.broadcast %345 : vector<1x64xf32> to vector<4x64xf32>
    %347 = arith.mulf %346, %1 : vector<4x64xf32>
    "tpu.trace_start"() <{level = 10 : i32, message = "hd,sd->hs"}> : () -> ()
    %cst_153 = arith.constant dense<0.000000e+00> : vector<4x16xf32>
    %348 = tpu.matmul %347, %338, %cst_153 {dimension_numbers = #tpu.dot_dimension_numbers<[1], [1], [0], [0], [0, 0, 1, 0], [], []>} : vector<4x64xf32>, vector<16x64xf32>, vector<4x16xf32> -> vector<4x16xf32>
    "tpu.trace_stop"() : () -> ()
    %c2_154 = arith.constant 2 : index
    %c0_155 = arith.constant 0 : index
    %c0_156 = arith.constant 0 : index
    %349 = vector.load %arg7[%c2_154, %c0_155, %c0_156] : memref<3x16x16xf32, #tpu.memory_space<vmem>>, vector<1x16x16xf32>
    %350 = vector.shape_cast %349 : vector<1x16x16xf32> to vector<16x16xf32>
    %cst_157 = arith.constant 0.000000e+00 : f32
    %351 = vector.broadcast %cst_157 : f32 to vector<16x64xf32>
    %352 = vector.extract_strided_slice %343 {offsets = [0, 0], sizes = [16, 1], strides = [1, 1]} : vector<16x4xf32> to vector<16x1xf32>
    %353 = vector.extract_strided_slice %348 {offsets = [0, 0], sizes = [1, 16], strides = [1, 1]} : vector<4x16xf32> to vector<1x16xf32>
    %354 = vector.broadcast %352 : vector<16x1xf32> to vector<16x16xf32>
    %355 = vector.broadcast %353 : vector<1x16xf32> to vector<16x16xf32>
    %356 = arith.addf %354, %355 : vector<16x16xf32>
    %cst_158 = arith.constant 0.000000e+00 : f32
    %357 = vector.broadcast %cst_158 : f32 to vector<16x16xf32>
    %358 = arith.cmpf oge, %356, %357 : vector<16x16xf32>
    %cst_159 = arith.constant 2.000000e-01 : f32
    %359 = vector.broadcast %cst_159 : f32 to vector<16x16xf32>
    %360 = arith.mulf %359, %356 : vector<16x16xf32>
    %361 = arith.select %358, %356, %360 : vector<16x16xi1>, vector<16x16xf32>
    %362 = arith.addf %361, %350 : vector<16x16xf32>
    %cst_160 = arith.constant dense<0xFF800000> : vector<16xf32>
    %363 = vector.multi_reduction <maximumf>, %362, %cst_160 [1] : vector<16x16xf32> to vector<16xf32>
    %364 = vector.shape_cast %363 : vector<16xf32> to vector<16x1xf32>
    %cst_161 = arith.constant -1.000000e+29 : f32
    %365 = vector.broadcast %cst_161 : f32 to vector<16x1xf32>
    %366 = arith.cmpf olt, %364, %365 : vector<16x1xf32>
    %cst_162 = arith.constant 0.000000e+00 : f32
    %367 = vector.broadcast %cst_162 : f32 to vector<16x1xf32>
    %368 = arith.select %366, %367, %364 : vector<16x1xi1>, vector<16x1xf32>
    %369 = vector.broadcast %368 : vector<16x1xf32> to vector<16x16xf32>
    %370 = arith.subf %362, %369 : vector<16x16xf32>
    %371 = math.exp %370 : vector<16x16xf32>
    %cst_163 = arith.constant dense<0.000000e+00> : vector<16xf32>
    %372 = vector.multi_reduction <add>, %371, %cst_163 [1] : vector<16x16xf32> to vector<16xf32>
    %373 = vector.shape_cast %372 : vector<16xf32> to vector<16x1xf32>
    %cst_164 = arith.constant 9.99999968E-21 : f32
    %374 = vector.broadcast %cst_164 : f32 to vector<16x1xf32>
    %375 = arith.maximumf %373, %374 : vector<16x1xf32>
    %376 = tpu.reciprocal %375 {approx = true} : vector<16x1xf32> -> vector<16x1xf32>
    %377 = vector.broadcast %376 : vector<16x1xf32> to vector<16x16xf32>
    %378 = arith.mulf %371, %377 : vector<16x16xf32>
    %379 = vector.extract_strided_slice %1 {offsets = [0, 0], sizes = [1, 64], strides = [1, 1]} : vector<4x64xf32> to vector<1x64xf32>
    %380 = vector.broadcast %379 : vector<1x64xf32> to vector<16x64xf32>
    %381 = arith.mulf %338, %380 : vector<16x64xf32>
    %cst_165 = arith.constant dense<0.000000e+00> : vector<16x64xf32>
    %382 = tpu.matmul %378, %381, %cst_165 {dimension_numbers = #tpu.dot_dimension_numbers<[1], [0], [0], [1], [0, 0, 1, 1], [], []>} : vector<16x16xf32>, vector<16x64xf32>, vector<16x64xf32> -> vector<16x64xf32>
    %383 = arith.addf %351, %382 : vector<16x64xf32>
    %384 = vector.extract_strided_slice %343 {offsets = [0, 1], sizes = [16, 1], strides = [1, 1]} : vector<16x4xf32> to vector<16x1xf32>
    %385 = vector.extract_strided_slice %348 {offsets = [1, 0], sizes = [1, 16], strides = [1, 1]} : vector<4x16xf32> to vector<1x16xf32>
    %386 = vector.broadcast %384 : vector<16x1xf32> to vector<16x16xf32>
    %387 = vector.broadcast %385 : vector<1x16xf32> to vector<16x16xf32>
    %388 = arith.addf %386, %387 : vector<16x16xf32>
    %cst_166 = arith.constant 0.000000e+00 : f32
    %389 = vector.broadcast %cst_166 : f32 to vector<16x16xf32>
    %390 = arith.cmpf oge, %388, %389 : vector<16x16xf32>
    %cst_167 = arith.constant 2.000000e-01 : f32
    %391 = vector.broadcast %cst_167 : f32 to vector<16x16xf32>
    %392 = arith.mulf %391, %388 : vector<16x16xf32>
    %393 = arith.select %390, %388, %392 : vector<16x16xi1>, vector<16x16xf32>
    %394 = arith.addf %393, %350 : vector<16x16xf32>
    %cst_168 = arith.constant dense<0xFF800000> : vector<16xf32>
    %395 = vector.multi_reduction <maximumf>, %394, %cst_168 [1] : vector<16x16xf32> to vector<16xf32>
    %396 = vector.shape_cast %395 : vector<16xf32> to vector<16x1xf32>
    %cst_169 = arith.constant -1.000000e+29 : f32
    %397 = vector.broadcast %cst_169 : f32 to vector<16x1xf32>
    %398 = arith.cmpf olt, %396, %397 : vector<16x1xf32>
    %cst_170 = arith.constant 0.000000e+00 : f32
    %399 = vector.broadcast %cst_170 : f32 to vector<16x1xf32>
    %400 = arith.select %398, %399, %396 : vector<16x1xi1>, vector<16x1xf32>
    %401 = vector.broadcast %400 : vector<16x1xf32> to vector<16x16xf32>
    %402 = arith.subf %394, %401 : vector<16x16xf32>
    %403 = math.exp %402 : vector<16x16xf32>
    %cst_171 = arith.constant dense<0.000000e+00> : vector<16xf32>
    %404 = vector.multi_reduction <add>, %403, %cst_171 [1] : vector<16x16xf32> to vector<16xf32>
    %405 = vector.shape_cast %404 : vector<16xf32> to vector<16x1xf32>
    %cst_172 = arith.constant 9.99999968E-21 : f32
    %406 = vector.broadcast %cst_172 : f32 to vector<16x1xf32>
    %407 = arith.maximumf %405, %406 : vector<16x1xf32>
    %408 = tpu.reciprocal %407 {approx = true} : vector<16x1xf32> -> vector<16x1xf32>
    %409 = vector.broadcast %408 : vector<16x1xf32> to vector<16x16xf32>
    %410 = arith.mulf %403, %409 : vector<16x16xf32>
    %411 = vector.extract_strided_slice %1 {offsets = [1, 0], sizes = [1, 64], strides = [1, 1]} : vector<4x64xf32> to vector<1x64xf32>
    %412 = vector.broadcast %411 : vector<1x64xf32> to vector<16x64xf32>
    %413 = arith.mulf %338, %412 : vector<16x64xf32>
    %cst_173 = arith.constant dense<0.000000e+00> : vector<16x64xf32>
    %414 = tpu.matmul %410, %413, %cst_173 {dimension_numbers = #tpu.dot_dimension_numbers<[1], [0], [0], [1], [0, 0, 1, 1], [], []>} : vector<16x16xf32>, vector<16x64xf32>, vector<16x64xf32> -> vector<16x64xf32>
    %415 = arith.addf %383, %414 : vector<16x64xf32>
    %416 = vector.extract_strided_slice %343 {offsets = [0, 2], sizes = [16, 1], strides = [1, 1]} : vector<16x4xf32> to vector<16x1xf32>
    %417 = vector.extract_strided_slice %348 {offsets = [2, 0], sizes = [1, 16], strides = [1, 1]} : vector<4x16xf32> to vector<1x16xf32>
    %418 = vector.broadcast %416 : vector<16x1xf32> to vector<16x16xf32>
    %419 = vector.broadcast %417 : vector<1x16xf32> to vector<16x16xf32>
    %420 = arith.addf %418, %419 : vector<16x16xf32>
    %cst_174 = arith.constant 0.000000e+00 : f32
    %421 = vector.broadcast %cst_174 : f32 to vector<16x16xf32>
    %422 = arith.cmpf oge, %420, %421 : vector<16x16xf32>
    %cst_175 = arith.constant 2.000000e-01 : f32
    %423 = vector.broadcast %cst_175 : f32 to vector<16x16xf32>
    %424 = arith.mulf %423, %420 : vector<16x16xf32>
    %425 = arith.select %422, %420, %424 : vector<16x16xi1>, vector<16x16xf32>
    %426 = arith.addf %425, %350 : vector<16x16xf32>
    %cst_176 = arith.constant dense<0xFF800000> : vector<16xf32>
    %427 = vector.multi_reduction <maximumf>, %426, %cst_176 [1] : vector<16x16xf32> to vector<16xf32>
    %428 = vector.shape_cast %427 : vector<16xf32> to vector<16x1xf32>
    %cst_177 = arith.constant -1.000000e+29 : f32
    %429 = vector.broadcast %cst_177 : f32 to vector<16x1xf32>
    %430 = arith.cmpf olt, %428, %429 : vector<16x1xf32>
    %cst_178 = arith.constant 0.000000e+00 : f32
    %431 = vector.broadcast %cst_178 : f32 to vector<16x1xf32>
    %432 = arith.select %430, %431, %428 : vector<16x1xi1>, vector<16x1xf32>
    %433 = vector.broadcast %432 : vector<16x1xf32> to vector<16x16xf32>
    %434 = arith.subf %426, %433 : vector<16x16xf32>
    %435 = math.exp %434 : vector<16x16xf32>
    %cst_179 = arith.constant dense<0.000000e+00> : vector<16xf32>
    %436 = vector.multi_reduction <add>, %435, %cst_179 [1] : vector<16x16xf32> to vector<16xf32>
    %437 = vector.shape_cast %436 : vector<16xf32> to vector<16x1xf32>
    %cst_180 = arith.constant 9.99999968E-21 : f32
    %438 = vector.broadcast %cst_180 : f32 to vector<16x1xf32>
    %439 = arith.maximumf %437, %438 : vector<16x1xf32>
    %440 = tpu.reciprocal %439 {approx = true} : vector<16x1xf32> -> vector<16x1xf32>
    %441 = vector.broadcast %440 : vector<16x1xf32> to vector<16x16xf32>
    %442 = arith.mulf %435, %441 : vector<16x16xf32>
    %443 = vector.extract_strided_slice %1 {offsets = [2, 0], sizes = [1, 64], strides = [1, 1]} : vector<4x64xf32> to vector<1x64xf32>
    %444 = vector.broadcast %443 : vector<1x64xf32> to vector<16x64xf32>
    %445 = arith.mulf %338, %444 : vector<16x64xf32>
    %cst_181 = arith.constant dense<0.000000e+00> : vector<16x64xf32>
    %446 = tpu.matmul %442, %445, %cst_181 {dimension_numbers = #tpu.dot_dimension_numbers<[1], [0], [0], [1], [0, 0, 1, 1], [], []>} : vector<16x16xf32>, vector<16x64xf32>, vector<16x64xf32> -> vector<16x64xf32>
    %447 = arith.addf %415, %446 : vector<16x64xf32>
    %448 = vector.extract_strided_slice %343 {offsets = [0, 3], sizes = [16, 1], strides = [1, 1]} : vector<16x4xf32> to vector<16x1xf32>
    %449 = vector.extract_strided_slice %348 {offsets = [3, 0], sizes = [1, 16], strides = [1, 1]} : vector<4x16xf32> to vector<1x16xf32>
    %450 = vector.broadcast %448 : vector<16x1xf32> to vector<16x16xf32>
    %451 = vector.broadcast %449 : vector<1x16xf32> to vector<16x16xf32>
    %452 = arith.addf %450, %451 : vector<16x16xf32>
    %cst_182 = arith.constant 0.000000e+00 : f32
    %453 = vector.broadcast %cst_182 : f32 to vector<16x16xf32>
    %454 = arith.cmpf oge, %452, %453 : vector<16x16xf32>
    %cst_183 = arith.constant 2.000000e-01 : f32
    %455 = vector.broadcast %cst_183 : f32 to vector<16x16xf32>
    %456 = arith.mulf %455, %452 : vector<16x16xf32>
    %457 = arith.select %454, %452, %456 : vector<16x16xi1>, vector<16x16xf32>
    %458 = arith.addf %457, %350 : vector<16x16xf32>
    %cst_184 = arith.constant dense<0xFF800000> : vector<16xf32>
    %459 = vector.multi_reduction <maximumf>, %458, %cst_184 [1] : vector<16x16xf32> to vector<16xf32>
    %460 = vector.shape_cast %459 : vector<16xf32> to vector<16x1xf32>
    %cst_185 = arith.constant -1.000000e+29 : f32
    %461 = vector.broadcast %cst_185 : f32 to vector<16x1xf32>
    %462 = arith.cmpf olt, %460, %461 : vector<16x1xf32>
    %cst_186 = arith.constant 0.000000e+00 : f32
    %463 = vector.broadcast %cst_186 : f32 to vector<16x1xf32>
    %464 = arith.select %462, %463, %460 : vector<16x1xi1>, vector<16x1xf32>
    %465 = vector.broadcast %464 : vector<16x1xf32> to vector<16x16xf32>
    %466 = arith.subf %458, %465 : vector<16x16xf32>
    %467 = math.exp %466 : vector<16x16xf32>
    %cst_187 = arith.constant dense<0.000000e+00> : vector<16xf32>
    %468 = vector.multi_reduction <add>, %467, %cst_187 [1] : vector<16x16xf32> to vector<16xf32>
    %469 = vector.shape_cast %468 : vector<16xf32> to vector<16x1xf32>
    %cst_188 = arith.constant 9.99999968E-21 : f32
    %470 = vector.broadcast %cst_188 : f32 to vector<16x1xf32>
    %471 = arith.maximumf %469, %470 : vector<16x1xf32>
    %472 = tpu.reciprocal %471 {approx = true} : vector<16x1xf32> -> vector<16x1xf32>
    %473 = vector.broadcast %472 : vector<16x1xf32> to vector<16x16xf32>
    %474 = arith.mulf %467, %473 : vector<16x16xf32>
    %475 = vector.extract_strided_slice %1 {offsets = [3, 0], sizes = [1, 64], strides = [1, 1]} : vector<4x64xf32> to vector<1x64xf32>
    %476 = vector.broadcast %475 : vector<1x64xf32> to vector<16x64xf32>
    %477 = arith.mulf %338, %476 : vector<16x64xf32>
    %cst_189 = arith.constant dense<0.000000e+00> : vector<16x64xf32>
    %478 = tpu.matmul %474, %477, %cst_189 {dimension_numbers = #tpu.dot_dimension_numbers<[1], [0], [0], [1], [0, 0, 1, 1], [], []>} : vector<16x16xf32>, vector<16x64xf32>, vector<16x64xf32> -> vector<16x64xf32>
    %479 = arith.addf %447, %478 : vector<16x64xf32>
    %cst_190 = arith.constant 0.000000e+00 : f32
    %480 = vector.broadcast %cst_190 : f32 to vector<16x64xf32>
    %481 = arith.maximumf %479, %480 : vector<16x64xf32>
    %c0_191 = arith.constant 0 : index
    %c0_192 = arith.constant 0 : index
    %c0_193 = arith.constant 0 : index
    %482 = vector.load %arg8[%c0_191, %c0_192, %c0_193] : memref<3x1x64xf32, #tpu.memory_space<vmem>>, vector<1x1x64xf32>
    %483 = vector.shape_cast %482 : vector<1x1x64xf32> to vector<1x64xf32>
    %484 = vector.broadcast %483 : vector<1x64xf32> to vector<16x64xf32>
    %485 = arith.mulf %177, %484 : vector<16x64xf32>
    %cst_194 = arith.constant dense<0.000000e+00> : vector<16x4xf32>
    %486 = tpu.matmul %485, %0, %cst_194 {dimension_numbers = #tpu.dot_dimension_numbers<[1], [0], [0], [1], [0, 0, 1, 1], [], []>} : vector<16x64xf32>, vector<64x4xf32>, vector<16x4xf32> -> vector<16x4xf32>
    %cst_195 = arith.constant 0.000000e+00 : f32
    %487 = vector.broadcast %cst_195 : f32 to vector<16x4xf32>
    %488 = arith.cmpf oge, %486, %487 : vector<16x4xf32>
    %cst_196 = arith.constant 2.000000e-01 : f32
    %489 = vector.broadcast %cst_196 : f32 to vector<16x4xf32>
    %490 = arith.mulf %489, %486 : vector<16x4xf32>
    %491 = arith.select %488, %486, %490 : vector<16x4xi1>, vector<16x4xf32>
    %c0_197 = arith.constant 0 : index
    %c0_198 = arith.constant 0 : index
    %c0_199 = arith.constant 0 : index
    %492 = vector.load %arg8[%c0_197, %c0_198, %c0_199] : memref<3x1x64xf32, #tpu.memory_space<vmem>>, vector<1x1x64xf32>
    %493 = vector.shape_cast %492 : vector<1x1x64xf32> to vector<1x64xf32>
    %494 = vector.broadcast %493 : vector<1x64xf32> to vector<16x64xf32>
    %495 = arith.mulf %481, %494 : vector<16x64xf32>
    %cst_200 = arith.constant dense<0.000000e+00> : vector<16x4xf32>
    %496 = tpu.matmul %495, %0, %cst_200 {dimension_numbers = #tpu.dot_dimension_numbers<[1], [0], [0], [1], [0, 0, 1, 1], [], []>} : vector<16x64xf32>, vector<64x4xf32>, vector<16x4xf32> -> vector<16x4xf32>
    %cst_201 = arith.constant 0.000000e+00 : f32
    %497 = vector.broadcast %cst_201 : f32 to vector<16x4xf32>
    %498 = arith.cmpf oge, %496, %497 : vector<16x4xf32>
    %cst_202 = arith.constant 2.000000e-01 : f32
    %499 = vector.broadcast %cst_202 : f32 to vector<16x4xf32>
    %500 = arith.mulf %499, %496 : vector<16x4xf32>
    %501 = arith.select %498, %496, %500 : vector<16x4xi1>, vector<16x4xf32>
    %502 = arith.maximumf %491, %501 : vector<16x4xf32>
    %503 = arith.subf %491, %502 : vector<16x4xf32>
    %504 = math.exp %503 : vector<16x4xf32>
    %505 = arith.subf %501, %502 : vector<16x4xf32>
    %506 = math.exp %505 : vector<16x4xf32>
    %507 = arith.addf %504, %506 : vector<16x4xf32>
    %cst_203 = arith.constant 9.99999968E-21 : f32
    %508 = vector.broadcast %cst_203 : f32 to vector<16x4xf32>
    %509 = arith.maximumf %507, %508 : vector<16x4xf32>
    %510 = tpu.reciprocal %509 {approx = true} : vector<16x4xf32> -> vector<16x4xf32>
    %cst_204 = arith.constant 0.000000e+00 : f32
    %511 = vector.broadcast %cst_204 : f32 to vector<16x64xf32>
    %512 = arith.mulf %504, %510 : vector<16x4xf32>
    %cst_205 = arith.constant dense<0.000000e+00> : vector<16x64xf32>
    %513 = tpu.matmul %512, %1, %cst_205 {dimension_numbers = #tpu.dot_dimension_numbers<[1], [0], [0], [1], [0, 0, 1, 1], [], []>} : vector<16x4xf32>, vector<4x64xf32>, vector<16x64xf32> -> vector<16x64xf32>
    %514 = arith.mulf %177, %513 : vector<16x64xf32>
    %515 = arith.addf %511, %514 : vector<16x64xf32>
    %516 = arith.mulf %506, %510 : vector<16x4xf32>
    %cst_206 = arith.constant dense<0.000000e+00> : vector<16x64xf32>
    %517 = tpu.matmul %516, %1, %cst_206 {dimension_numbers = #tpu.dot_dimension_numbers<[1], [0], [0], [1], [0, 0, 1, 1], [], []>} : vector<16x4xf32>, vector<4x64xf32>, vector<16x64xf32> -> vector<16x64xf32>
    %518 = arith.mulf %481, %517 : vector<16x64xf32>
    %519 = arith.addf %515, %518 : vector<16x64xf32>
    %c0_207 = arith.constant 0 : index
    %c0_208 = arith.constant 0 : index
    %c0_209 = arith.constant 0 : index
    %520 = vector.load %arg12[%c0_207, %c0_208, %c0_209] : memref<3x16x64xf32, #tpu.memory_space<vmem>>, vector<1x16x64xf32>
    %521 = vector.shape_cast %520 : vector<1x16x64xf32> to vector<16x64xf32>
    %522 = vector.shape_cast %519 : vector<16x64xf32> to vector<1x16x64xf32>
    tpu.vector_store %arg12[%c0_207, %c0_208, %c0_209], %522 {strides = array<i32>} : memref<3x16x64xf32, #tpu.memory_space<vmem>>, vector<1x16x64xf32>,
    %c2_210 = arith.constant 2 : index
    %c0_211 = arith.constant 0 : index
    %c0_212 = arith.constant 0 : index
    %523 = vector.load %arg8[%c2_210, %c0_211, %c0_212] : memref<3x1x64xf32, #tpu.memory_space<vmem>>, vector<1x1x64xf32>
    %524 = vector.shape_cast %523 : vector<1x1x64xf32> to vector<1x64xf32>
    %525 = vector.broadcast %524 : vector<1x64xf32> to vector<16x64xf32>
    %526 = arith.mulf %177, %525 : vector<16x64xf32>
    %cst_213 = arith.constant dense<0.000000e+00> : vector<16x4xf32>
    %527 = tpu.matmul %526, %0, %cst_213 {dimension_numbers = #tpu.dot_dimension_numbers<[1], [0], [0], [1], [0, 0, 1, 1], [], []>} : vector<16x64xf32>, vector<64x4xf32>, vector<16x4xf32> -> vector<16x4xf32>
    %cst_214 = arith.constant 0.000000e+00 : f32
    %528 = vector.broadcast %cst_214 : f32 to vector<16x4xf32>
    %529 = arith.cmpf oge, %527, %528 : vector<16x4xf32>
    %cst_215 = arith.constant 2.000000e-01 : f32
    %530 = vector.broadcast %cst_215 : f32 to vector<16x4xf32>
    %531 = arith.mulf %530, %527 : vector<16x4xf32>
    %532 = arith.select %529, %527, %531 : vector<16x4xi1>, vector<16x4xf32>
    %c2_216 = arith.constant 2 : index
    %c0_217 = arith.constant 0 : index
    %c0_218 = arith.constant 0 : index
    %533 = vector.load %arg8[%c2_216, %c0_217, %c0_218] : memref<3x1x64xf32, #tpu.memory_space<vmem>>, vector<1x1x64xf32>
    %534 = vector.shape_cast %533 : vector<1x1x64xf32> to vector<1x64xf32>
    %535 = vector.broadcast %534 : vector<1x64xf32> to vector<16x64xf32>
    %536 = arith.mulf %481, %535 : vector<16x64xf32>
    %cst_219 = arith.constant dense<0.000000e+00> : vector<16x4xf32>
    %537 = tpu.matmul %536, %0, %cst_219 {dimension_numbers = #tpu.dot_dimension_numbers<[1], [0], [0], [1], [0, 0, 1, 1], [], []>} : vector<16x64xf32>, vector<64x4xf32>, vector<16x4xf32> -> vector<16x4xf32>
    %cst_220 = arith.constant 0.000000e+00 : f32
    %538 = vector.broadcast %cst_220 : f32 to vector<16x4xf32>
    %539 = arith.cmpf oge, %537, %538 : vector<16x4xf32>
    %cst_221 = arith.constant 2.000000e-01 : f32
    %540 = vector.broadcast %cst_221 : f32 to vector<16x4xf32>
    %541 = arith.mulf %540, %537 : vector<16x4xf32>
    %542 = arith.select %539, %537, %541 : vector<16x4xi1>, vector<16x4xf32>
    %543 = arith.maximumf %532, %542 : vector<16x4xf32>
    %544 = arith.subf %532, %543 : vector<16x4xf32>
    %545 = math.exp %544 : vector<16x4xf32>
    %546 = arith.subf %542, %543 : vector<16x4xf32>
    %547 = math.exp %546 : vector<16x4xf32>
    %548 = arith.addf %545, %547 : vector<16x4xf32>
    %cst_222 = arith.constant 9.99999968E-21 : f32
    %549 = vector.broadcast %cst_222 : f32 to vector<16x4xf32>
    %550 = arith.maximumf %548, %549 : vector<16x4xf32>
    %551 = tpu.reciprocal %550 {approx = true} : vector<16x4xf32> -> vector<16x4xf32>
    %cst_223 = arith.constant 0.000000e+00 : f32
    %552 = vector.broadcast %cst_223 : f32 to vector<16x64xf32>
    %553 = arith.mulf %545, %551 : vector<16x4xf32>
    %cst_224 = arith.constant dense<0.000000e+00> : vector<16x64xf32>
    %554 = tpu.matmul %553, %1, %cst_224 {dimension_numbers = #tpu.dot_dimension_numbers<[1], [0], [0], [1], [0, 0, 1, 1], [], []>} : vector<16x4xf32>, vector<4x64xf32>, vector<16x64xf32> -> vector<16x64xf32>
    %555 = arith.mulf %177, %554 : vector<16x64xf32>
    %556 = arith.addf %552, %555 : vector<16x64xf32>
    %557 = arith.mulf %547, %551 : vector<16x4xf32>
    %cst_225 = arith.constant dense<0.000000e+00> : vector<16x64xf32>
    %558 = tpu.matmul %557, %1, %cst_225 {dimension_numbers = #tpu.dot_dimension_numbers<[1], [0], [0], [1], [0, 0, 1, 1], [], []>} : vector<16x4xf32>, vector<4x64xf32>, vector<16x64xf32> -> vector<16x64xf32>
    %559 = arith.mulf %481, %558 : vector<16x64xf32>
    %560 = arith.addf %556, %559 : vector<16x64xf32>
    %c2_226 = arith.constant 2 : index
    %c0_227 = arith.constant 0 : index
    %c0_228 = arith.constant 0 : index
    %561 = vector.load %arg12[%c2_226, %c0_227, %c0_228] : memref<3x16x64xf32, #tpu.memory_space<vmem>>, vector<1x16x64xf32>
    %562 = vector.shape_cast %561 : vector<1x16x64xf32> to vector<16x64xf32>
    %563 = vector.shape_cast %560 : vector<16x64xf32> to vector<1x16x64xf32>
    tpu.vector_store %arg12[%c2_226, %c0_227, %c0_228], %563 {strides = array<i32>} : memref<3x16x64xf32, #tpu.memory_space<vmem>>, vector<1x16x64xf32>,
    %c1_229 = arith.constant 1 : index
    %c0_230 = arith.constant 0 : index
    %c0_231 = arith.constant 0 : index
    %564 = vector.load %arg12[%c1_229, %c0_230, %c0_231] : memref<3x16x64xf32, #tpu.memory_space<vmem>>, vector<1x16x64xf32>
    %565 = vector.shape_cast %564 : vector<1x16x64xf32> to vector<16x64xf32>
    %566 = vector.shape_cast %329 : vector<16x64xf32> to vector<1x16x64xf32>
    tpu.vector_store %arg12[%c1_229, %c0_230, %c0_231], %566 {strides = array<i32>} : memref<3x16x64xf32, #tpu.memory_space<vmem>>, vector<1x16x64xf32>,
    return
  }
}

</mosaic_0001>

<bundles_post_ra>
// kernel: r_hgnn_layer_forward.1
= control target key start
LH: loop header
LB: loop body
LE: loop exit
PB: predicated region body
PF: predicated region fallthrough
CT: control target
= control target key end

     0   :  { %18 = vsyncpa [#allocation3], 0  ;;  %s4284_s21 = smov [#allocation2]   ;;  %s5140_s0 = inlined_call_operand.vmem [shape: f32[2,16,32], index: 0, kind: input, shape index: {}]   ;;  %s5141_s1 = inlined_call_operand.vmem [shape: f32[2,32,64], index: 1, kind: input, shape index: {}]   ;;  %s5142_s2 = inlined_call_operand.hbm [shape: f32[2,1,64], index: 2, kind: input, shape index: {}]   ;;  %s5143_s3 = inlined_call_operand.vmem [shape: f32[3,32,64], index: 3, kind: input, shape index: {}]   ;;  %s5144_s4 = inlined_call_operand.vmem [shape: f32[3,1,64], index: 4, kind: input, shape index: {}]   ;;  %s5145_s5 = inlined_call_operand.vmem [shape: f32[3,1,64], index: 5, kind: input, shape index: {}]   ;;  %s5146_s6 = inlined_call_operand.vmem [shape: f32[3,1,64], index: 6, kind: input, shape index: {}]   ;;  %s5147_s7 = inlined_call_operand.vmem [shape: f32[3,16,16], index: 7, kind: input, shape index: {}]   ;;  %s5148_s8 = inlined_call_operand.vmem [shape: f32[3,1,64], index: 8, kind: input, shape index: {}]   ;;  %s5149_s9 = inlined_call_operand.vmem [shape: f32[64,4], index: 9, kind: input, shape index: {}]   ;;  %s5150_s10 = inlined_call_operand.vmem [shape: f32[4,64], index: 10, kind: input, shape index: {}]   ;;  %s5151_s11 = inlined_call_operand.vmem [shape: f32[2,16,64], index: 11, kind: output, shape index: {0}]   ;;  %s5152_s12 = inlined_call_operand.vmem [shape: f32[3,16,64], index: 12, kind: output, shape index: {1}]  }
   0x1   :  { %s28_s22 = sshll.u32 %s4284_s21, 4  ;;  %s29_s22 = int_to_ptr.vmem [resolvable:$true] %s28_s22 }
   0x2   :  { %s4270_s23 = scalar_lea.vmem %s29_s22, 32  ;;  %p4275_p1 = scmp.lt.s32.totalorder %s29_s22, %s29_s22 }
   0x3   :  { %p4271_p0 = scmp.ne.s32.totalorder %s29_s22, %s4270_s23  ;;  %p4276_p2 = scmp.lt.s32.totalorder %s4270_s23, %s4270_s23 }
   0x5   :  { %p4277_p3 = por %p4276_p2, %p4275_p1 }
   0x7   :  { %p4278_p4 = pnand %p4277_p3, %p4271_p0 }
   0x9   :  { %4281 = shalt.err (!%p4278_p4)
}
   0xa   :  { %s4285_s24 = smov 16   ;;  %s4286_s25 = smov 1  }
   0xb   :  { %34 = dma.hbm_to_vmem [thread:$0]  %s5142_s2, 32, %s29_s22, [#allocation3], %s4285_s24, %s4285_s24, %s4286_s25  }
   0xc   :  { %4282 = dma.done.wait [#allocation3], 32  }
   0xd   :  { %4283 = vsyncadd [#allocation3], 4294967264  ;;  %vm76_vm0 = vcmask 261120   ;;  %v68_v0 = vld [vmem:[%s5141_s1 + $0x18] sm:$0xff]  ;;  %v67_v1 = vld [vmem:[%s5141_s1 + $0x10] sm:$0xff]  ;;  %v4287_v24 = vmov 0.0   ;;  %v544_v25 = vlaneseq }
   0xe   :  { %3792 = vmatprep.subr.mxu0 %v68_v0  ;;  %v4370_v2 = vld [vmem:[%s5140_s0] sm:$0xff]  ;;  %v66_v3 = vld [vmem:[%s5141_s1 + $0x8] sm:$0xff]  ;;  %v3516_v4 = vld [vmem:[%s5141_s1 + $0x38] sm:$0xff]  ;;  %vm4288_vm1 = vmmov 0   ;;  %vm158_vm2 = vcmask 523264   ;;  %v4289_v62 = vmov 2  }
   0xf   :  { %3793 = vmatpush3.msra.mxu0 %v68_v0  ;;  %3800 = vmatprep.mubr.msk.f32.mxu0 %vm76_vm0, %v4370_v2  ;;  %v3515_v5 = vld [vmem:[%s5141_s1 + $0x30] sm:$0xff]  ;;  %v65_v6 = vld [vmem:[%s5141_s1] sm:$0xff]  ;;  %v3514_v7 = vld [vmem:[%s5141_s1 + $0x28] sm:$0xff]  ;;  %v545_v27 = vshrl.u32 %v544_v25, 7  ;;  %v4290_v63 = vmov 1   ;;  %vm558_vm5 = vcmask 130048  }
  0x10   :  { %3794 = vmatprep.subr.mxu0 %v67_v1  ;;  %3803 = vmatprep.subr.mxu1 %v3516_v4  ;;  %v4392_v8 = vld [vmem:[%s5140_s0 + $0x8] sm:$0xff]  ;;  %v266_v9 = vld [vmem:[%s5143_s3 + $0x18] sm:$0xff]  ;;  %v265_v10 = vld [vmem:[%s5143_s3 + $0x10] sm:$0xff] }
  0x11   :  { %3795 = vmatpush3.msra.mxu0 %v67_v1  ;;  %3804 = vmatpush3.msra.mxu1 %v3516_v4  ;;  %v3513_v11 = vld [vmem:[%s5141_s1 + $0x20] sm:$0xff]  ;;  %v264_v12 = vld [vmem:[%s5143_s3 + $0x8] sm:$0xff]  ;;  %v3511_v13 = vld [vmem:[%s5140_s0 + $0x10] sm:$0xff]  ;;  %v4494_v33 = vsub.s32 0, %v545_v27  ;;  %v4501_v35 = vsub.s32 1, %v545_v27  ;;  %v4509_v38 = vsub.s32 3, %v545_v27 }
  0x12   :  { %3796 = vmatprep.subr.mxu0 %v66_v3  ;;  %3805 = vmatprep.subr.mxu1 %v3515_v5  ;;  %v263_v14 = vld [vmem:[%s5143_s3] sm:$0xff]  ;;  %v3512_v15 = vld [vmem:[%s5140_s0 + $0x18] sm:$0xff]  ;;  %v4429_v17 = vld [vmem:[%s5149_s9 + $0x30] sm:$0xff]  ;;  %v4538_v51 = vsub.s32 2, %v545_v27 }
  0x13   :  { %3797 = vmatpush3.msra.mxu0 %v66_v3  ;;  %3806 = vmatpush3.msra.mxu1 %v3515_v5  ;;  %v4422_v16 = vld [vmem:[%s5149_s9 + $0x38] sm:$0xff]  ;;  %v4438_v18 = vld [vmem:[%s5149_s9 + $0x28] sm:$0xff]  ;;  %v4445_v19 = vld [vmem:[%s5149_s9 + $0x20] sm:$0xff]  ;;  %v4291_v5 = vmov 0  }
  0x14   :  { %3798 = vmatprep.subr.mxu0 %v65_v6  ;;  %3807 = vmatprep.subr.mxu1 %v3514_v7  ;;  %v4454_v20 = vld [vmem:[%s5149_s9 + $0x18] sm:$0xff]  ;;  %v4461_v21 = vld [vmem:[%s5149_s9 + $0x10] sm:$0xff]  ;;  %v4468_v22 = vld [vmem:[%s5149_s9 + $0x8] sm:$0xff] }
  0x15   :  { %3799 = vmatpush3.msra.mxu0 %v65_v6  ;;  %3808 = vmatpush3.msra.mxu1 %v3514_v7  ;;  %v4475_v23 = vld [vmem:[%s5149_s9] sm:$0xff] }
  0x16   :  { %3801 = vmatmul.mubr.msk.f32.vlgmr.msra.gmra.mxu0 %vm76_vm0, %v4392_v8  ;;  %3814 = vmatprep.subr.mxu0 %v266_v9  ;;  %v3508_v26 = vld [vmem:[#allocation2] ss:$0 sm:$0xff]  ;;  %v3517_v36 = vld [vmem:[#allocation2 + $0x1] ss:$0 sm:$0xff] }
  0x17   :  { %3815 = vmatpush3.msra.mxu0 %v266_v9  ;;  %3822 = vmatprep.mubr.msk.f32.mxu0 %vm76_vm0, %v4370_v2  ;;  %v3525_v31 = vld [vmem:[%s5146_s6] ss:$0 sm:$0xff] }
  0x18   :  { %3816 = vmatprep.subr.mxu0 %v265_v10  ;;  %3809 = vmatprep.subr.mxu1 %v3513_v11  ;;  %v4499_v34 = vld [vmem:[%s5150_s10] sm:$0xf] }
  0x19   :  { %3817 = vmatpush3.msra.mxu0 %v265_v10  ;;  %3810 = vmatpush3.msra.mxu1 %v3513_v11  ;;  %v3522_v40 = vld [vmem:[%s5144_s4] ss:$0 sm:$0xff]  ;;  %v4518_v42 = vrot.slane %v4499_v34, %v4494_v33  ;;  %v4525_v45 = vrot.slane %v4499_v34, %v4501_v35  ;;  %v4529_v48 = vrot.slane %v4499_v34, %v4509_v38 }
  0x1a   :  { %3818 = vmatprep.subr.mxu0 %v264_v12  ;;  %3811 = vmatprep.mubr.msk.f32.mxu1 %vm76_vm0, %v3511_v13  ;;  %v3528_v54 = vld [vmem:[%s5145_s5] ss:$0 sm:$0xff]  ;;  %v4562_v59 = vrot.slane %v4499_v34, %v4538_v51 }
  0x1b   :  { %3819 = vmatpush3.msra.mxu0 %v264_v12  ;;  %3812 = vmatmul.mubr.msk.f32.vlgmr.msra.gmra.mxu1 %vm76_vm0, %v3512_v15  ;;  %v452_v58 = vmul.f32 %v3528_v54, %v4499_v34  ;;  %v4587_v13 = vld [vmem:[%s5147_s7] sm:$0xff] }
  0x1c   :  { %3820 = vmatprep.subr.mxu0 %v263_v14  ;;  %3825 = vmatprep.subr.mxu1 %v4422_v16 }
  0x1d   :  { %3821 = vmatpush3.msra.mxu0 %v263_v14  ;;  %3826 = vmatpush3.msra.mxu1 %v4422_v16 }
  0x1e   :  { %3823 = vmatmul.mubr.msk.f32.vlgmr.msra.gmra.mxu0 %vm76_vm0, %v4392_v8  ;;  %3827 = vmatprep.subr.mxu1 %v4429_v17 }
  0x1f   :  { %3828 = vmatpush3.msra.mxu1 %v4429_v17  ;;  %3844 = vmatprep.subr.mxu0 %v4287_v24 }
  0x20   :  { %3829 = vmatprep.subr.mxu1 %v4438_v18  ;;  %3848 = vmatprep.mubr.msk.f32.mxu0 %vm4288_vm1, %v4287_v24 }
  0x21   :  { %3830 = vmatpush3.msra.mxu1 %v4438_v18  ;;  %4115 = vset.pattern.permute.xlu1 %v4289_v62 }
  0x22   :  { %3831 = vmatprep.subr.mxu1 %v4445_v19  ;;  %4114 = vset.pattern.permute.xlu0 %v4290_v63 }
  0x23   :  { %3832 = vmatpush3.msra.mxu1 %v4445_v19 }
  0x24   :  { %3833 = vmatprep.subr.mxu1 %v4454_v20 }
  0x25   :  { %3834 = vmatpush3.msra.mxu1 %v4454_v20 }
  0x26   :  { %3835 = vmatprep.subr.mxu1 %v4461_v21 }
  0x27   :  { %3836 = vmatpush3.msra.mxu1 %v4461_v21 }
  0x28   :  { %3837 = vmatprep.subr.mxu1 %v4468_v22 }
  0x29   :  { %3838 = vmatpush3.msra.mxu1 %v4468_v22 }
  0x2a   :  { %3839 = vmatprep.subr.mxu1 %v4475_v23 }
  0x2b   :  { %3840 = vmatpush3.msra.mxu1 %v4475_v23 }
  0xd6   :  { %v3802_v28 = vpop.f32.mrf.mxu0 }
  0xd7   :  { %v4482_v29 = vadd.f32 %v3802_v28, %v3508_v26 }
  0xd8   :  { %v149_v30 = vpop.f32.mrf.mxu0 }
  0xd9   :  { %160 = vst.msk [vmem:[%s5151_s11 + $0x8] sm:$0xff] %vm158_vm2, %v4482_v29  ;;  %v4492_v32 = vadd.f32 %v3508_v26, %v149_v30  ;;  %v363_v39 = vmul.f32 %v3525_v31, %v4482_v29 }
  0xdb   :  { %159 = vst.msk [vmem:[%s5151_s11] sm:$0xff] %vm158_vm2, %v4492_v32  ;;  %v362_v37 = vmul.f32 %v3525_v31, %v4492_v32  ;;  %v3813_v41 = vpop.f32.mrf.mxu1 }
  0xdc   :  { %v4520_v43 = vadd.f32 %v3813_v41, %v3517_v36 }
  0xdd   :  { %3841 = vmatprep.mubr.msk.f32.mxu1 %vm158_vm2, %v362_v37  ;;  %v249_v46 = vpop.f32.mrf.mxu1  ;;  %v4593_v37 = vld [vmem:[%s5147_s7 + $0x8] sm:$0xff] }
  0xde   :  { %3842 = vmatmul.mubr.msk.f32.vlgmr.msra.gmra.mxu1 %vm158_vm2, %v363_v39  ;;  %v3824_v44 = vpop.f32.mrf.mxu0  ;;  %3521 = vst.msk [vmem:[%s5151_s11 + $0x18] sm:$0xff] %vm158_vm2, %v4520_v43  ;;  %v4536_v49 = vadd.f32 %v3517_v36, %v249_v46 }
  0xdf   :  { %v352_v47 = vadd.f32 %v3824_v44, %v3522_v40 }
  0xe0   :  { %v346_v50 = vpop.f32.mrf.mxu0  ;;  %3520 = vst.msk [vmem:[%s5151_s11 + $0x10] sm:$0xff] %vm158_vm2, %v4536_v49 }
  0xe1   :  { %3845 = vmatpush3.xpose.msk.msra.mxu0 %vm158_vm2, %v352_v47  ;;  %v4541_v52 = vadd.f32 %v3522_v40, %v346_v50  ;;  %v592_v53 = vmul.f32 %v4518_v42, %v352_v47  ;;  %v648_v55 = vmul.f32 %v4525_v45, %v352_v47  ;;  %v4557_v57 = vmul.f32 %v4529_v48, %v352_v47 }
  0xe2   :  { %3846 = vmatprep.subr.mxu0 %v4287_v24  ;;  %v4571_v61 = vmul.f32 %v4562_v59, %v352_v47 }
  0xe3   :  { %3858 = vmatprep.subr.mxu1 %v592_v53  ;;  %v591_v56 = vmul.f32 %v4518_v42, %v4541_v52  ;;  %v647_v60 = vmul.f32 %v4525_v45, %v4541_v52 }
  0xe4   :  { %3859 = vmatpush3.msra.mxu1 %v592_v53 }
  0xe5   :  { %3847 = vmatpush3.xpose.msk.msra.mxu0 %vm158_vm2, %v4541_v52  ;;  %3860 = vmatprep.subr.mxu1 %v591_v56 }
  0xe6   :  { %3851 = vmatprep.subr.mxu0 %v648_v55  ;;  %3861 = vmatpush3.msra.mxu1 %v591_v56 }
  0xe7   :  { %3872 = vmatprep.subr.mxu1 %v4557_v57 }
  0xe8   :  { %3849 = vmatmul.mubr.msk.f32.vlgmr.msra.gmra.mxu0 %vm158_vm2, %v452_v58  ;;  %v4292_v58 = vmov 3  }
  0xe9   :  { %3852 = vmatpush3.msra.mxu0 %v648_v55 }
  0xea   :  { %3853 = vmatprep.subr.mxu0 %v647_v60 }
  0xeb   :  { %3854 = vmatpush3.msra.mxu0 %v647_v60 }
  0xec   :  { %3865 = vmatprep.subr.mxu0 %v4571_v61 }
 0x19e   :  { %v3843_v0 = vpop.f32.mrf.mxu1 }
 0x1a0   :  { %v436_v1 = vpop.f32.mrf.mxu1 }
 0x1a1   :  { %812 = vperm.xlu1 %4115, %v436_v1   ;;  %594 = vperm.xlu0 %4114, %v436_v1  }
 0x1a5   :  { %816 = vperm.xlu1 %4115, %v3843_v0   ;;  %598 = vperm.xlu0 %4114, %v3843_v0  }
 0x1a8   :  { %v4576_v3 = vpop.f32.mrf.mxu0 }
 0x1a9   :  { %4116 = vset.pattern.permute.xlu1 %v4291_v5  ;;  %4117 = vset.pattern.permute.xlu0 %v4291_v5  ;;  %v822_v6 = vrot.slane %v4576_v3, %v4538_v51  ;;  %v604_v7 = vrot.slane %v4576_v3, %v4501_v35 }
 0x1aa   :  { %v3850_v4 = vpop.f32.mrf.mxu0 }
 0x21c   :  { %v813_v9 = vpop.permute.xlu1 %812  ;;  %v595_v10 = vpop.permute.xlu0 %594 }
 0x21d   :  { %v823_v11 = vadd.f32 %v822_v6, %v813_v9  ;;  %v605_v12 = vadd.f32 %v604_v7, %v595_v10 }
 0x21f   :  { %vm825_vm3 = vcmp.ge.f32.partialorder %v823_v11, 0.0  ;;  %v827_v14 = vmul.f32 0.2, %v823_v11  ;;  %vm607_vm4 = vcmp.ge.f32.partialorder %v605_v12, 0.0  ;;  %v609_v15 = vmul.f32 0.2, %v605_v12 }
 0x220   :  { %v817_v25 = vpop.permute.xlu1 %816  ;;  %v599_v26 = vpop.permute.xlu0 %598 }
 0x221   :  { %v824_v27 = vadd.f32 %v822_v6, %v817_v25  ;;  %v606_v28 = vadd.f32 %v604_v7, %v599_v26  ;;  %v611_v30 = vsel %vm607_vm4, %v605_v12, %v609_v15  ;;  %v829_v31 = vsel %vm825_vm3, %v823_v11, %v827_v14 }
 0x222   :  { %v613_v36 = vadd.f32 %v611_v30, %v4587_v13  ;;  %v831_v44 = vadd.f32 %v829_v31, %v4587_v13 }
 0x223   :  { %vm826_vm6 = vcmp.ge.f32.partialorder %v824_v27, 0.0  ;;  %v828_v39 = vmul.f32 0.2, %v824_v27  ;;  %vm608_vm7 = vcmp.ge.f32.partialorder %v606_v28, 0.0  ;;  %v610_v40 = vmul.f32 0.2, %v606_v28 }
 0x224   :  { %v615_v41 = vsel %vm558_vm5, %v613_v36, -inf  ;;  %v833_v53 = vsel %vm558_vm5, %v831_v44, -inf }
 0x225   :  { %616 = vmax.xlane.f32.xlu0 %v615_v41  ;;  %v612_v46 = vsel %vm608_vm7, %v606_v28, %v610_v40  ;;  %v830_v47 = vsel %vm826_vm6, %v824_v27, %v828_v39  ;;  %v547_v40 = vrot.slane %v4576_v3, %v4494_v33 }
 0x226   :  { %v614_v50 = vadd.f32 %v612_v46, %v4593_v37  ;;  %v832_v55 = vadd.f32 %v830_v47, %v4593_v37 }
 0x228   :  { %v618_v54 = vsel %vm558_vm5, %v614_v50, -inf  ;;  %v836_v56 = vsel %vm558_vm5, %v832_v55, -inf }
 0x229   :  { %834 = vmax.xlane.f32.xlu0 %v833_v53  ;;  %619 = vmax.xlane.f32.xlu1 %v618_v54 }
 0x22d   :  { %837 = vmax.xlane.f32.xlu0 %v836_v56 }
 0x23a   :  { %536 = vperm.xlu1 %4116, %v436_v1  }
 0x23e   :  { %4118 = vset.pattern.permute.xlu1 %v4292_v58 }
 0x23f   :  { %951 = vperm.xlu1 %4118, %v436_v1  }
 0x243   :  { %541 = vperm.xlu0 %4117, %v3843_v0   ;;  %955 = vperm.xlu1 %4118, %v3843_v0  }
 0x247   :  { %4119 = vset.pattern.permute.xlu0 %v4290_v63  ;;  %4120 = vset.pattern.permute.xlu1 %v4290_v63 }
 0x2ae   :  { %v617_v60 = vpop.xlane.xlu0 %616 }
 0x2af   :  { %vm621_vm8 = vcmp.lt.f32.partialorder %v617_v60, -1e+29 }
 0x2b0   :  { %v623_v4 = vsel %vm621_vm8, 0.0, %v617_v60 }
 0x2b1   :  { %v625_v6 = vsub.f32 %v613_v36, %v623_v4  ;;  %v961_v36 = vrot.slane %v4576_v3, %v4509_v38 }
 0x2b2   :  { %v620_v7 = vpop.xlane.xlu1 %619  ;;  %v835_v9 = vpop.xlane.xlu0 %834 }
 0x2b3   :  { %v627_v10 = vmul.f32 1.442695, %v625_v6  ;;  %vm622_vm9 = vcmp.lt.f32.partialorder %v620_v7, -1e+29  ;;  %vm839_vm10 = vcmp.lt.f32.partialorder %v835_v9, -1e+29 }
 0x2b4   :  { %v624_v11 = vsel %vm622_vm9, 0.0, %v620_v7  ;;  %v841_v12 = vsel %vm839_vm10, 0.0, %v835_v9 }
 0x2b5   :  { %4133 = vpow2.f32 %v627_v10  ;;  %v626_v14 = vsub.f32 %v614_v50, %v624_v11  ;;  %v843_v1 = vsub.f32 %v831_v44, %v841_v12 }
 0x2b6   :  { %v537_v15 = vpop.permute.xlu1 %536  ;;  %v838_v0 = vpop.xlane.xlu0 %837 }
 0x2b7   :  { %v629_v25 = vmul.f32 1.442695, %v626_v14  ;;  %v845_v26 = vmul.f32 1.442695, %v843_v1  ;;  %vm840_vm11 = vcmp.lt.f32.partialorder %v838_v0, -1e+29  ;;  %v548_v44 = vadd.f32 %v547_v40, %v537_v15 }
 0x2b8   :  { %v842_v27 = vsel %vm840_vm11, 0.0, %v838_v0 }
 0x2b9   :  { %4135 = vpow2.f32 %v629_v25  ;;  %v844_v28 = vsub.f32 %v832_v55, %v842_v27  ;;  %v552_v55 = vmul.f32 0.2, %v548_v44  ;;  %vm550_vm13 = vcmp.ge.f32.partialorder %v548_v44, 0.0 }
 0x2ba   :  { %4137 = vpow2.f32 %v845_v26  ;;  %v952_v30 = vpop.permute.xlu1 %951 }
 0x2bb   :  { %v847_v31 = vmul.f32 1.442695, %v844_v28  ;;  %v962_v9 = vadd.f32 %v961_v36, %v952_v30  ;;  %v554_v11 = vsel %vm550_vm13, %v548_v44, %v552_v55 }
 0x2bc   :  { %v556_v15 = vadd.f32 %v554_v11, %v4587_v13 }
 0x2bd   :  { %4139 = vpow2.f32 %v847_v31  ;;  %v966_v0 = vmul.f32 0.2, %v962_v9  ;;  %vm964_vm15 = vcmp.ge.f32.partialorder %v962_v9, 0.0 }
 0x2be   :  { %v956_v39 = vpop.permute.xlu1 %955  ;;  %v542_v50 = vpop.permute.xlu0 %541  ;;  %v559_v26 = vsel %vm558_vm5, %v556_v15, -inf }
 0x2bf   :  { %v963_v41 = vadd.f32 %v961_v36, %v956_v39  ;;  %v549_v56 = vadd.f32 %v547_v40, %v542_v50  ;;  %v968_v28 = vsel %vm964_vm15, %v962_v9, %v966_v0 }
 0x2c0   :  { %v970_v31 = vadd.f32 %v968_v28, %v4587_v13 }
 0x2c1   :  { %vm965_vm12 = vcmp.ge.f32.partialorder %v963_v41, 0.0  ;;  %v967_v46 = vmul.f32 0.2, %v963_v41  ;;  %v553_v10 = vmul.f32 0.2, %v549_v56  ;;  %vm551_vm14 = vcmp.ge.f32.partialorder %v549_v56, 0.0 }
 0x2c2   :  { %v4134_v47 = vpop.eup %4133  ;;  %v972_v36 = vsel %vm558_vm5, %v970_v31, -inf }
 0x2c3   :  { %v631_v53 = vsel %vm558_vm5, %v4134_v47, 0.0  ;;  %v969_v54 = vsel %vm965_vm12, %v963_v41, %v967_v46  ;;  %v555_v25 = vsel %vm551_vm14, %v549_v56, %v553_v10 }
 0x2c4   :  { %632 = vadd.xlane.f32.xlu1 %v631_v53  ;;  %v971_v3 = vadd.f32 %v969_v54, %v4593_v37  ;;  %v557_v27 = vadd.f32 %v555_v25, %v4593_v37 }
 0x2c6   :  { %v4136_v60 = vpop.eup %4135  ;;  %v975_v14 = vsel %vm558_vm5, %v971_v3, -inf  ;;  %v562_v30 = vsel %vm558_vm5, %v557_v27, -inf }
 0x2c7   :  { %v4610_v4 = vpop.eup %4137  ;;  %v634_v6 = vsel %vm558_vm5, %v4136_v60, 0.0 }
 0x2c8   :  { %635 = vadd.xlane.f32.xlu0 %v634_v6  ;;  %v849_v7 = vsel %vm558_vm5, %v4610_v4, 0.0 }
 0x2c9   :  { %850 = vadd.xlane.f32.xlu1 %v849_v7 }
 0x2ca   :  { %v4616_v12 = vpop.eup %4139 }
 0x2cb   :  { %v852_v1 = vsel %vm558_vm5, %v4616_v12, 0.0 }
 0x2cc   :  { %976 = vmax.xlane.f32.xlu0 %v975_v14 }
 0x2cd   :  { %853 = vadd.xlane.f32.xlu1 %v852_v1 }
 0x2d1   :  { %560 = vmax.xlane.f32.xlu1 %v559_v26 }
 0x2d5   :  { %563 = vmax.xlane.f32.xlu1 %v562_v30 }
 0x2d9   :  { %973 = vmax.xlane.f32.xlu1 %v972_v36 }
 0x34d   :  { %v633_v39 = vpop.xlane.xlu1 %632 }
 0x34e   :  { %v637_v40 = vmax.f32 %v633_v39, 1e-20 }
 0x350   :  { %4141 = vrcp.f32 %v637_v40 }
 0x351   :  { %v636_v41 = vpop.xlane.xlu0 %635 }
 0x352   :  { %v851_v44 = vpop.xlane.xlu1 %850  ;;  %v638_v46 = vmax.f32 %v636_v41, 1e-20 }
 0x353   :  { %v855_v50 = vmax.f32 %v851_v44, 1e-20 }
 0x354   :  { %4143 = vrcp.f32 %v638_v46 }
 0x355   :  { %4145 = vrcp.f32 %v855_v50  ;;  %v977_v53 = vpop.xlane.xlu0 %976 }
 0x356   :  { %v854_v37 = vpop.xlane.xlu1 %853  ;;  %vm979_vm3 = vcmp.lt.f32.partialorder %v977_v53, -1e+29 }
 0x357   :  { %v856_v54 = vmax.f32 %v854_v37, 1e-20  ;;  %v981_v13 = vsel %vm979_vm3, 0.0, %v977_v53 }
 0x358   :  { %v983_v11 = vsub.f32 %v971_v3, %v981_v13 }
 0x359   :  { %4147 = vrcp.f32 %v856_v54 }
 0x35a   :  { %v561_v55 = vpop.xlane.xlu1 %560  ;;  %v986_v36 = vmul.f32 1.442695, %v983_v11 }
 0x35b   :  { %vm565_vm4 = vcmp.lt.f32.partialorder %v561_v55, -1e+29 }
 0x35c   :  { %v567_v56 = vsel %vm565_vm4, 0.0, %v561_v55 }
 0x35d   :  { %v4142_v6 = vpop.eup %4141  ;;  %v569_v7 = vsub.f32 %v556_v15, %v567_v56 }
 0x35e   :  { %v564_v9 = vpop.xlane.xlu1 %563  ;;  %v641_v10 = vmul.f32 %v4142_v6, %v4134_v47  ;;  %v865_v47 = vmul.f32 %v4562_v59, %v4541_v52 }
 0x35f   :  { %v571_v14 = vmul.f32 1.442695, %v569_v7  ;;  %vm566_vm6 = vcmp.lt.f32.partialorder %v564_v9, -1e+29 }
 0x360   :  { %v568_v1 = vsel %vm566_vm6, 0.0, %v564_v9  ;;  %3855 = vmatprep.mubr.msk.f32.mxu0 %vm558_vm5, %v641_v10 }
 0x361   :  { %v4144_v0 = vpop.eup %4143  ;;  %4149 = vpow2.f32 %v571_v14  ;;  %v570_v25 = vsub.f32 %v557_v27, %v568_v1 }
 0x362   :  { %v4146_v26 = vpop.eup %4145  ;;  %v974_v28 = vpop.xlane.xlu1 %973  ;;  %v642_v30 = vmul.f32 %v4144_v0, %v4136_v60  ;;  %v3543_v60 = vld [vmem:[%s5143_s3 + $0x38] sm:$0xff] }
 0x363   :  { %v573_v39 = vmul.f32 1.442695, %v570_v25  ;;  %vm978_vm7 = vcmp.lt.f32.partialorder %v974_v28, -1e+29  ;;  %v859_v40 = vmul.f32 %v4146_v26, %v4610_v4  ;;  %v1004_v26 = vmul.f32 %v4529_v48, %v4541_v52 }
 0x364   :  { %v980_v15 = vsel %vm978_vm7, 0.0, %v974_v28  ;;  %3856 = vmatmul.mubr.msk.f32.vlgmr.msra.gmra.mxu0 %vm558_vm5, %v642_v30  ;;  %v3549_v30 = vld [vmem:[%s5146_s6 + $0x1] ss:$0 sm:$0xff] }
 0x365   :  { %4151 = vpow2.f32 %v573_v39  ;;  %v982_v3 = vsub.f32 %v970_v31, %v980_v15  ;;  %3866 = vmatpush3.msra.mxu0 %v4571_v61  ;;  %3869 = vmatprep.mubr.msk.f32.mxu0 %vm558_vm5, %v859_v40  ;;  %v3542_v31 = vld [vmem:[%s5143_s3 + $0x30] sm:$0xff]  ;;  %v3541_v61 = vld [vmem:[%s5143_s3 + $0x28] sm:$0xff]  ;;  %v1195_v15 = vmul.f32 %v3549_v30, %v4536_v49 }
 0x366   :  { %v4148_v27 = vpop.eup %4147  ;;  %3867 = vmatprep.subr.mxu0 %v865_v47  ;;  %4153 = vpow2.f32 %v986_v36 }
 0x367   :  { %v984_v4 = vmul.f32 1.442695, %v982_v3  ;;  %3868 = vmatpush3.msra.mxu0 %v865_v47  ;;  %v860_v41 = vmul.f32 %v4148_v27, %v4616_v12  ;;  %v3540_v12 = vld [vmem:[%s5143_s3 + $0x20] sm:$0xff] }
 0x368   :  { %3879 = vmatprep.subr.mxu0 %v3543_v60 }
 0x369   :  { %4155 = vpow2.f32 %v984_v4  ;;  %3870 = vmatmul.mubr.msk.f32.vlgmr.msra.gmra.mxu0 %vm558_vm5, %v860_v41 }
 0x36a   :  { %3880 = vmatpush3.msra.mxu0 %v3543_v60  ;;  %3887 = vmatprep.mubr.msk.f32.mxu0 %vm76_vm0, %v4370_v2 }
 0x36b   :  { %3881 = vmatprep.subr.mxu0 %v3542_v31 }
 0x36c   :  { %3882 = vmatpush3.msra.mxu0 %v3542_v31 }
 0x36d   :  { %3883 = vmatprep.subr.mxu0 %v3541_v61 }
 0x36e   :  { %v4150_v44 = vpop.eup %4149  ;;  %3884 = vmatpush3.msra.mxu0 %v3541_v61 }
 0x36f   :  { %v575_v46 = vsel %vm558_vm5, %v4150_v44, 0.0  ;;  %3885 = vmatprep.subr.mxu0 %v3540_v12 }
 0x370   :  { %576 = vadd.xlane.f32.xlu1 %v575_v46  ;;  %3886 = vmatpush3.msra.mxu0 %v3540_v12 }
 0x371   :  { %3888 = vmatmul.mubr.msk.f32.vlgmr.msra.gmra.mxu0 %vm76_vm0, %v4392_v8  ;;  %3909 = vmatprep.subr.mxu0 %v4287_v24 }
 0x372   :  { %v4152_v2 = vpop.eup %4151  ;;  %3913 = vmatprep.mubr.msk.f32.mxu0 %vm4288_vm1, %v4287_v24 }
 0x373   :  { %v578_v50 = vsel %vm558_vm5, %v4152_v2, 0.0  ;;  %v4154_v37 = vpop.eup %4153 }
 0x374   :  { %579 = vadd.xlane.f32.xlu0 %v578_v50  ;;  %v991_v55 = vsel %vm558_vm5, %v4154_v37, 0.0 }
 0x376   :  { %v4156_v53 = vpop.eup %4155 }
 0x377   :  { %v988_v54 = vsel %vm558_vm5, %v4156_v53, 0.0 }
 0x378   :  { %989 = vadd.xlane.f32.xlu1 %v988_v54  ;;  %992 = vadd.xlane.f32.xlu0 %v991_v55 }
 0x3f9   :  { %v577_v13 = vpop.xlane.xlu1 %576 }
 0x3fa   :  { %v581_v56 = vmax.f32 %v577_v13, 1e-20 }
 0x3fc   :  { %4157 = vrcp.f32 %v581_v56 }
 0x3fd   :  { %v580_v8 = vpop.xlane.xlu0 %579 }
 0x3fe   :  { %v582_v6 = vmax.f32 %v580_v8, 1e-20 }
 0x400   :  { %4159 = vrcp.f32 %v582_v6 }
 0x401   :  { %v990_v7 = vpop.xlane.xlu1 %989  ;;  %v993_v9 = vpop.xlane.xlu0 %992 }
 0x402   :  { %v994_v10 = vmax.f32 %v990_v7, 1e-20  ;;  %v995_v11 = vmax.f32 %v993_v9, 1e-20 }
 0x404   :  { %4161 = vrcp.f32 %v994_v10 }
 0x405   :  { %4163 = vrcp.f32 %v995_v11 }
 0x409   :  { %v4158_v14 = vpop.eup %4157 }
 0x40a   :  { %v585_v1 = vmul.f32 %v4158_v14, %v4150_v44  ;;  %v4731_v14 = vld [vmem:[%s5147_s7 + $0x18] sm:$0xff] }
 0x40c   :  { %3862 = vmatprep.mubr.msk.f32.mxu1 %vm558_vm5, %v585_v1 }
 0x40d   :  { %v4160_v0 = vpop.eup %4159 }
 0x40e   :  { %v586_v25 = vmul.f32 %v4160_v0, %v4152_v2 }
 0x410   :  { %3863 = vmatmul.mubr.msk.f32.vlgmr.msra.gmra.mxu1 %vm558_vm5, %v586_v25  ;;  %v4736_v25 = vld [vmem:[%s5147_s7 + $0x10] sm:$0xff] }
 0x411   :  { %v4162_v28 = vpop.eup %4161  ;;  %3873 = vmatpush3.msra.mxu1 %v4557_v57 }
 0x412   :  { %v4164_v36 = vpop.eup %4163  ;;  %3874 = vmatprep.subr.mxu1 %v1004_v26  ;;  %v998_v39 = vmul.f32 %v4162_v28, %v4156_v53 }
 0x413   :  { %3875 = vmatpush3.msra.mxu1 %v1004_v26  ;;  %v999_v40 = vmul.f32 %v4164_v36, %v4154_v37 }
 0x414   :  { %3876 = vmatprep.mubr.msk.f32.mxu1 %vm558_vm5, %v998_v39  ;;  %3890 = vmatprep.subr.mxu1 %v4422_v16 }
 0x415   :  { %3877 = vmatmul.mubr.msk.f32.vlgmr.msra.gmra.mxu1 %vm558_vm5, %v999_v40 }
 0x416   :  { %3891 = vmatpush3.msra.mxu1 %v4422_v16  ;;  %3906 = vmatprep.mubr.msk.f32.mxu1 %vm158_vm2, %v1195_v15  ;;  %v1196_v16 = vmul.f32 %v3549_v30, %v4520_v43 }
 0x417   :  { %3892 = vmatprep.subr.mxu1 %v4429_v17 }
 0x418   :  { %3893 = vmatpush3.msra.mxu1 %v4429_v17 }
 0x419   :  { %3894 = vmatprep.subr.mxu1 %v4438_v18 }
 0x41a   :  { %3895 = vmatpush3.msra.mxu1 %v4438_v18 }
 0x41b   :  { %3896 = vmatprep.subr.mxu1 %v4445_v19 }
 0x41c   :  { %3897 = vmatpush3.msra.mxu1 %v4445_v19 }
 0x41d   :  { %3898 = vmatprep.subr.mxu1 %v4454_v20 }
 0x41e   :  { %3899 = vmatpush3.msra.mxu1 %v4454_v20 }
 0x41f   :  { %3900 = vmatprep.subr.mxu1 %v4461_v21 }
 0x420   :  { %3901 = vmatpush3.msra.mxu1 %v4461_v21  ;;  %v3545_v21 = vld [vmem:[%s5144_s4 + $0x1] ss:$0 sm:$0xff] }
 0x421   :  { %3902 = vmatprep.subr.mxu1 %v4468_v22 }
 0x422   :  { %3903 = vmatpush3.msra.mxu1 %v4468_v22 }
 0x423   :  { %3904 = vmatprep.subr.mxu1 %v4475_v23 }
 0x424   :  { %3905 = vmatpush3.msra.mxu1 %v4475_v23  ;;  %v3857_v17 = vpop.f32.mrf.mxu0  ;;  %v3553_v23 = vld [vmem:[%s5145_s5 + $0x1] ss:$0 sm:$0xff] }
 0x425   :  { %3907 = vmatmul.mubr.msk.f32.vlgmr.msra.gmra.mxu1 %vm158_vm2, %v1196_v16  ;;  %v1286_v27 = vmul.f32 %v3553_v23, %v4499_v34 }
 0x426   :  { %v721_v18 = vpop.f32.mrf.mxu0 }
 0x429   :  { %v3871_v19 = vpop.f32.mrf.mxu0 }
 0x42b   :  { %v939_v20 = vpop.f32.mrf.mxu0 }
 0x431   :  { %v3889_v49 = vpop.f32.mrf.mxu0 }
 0x432   :  { %v1184_v52 = vadd.f32 %v3889_v49, %v3545_v21 }
 0x433   :  { %v1178_v57 = vpop.f32.mrf.mxu0 }
 0x434   :  { %3910 = vmatpush3.xpose.msk.msra.mxu0 %vm158_vm2, %v1184_v52  ;;  %v4693_v22 = vadd.f32 %v3545_v21, %v1178_v57  ;;  %v1422_v43 = vmul.f32 %v1184_v52, %v4518_v42  ;;  %v1474_v47 = vmul.f32 %v1184_v52, %v4525_v45  ;;  %v4704_v60 = vmul.f32 %v1184_v52, %v4529_v48 }
 0x435   :  { %3911 = vmatprep.subr.mxu0 %v4287_v24  ;;  %v4714_v41 = vmul.f32 %v1184_v52, %v4562_v59 }
 0x436   :  { %3923 = vmatprep.subr.mxu1 %v1422_v43  ;;  %v1421_v3 = vmul.f32 %v4693_v22, %v4518_v42  ;;  %v1473_v4 = vmul.f32 %v4693_v22, %v4525_v45 }
 0x437   :  { %3924 = vmatpush3.msra.mxu1 %v1422_v43 }
 0x438   :  { %3912 = vmatpush3.xpose.msk.msra.mxu0 %vm158_vm2, %v4693_v22  ;;  %3925 = vmatprep.subr.mxu1 %v1421_v3 }
 0x439   :  { %3916 = vmatprep.subr.mxu0 %v1474_v47  ;;  %3926 = vmatpush3.msra.mxu1 %v1421_v3 }
 0x43a   :  { %3937 = vmatprep.subr.mxu1 %v4704_v60 }
 0x43b   :  { %3914 = vmatmul.mubr.msk.f32.vlgmr.msra.gmra.mxu0 %vm158_vm2, %v1286_v27 }
 0x43c   :  { %3917 = vmatpush3.msra.mxu0 %v1474_v47 }
 0x43d   :  { %3918 = vmatprep.subr.mxu0 %v1473_v4 }
 0x43e   :  { %3919 = vmatpush3.msra.mxu0 %v1473_v4 }
 0x43f   :  { %3930 = vmatprep.subr.mxu0 %v4714_v41 }
 0x4d0   :  { %v3864_v34 = vpop.f32.mrf.mxu1 }
 0x4d1   :  { %v808_v31 = vadd.f32 %v3864_v34, %v3857_v17 }
 0x4d2   :  { %v802_v61 = vpop.f32.mrf.mxu1 }
 0x4d3   :  { %v803_v12 = vadd.f32 %v802_v61, %v721_v18  ;;  %v949_v44 = vadd.f32 %v3871_v19, %v808_v31 }
 0x4d5   :  { %v3878_v46 = vpop.f32.mrf.mxu1  ;;  %v948_v2 = vadd.f32 %v939_v20, %v803_v12 }
 0x4d6   :  { %v4717_v50 = vadd.f32 %v3878_v46, %v949_v44 }
 0x4d7   :  { %v1078_v37 = vpop.f32.mrf.mxu1 }
 0x4d8   :  { %v4719_v53 = vadd.f32 %v1078_v37, %v948_v2 }
 0x4e5   :  { %v3908_v54 = vpop.f32.mrf.mxu1 }
 0x4e6   :  { %1428 = vperm.xlu0 %4119, %v3908_v54  }
 0x4e7   :  { %v1269_v55 = vpop.f32.mrf.mxu1 }
 0x4e8   :  { %1424 = vperm.xlu1 %4120, %v1269_v55  }
 0x4ea   :  { %4123 = vset.pattern.permute.xlu0 %v4291_v5 }
 0x4ec   :  { %4121 = vset.pattern.permute.xlu1 %v4289_v62 }
 0x4ed   :  { %1638 = vperm.xlu1 %4121, %v1269_v55  }
 0x4f1   :  { %1642 = vperm.xlu1 %4121, %v3908_v54  }
 0x4f5   :  { %4122 = vset.pattern.permute.xlu1 %v4291_v5 }
 0x4fb   :  { %v4724_v13 = vpop.f32.mrf.mxu0 }
 0x4fc   :  { %v1434_v8 = vrot.slane %v4724_v13, %v4501_v35  ;;  %v1648_v26 = vrot.slane %v4724_v13, %v4538_v51 }
 0x4fd   :  { %v3915_v56 = vpop.f32.mrf.mxu0 }
 0x561   :  { %v1429_v6 = vpop.permute.xlu0 %1428 }
 0x562   :  { %v1436_v7 = vadd.f32 %v1434_v8, %v1429_v6  ;;  %v1382_v6 = vrot.slane %v4724_v13, %v4494_v33 }
 0x563   :  { %v1425_v9 = vpop.permute.xlu1 %1424 }
 0x564   :  { %vm1438_vm8 = vcmp.ge.f32.partialorder %v1436_v7, 0.0  ;;  %v1440_v10 = vmul.f32 0.2, %v1436_v7  ;;  %v1435_v11 = vadd.f32 %v1434_v8, %v1425_v9 }
 0x566   :  { %vm1437_vm9 = vcmp.ge.f32.partialorder %v1435_v11, 0.0  ;;  %v1439_v1 = vmul.f32 0.2, %v1435_v11  ;;  %v1442_v0 = vsel %vm1438_vm8, %v1436_v7, %v1440_v10 }
 0x567   :  { %v1444_v28 = vadd.f32 %v4731_v14, %v1442_v0 }
 0x568   :  { %v1639_v30 = vpop.permute.xlu1 %1638  ;;  %v1441_v36 = vsel %vm1437_vm9, %v1435_v11, %v1439_v1 }
 0x569   :  { %v1649_v39 = vadd.f32 %v1648_v26, %v1639_v30  ;;  %v1448_v40 = vsel %vm558_vm5, %v1444_v28, -inf  ;;  %v1443_v15 = vadd.f32 %v4736_v25, %v1441_v36 }
 0x56a   :  { %1449 = vmax.xlane.f32.xlu0 %v1448_v40 }
 0x56b   :  { %vm1651_vm10 = vcmp.ge.f32.partialorder %v1649_v39, 0.0  ;;  %v1653_v16 = vmul.f32 0.2, %v1649_v39  ;;  %v1445_v17 = vsel %vm558_vm5, %v1443_v15, -inf }
 0x56c   :  { %1446 = vmax.xlane.f32.xlu1 %v1445_v17  ;;  %v1643_v18 = vpop.permute.xlu1 %1642 }
 0x56d   :  { %v1650_v19 = vadd.f32 %v1648_v26, %v1643_v18  ;;  %v1655_v20 = vsel %vm1651_vm10, %v1649_v39, %v1653_v16  ;;  %v1783_v39 = vrot.slane %v4724_v13, %v4509_v38 }
 0x56e   :  { %v1657_v21 = vadd.f32 %v4736_v25, %v1655_v20 }
 0x56f   :  { %vm1652_vm11 = vcmp.ge.f32.partialorder %v1650_v19, 0.0  ;;  %v1654_v49 = vmul.f32 0.2, %v1650_v19 }
 0x570   :  { %v1659_v52 = vsel %vm558_vm5, %v1657_v21, -inf }
 0x571   :  { %1660 = vmax.xlane.f32.xlu1 %v1659_v52  ;;  %v1656_v57 = vsel %vm1652_vm11, %v1650_v19, %v1654_v49 }
 0x572   :  { %v1658_v43 = vadd.f32 %v4731_v14, %v1656_v57 }
 0x574   :  { %v1662_v23 = vsel %vm558_vm5, %v1658_v43, -inf }
 0x575   :  { %1663 = vmax.xlane.f32.xlu1 %v1662_v23 }
 0x580   :  { %1376 = vperm.xlu0 %4123, %v3908_v54  }
 0x584   :  { %4125 = vset.pattern.permute.xlu0 %v4290_v63 }
 0x586   :  { %1371 = vperm.xlu1 %4122, %v1269_v55  }
 0x58a   :  { %4124 = vset.pattern.permute.xlu1 %v4292_v58 }
 0x58b   :  { %1773 = vperm.xlu1 %4124, %v1269_v55  }
 0x58f   :  { %1777 = vperm.xlu1 %4124, %v3908_v54  }
 0x593   :  { %4126 = vset.pattern.permute.xlu1 %v4290_v63 }
 0x5f3   :  { %v1450_v47 = vpop.xlane.xlu0 %1449 }
 0x5f4   :  { %vm1452_vm12 = vcmp.lt.f32.partialorder %v1450_v47, -1e+29 }
 0x5f5   :  { %v1454_v3 = vsel %vm1452_vm12, 0.0, %v1450_v47  ;;  %v1447_v27 = vpop.xlane.xlu1 %1446 }
 0x5f6   :  { %v1456_v4 = vsub.f32 %v1444_v28, %v1454_v3  ;;  %vm1451_vm13 = vcmp.lt.f32.partialorder %v1447_v27, -1e+29 }
 0x5f7   :  { %v1453_v34 = vsel %vm1451_vm13, 0.0, %v1447_v27 }
 0x5f8   :  { %v1459_v31 = vmul.f32 1.442695, %v1456_v4  ;;  %v1455_v61 = vsub.f32 %v1443_v15, %v1453_v34 }
 0x5fa   :  { %4165 = vpow2.f32 %v1459_v31  ;;  %v1457_v12 = vmul.f32 1.442695, %v1455_v61  ;;  %v1661_v44 = vpop.xlane.xlu1 %1660 }
 0x5fb   :  { %vm1665_vm14 = vcmp.lt.f32.partialorder %v1661_v44, -1e+29  ;;  %v1377_v1 = vpop.permute.xlu0 %1376 }
 0x5fc   :  { %4167 = vpow2.f32 %v1457_v12  ;;  %v1667_v46 = vsel %vm1665_vm14, 0.0, %v1661_v44  ;;  %v1384_v28 = vadd.f32 %v1382_v6, %v1377_v1 }
 0x5fd   :  { %v1669_v2 = vsub.f32 %v1657_v21, %v1667_v46 }
 0x5fe   :  { %v1664_v37 = vpop.xlane.xlu1 %1663  ;;  %v1388_v15 = vmul.f32 0.2, %v1384_v28  ;;  %vm1386_vm4 = vcmp.ge.f32.partialorder %v1384_v28, 0.0 }
 0x5ff   :  { %v1671_v54 = vmul.f32 1.442695, %v1669_v2  ;;  %vm1666_vm15 = vcmp.lt.f32.partialorder %v1664_v37, -1e+29 }
 0x600   :  { %v1668_v63 = vsel %vm1666_vm15, 0.0, %v1664_v37  ;;  %v1390_v13 = vsel %vm1386_vm4, %v1384_v28, %v1388_v15 }
 0x601   :  { %4169 = vpow2.f32 %v1671_v54  ;;  %v1670_v55 = vsub.f32 %v1658_v43, %v1668_v63  ;;  %v1392_v43 = vadd.f32 %v4731_v14, %v1390_v13 }
 0x602   :  { %v1372_v8 = vpop.permute.xlu1 %1371 }
 0x603   :  { %v1673_v56 = vmul.f32 1.442695, %v1670_v55  ;;  %v1383_v9 = vadd.f32 %v1382_v6, %v1372_v8  ;;  %v1396_v3 = vsel %vm558_vm5, %v1392_v43, -inf }
 0x605   :  { %4171 = vpow2.f32 %v1673_v56  ;;  %v1387_v30 = vmul.f32 0.2, %v1383_v9  ;;  %vm1385_vm3 = vcmp.ge.f32.partialorder %v1383_v9, 0.0 }
 0x606   :  { %v1774_v26 = vpop.permute.xlu1 %1773 }
 0x607   :  { %v4753_v7 = vpop.eup %4165  ;;  %v1784_v16 = vadd.f32 %v1783_v39, %v1774_v26  ;;  %v1389_v17 = vsel %vm1385_vm3, %v1383_v9, %v1387_v30  ;;  %v1687_v30 = vmul.f32 %v4693_v22, %v4562_v59 }
 0x608   :  { %v1464_v10 = vsel %vm558_vm5, %v4753_v7, 0.0  ;;  %v1391_v21 = vadd.f32 %v4736_v25, %v1389_v17 }
 0x609   :  { %v4168_v11 = vpop.eup %4167  ;;  %1465 = vadd.xlane.f32.xlu0 %v1464_v10  ;;  %v1788_v49 = vmul.f32 0.2, %v1784_v16  ;;  %vm1786_vm6 = vcmp.ge.f32.partialorder %v1784_v16, 0.0 }
 0x60a   :  { %v1461_v0 = vsel %vm558_vm5, %v4168_v11, 0.0  ;;  %v1778_v18 = vpop.permute.xlu1 %1777  ;;  %v1393_v57 = vsel %vm558_vm5, %v1391_v21, -inf }
 0x60b   :  { %1462 = vadd.xlane.f32.xlu1 %v1461_v0  ;;  %v1785_v52 = vadd.f32 %v1783_v39, %v1778_v18  ;;  %v1790_v47 = vsel %vm1786_vm6, %v1784_v16, %v1788_v49  ;;  %v3567_v49 = vld [vmem:[%s5140_s0 + $0x10] sm:$0xff] }
 0x60c   :  { %v1792_v27 = vadd.f32 %v4736_v25, %v1790_v47  ;;  %v3568_v47 = vld [vmem:[%s5140_s0 + $0x18] sm:$0xff] }
 0x60d   :  { %v1789_v23 = vmul.f32 0.2, %v1785_v52  ;;  %vm1787_vm7 = vcmp.ge.f32.partialorder %v1785_v52, 0.0 }
 0x60e   :  { %v4758_v36 = vpop.eup %4169  ;;  %v1794_v34 = vsel %vm558_vm5, %v1792_v27, -inf }
 0x60f   :  { %v1675_v40 = vsel %vm558_vm5, %v4758_v36, 0.0  ;;  %v1791_v4 = vsel %vm1787_vm7, %v1785_v52, %v1789_v23 }
 0x610   :  { %1676 = vadd.xlane.f32.xlu1 %v1675_v40  ;;  %v1793_v31 = vadd.f32 %v4731_v14, %v1791_v4 }
 0x612   :  { %v4764_v19 = vpop.eup %4171  ;;  %v1797_v61 = vsel %vm558_vm5, %v1793_v31, -inf }
 0x613   :  { %v1678_v20 = vsel %vm558_vm5, %v4764_v19, 0.0 }
 0x614   :  { %1679 = vadd.xlane.f32.xlu1 %v1678_v20 }
 0x618   :  { %1394 = vmax.xlane.f32.xlu1 %v1393_v57  ;;  %v3570_v57 = vld [vmem:[%s5143_s3 + $0x48] sm:$0xff] }
 0x61c   :  { %1397 = vmax.xlane.f32.xlu1 %v1396_v3 }
 0x620   :  { %1795 = vmax.xlane.f32.xlu1 %v1794_v34 }
 0x624   :  { %1798 = vmax.xlane.f32.xlu1 %v1797_v61 }
 0x692   :  { %v1466_v12 = vpop.xlane.xlu0 %1465 }
 0x693   :  { %v1468_v44 = vmax.f32 %v1466_v12, 1e-20 }
 0x694   :  { %v1463_v46 = vpop.xlane.xlu1 %1462 }
 0x695   :  { %v1467_v2 = vmax.f32 %v1463_v46, 1e-20  ;;  %4173 = vrcp.f32 %v1468_v44 }
 0x697   :  { %4175 = vrcp.f32 %v1467_v2 }
 0x699   :  { %v1677_v37 = vpop.xlane.xlu1 %1676 }
 0x69a   :  { %v1681_v54 = vmax.f32 %v1677_v37, 1e-20 }
 0x69c   :  { %4177 = vrcp.f32 %v1681_v54 }
 0x69d   :  { %v1680_v25 = vpop.xlane.xlu1 %1679 }
 0x69e   :  { %v1682_v63 = vmax.f32 %v1680_v25, 1e-20 }
 0x6a0   :  { %4179 = vrcp.f32 %v1682_v63 }
 0x6a1   :  { %v1395_v55 = vpop.xlane.xlu1 %1394 }
 0x6a2   :  { %vm1399_vm8 = vcmp.lt.f32.partialorder %v1395_v55, -1e+29  ;;  %v4174_v56 = vpop.eup %4173 }
 0x6a3   :  { %v1401_v14 = vsel %vm1399_vm8, 0.0, %v1395_v55  ;;  %v1472_v0 = vmul.f32 %v4174_v56, %v4753_v7 }
 0x6a4   :  { %v4176_v8 = vpop.eup %4175  ;;  %v1403_v6 = vsub.f32 %v1391_v21, %v1401_v14 }
 0x6a5   :  { %v1398_v9 = vpop.xlane.xlu1 %1397  ;;  %v1471_v10 = vmul.f32 %v4176_v8, %v4168_v11  ;;  %v3572_v11 = vld [vmem:[%s5143_s3 + $0x58] sm:$0xff] }
 0x6a6   :  { %v1405_v1 = vmul.f32 1.442695, %v1403_v6  ;;  %vm1400_vm9 = vcmp.lt.f32.partialorder %v1398_v9, -1e+29 }
 0x6a7   :  { %v1402_v26 = vsel %vm1400_vm9, 0.0, %v1398_v9  ;;  %3920 = vmatprep.mubr.msk.f32.mxu0 %vm558_vm5, %v1471_v10  ;;  %v1822_v9 = vmul.f32 %v4693_v22, %v4529_v48  ;;  %v3578_v22 = vld [vmem:[%s5146_s6 + $0x2] ss:$0 sm:$0xff] }
 0x6a8   :  { %4181 = vpow2.f32 %v1405_v1  ;;  %v1404_v28 = vsub.f32 %v1392_v43, %v1402_v26  ;;  %3921 = vmatmul.mubr.msk.f32.vlgmr.msra.gmra.mxu0 %vm558_vm5, %v1472_v0  ;;  %v3569_v43 = vld [vmem:[%s5143_s3 + $0x40] sm:$0xff]  ;;  %v4822_v0 = vld [vmem:[%s5149_s9 + $0x38] sm:$0xff] }
 0x6a9   :  { %v4178_v39 = vpop.eup %4177  ;;  %3931 = vmatpush3.msra.mxu0 %v4714_v41  ;;  %v1796_v40 = vpop.xlane.xlu1 %1795 }
 0x6aa   :  { %v1407_v15 = vmul.f32 1.442695, %v1404_v28  ;;  %3932 = vmatprep.subr.mxu0 %v1687_v30  ;;  %vm1800_vm10 = vcmp.lt.f32.partialorder %v1796_v40, -1e+29  ;;  %v1685_v7 = vmul.f32 %v4178_v39, %v4758_v36  ;;  %v3571_v36 = vld [vmem:[%s5143_s3 + $0x50] sm:$0xff]  ;;  %v4842_v39 = vld [vmem:[%s5149_s9 + $0x28] sm:$0xff] }
 0x6ab   :  { %v1802_v16 = vsel %vm1800_vm10, 0.0, %v1796_v40  ;;  %3933 = vmatpush3.msra.mxu0 %v1687_v30  ;;  %v4835_v30 = vld [vmem:[%s5149_s9 + $0x30] sm:$0xff]  ;;  %v4856_v40 = vld [vmem:[%s5149_s9 + $0x18] sm:$0xff] }
 0x6ac   :  { %4183 = vpow2.f32 %v1407_v15  ;;  %v1804_v17 = vsub.f32 %v1792_v27, %v1802_v16  ;;  %3934 = vmatprep.mubr.msk.f32.mxu0 %vm558_vm5, %v1685_v7  ;;  %3944 = vmatprep.subr.mxu0 %v3572_v11  ;;  %v4870_v15 = vld [vmem:[%s5149_s9 + $0x8] sm:$0xff]  ;;  %v2014_v16 = vmul.f32 %v3578_v22, %v4482_v29 }
 0x6ad   :  { %v4180_v18 = vpop.eup %4179  ;;  %v1799_v20 = vpop.xlane.xlu1 %1798 }
 0x6ae   :  { %v1806_v41 = vmul.f32 1.442695, %v1804_v17  ;;  %vm1801_vm11 = vcmp.lt.f32.partialorder %v1799_v20, -1e+29  ;;  %v1686_v21 = vmul.f32 %v4180_v18, %v4764_v19  ;;  %v4878_v17 = vld [vmem:[%s5149_s9] sm:$0xff] }
 0x6af   :  { %v1803_v52 = vsel %vm1801_vm11, 0.0, %v1799_v20 }
 0x6b0   :  { %4185 = vpow2.f32 %v1806_v41  ;;  %v1805_v13 = vsub.f32 %v1793_v31, %v1803_v52  ;;  %3935 = vmatmul.mubr.msk.f32.vlgmr.msra.gmra.mxu0 %vm558_vm5, %v1686_v21  ;;  %v3574_v21 = vld [vmem:[%s5144_s4 + $0x2] ss:$0 sm:$0xff] }
 0x6b1   :  { %3945 = vmatpush3.msra.mxu0 %v3572_v11  ;;  %3952 = vmatprep.mubr.msk.f32.mxu0 %vm76_vm0, %v3567_v49  ;;  %v4863_v11 = vld [vmem:[%s5149_s9 + $0x10] sm:$0xff] }
 0x6b2   :  { %v1808_v19 = vmul.f32 1.442695, %v1805_v13  ;;  %3946 = vmatprep.subr.mxu0 %v3571_v36  ;;  %v3582_v13 = vld [vmem:[%s5145_s5 + $0x2] ss:$0 sm:$0xff] }
 0x6b3   :  { %3947 = vmatpush3.msra.mxu0 %v3571_v36 }
 0x6b4   :  { %4187 = vpow2.f32 %v1808_v19  ;;  %3948 = vmatprep.subr.mxu0 %v3570_v57 }
 0x6b5   :  { %v4182_v23 = vpop.eup %4181  ;;  %3949 = vmatpush3.msra.mxu0 %v3570_v57 }
 0x6b6   :  { %v1409_v3 = vsel %vm558_vm5, %v4182_v23, 0.0  ;;  %3950 = vmatprep.subr.mxu0 %v3569_v43 }
 0x6b7   :  { %1410 = vadd.xlane.f32.xlu0 %v1409_v3  ;;  %3951 = vmatpush3.msra.mxu0 %v3569_v43 }
 0x6b8   :  { %3953 = vmatmul.mubr.msk.f32.vlgmr.msra.gmra.mxu0 %vm76_vm0, %v3568_v47  ;;  %3974 = vmatprep.subr.mxu0 %v4287_v24  ;;  %v4903_v47 = vld [vmem:[%s5150_s10] sm:$0xf] }
 0x6b9   :  { %v4184_v27 = vpop.eup %4183  ;;  %3978 = vmatprep.mubr.msk.f32.mxu0 %vm4288_vm1, %v4287_v24  ;;  %v2104_v3 = vmul.f32 %v4903_v47, %v3582_v13 }
 0x6ba   :  { %v1412_v4 = vsel %vm558_vm5, %v4184_v27, 0.0 }
 0x6bb   :  { %1413 = vadd.xlane.f32.xlu1 %v1412_v4 }
 0x6bd   :  { %v4186_v34 = vpop.eup %4185 }
 0x6be   :  { %v1810_v31 = vsel %vm558_vm5, %v4186_v34, 0.0 }
 0x6bf   :  { %1811 = vadd.xlane.f32.xlu0 %v1810_v31 }
 0x6c1   :  { %v4188_v61 = vpop.eup %4187 }
 0x6c2   :  { %v1813_v12 = vsel %vm558_vm5, %v4188_v61, 0.0 }
 0x6c3   :  { %1814 = vadd.xlane.f32.xlu1 %v1813_v12 }
 0x740   :  { %v1411_v44 = vpop.xlane.xlu0 %1410 }
 0x741   :  { %v1415_v46 = vmax.f32 %v1411_v44, 1e-20 }
 0x743   :  { %4189 = vrcp.f32 %v1415_v46 }
 0x744   :  { %v1414_v2 = vpop.xlane.xlu1 %1413 }
 0x745   :  { %v1416_v37 = vmax.f32 %v1414_v2, 1e-20 }
 0x747   :  { %4191 = vrcp.f32 %v1416_v37 }
 0x748   :  { %v1812_v54 = vpop.xlane.xlu0 %1811 }
 0x749   :  { %v1816_v25 = vmax.f32 %v1812_v54, 1e-20 }
 0x74b   :  { %4193 = vrcp.f32 %v1816_v25 }
 0x74c   :  { %v1815_v63 = vpop.xlane.xlu1 %1814 }
 0x74d   :  { %v1817_v55 = vmax.f32 %v1815_v63, 1e-20 }
 0x74f   :  { %4195 = vrcp.f32 %v1817_v55 }
 0x750   :  { %v4190_v56 = vpop.eup %4189 }
 0x751   :  { %v1419_v14 = vmul.f32 %v4190_v56, %v4182_v23 }
 0x753   :  { %3927 = vmatprep.mubr.msk.f32.mxu1 %vm558_vm5, %v1419_v14 }
 0x754   :  { %v4192_v8 = vpop.eup %4191 }
 0x755   :  { %v1420_v6 = vmul.f32 %v4192_v8, %v4184_v27 }
 0x757   :  { %3928 = vmatmul.mubr.msk.f32.vlgmr.msra.gmra.mxu1 %vm558_vm5, %v1420_v6 }
 0x758   :  { %v4194_v10 = vpop.eup %4193  ;;  %3938 = vmatpush3.msra.mxu1 %v4704_v60  ;;  %v2013_v60 = vmul.f32 %v3578_v22, %v4492_v32  ;;  %v4849_v32 = vld [vmem:[%s5149_s9 + $0x20] sm:$0xff] }
 0x759   :  { %3939 = vmatprep.subr.mxu1 %v1822_v9  ;;  %v1820_v1 = vmul.f32 %v4194_v10, %v4186_v34 }
 0x75a   :  { %3940 = vmatpush3.msra.mxu1 %v1822_v9 }
 0x75b   :  { %3941 = vmatprep.mubr.msk.f32.mxu1 %vm558_vm5, %v1820_v1  ;;  %3955 = vmatprep.subr.mxu1 %v4822_v0 }
 0x75c   :  { %v4196_v26 = vpop.eup %4195 }
 0x75d   :  { %v1821_v28 = vmul.f32 %v4196_v26, %v4188_v61 }
 0x75f   :  { %3942 = vmatmul.mubr.msk.f32.vlgmr.msra.gmra.mxu1 %vm558_vm5, %v1821_v28 }
 0x760   :  { %3956 = vmatpush3.msra.mxu1 %v4822_v0  ;;  %3971 = vmatprep.mubr.msk.f32.mxu1 %vm158_vm2, %v2013_v60 }
 0x761   :  { %3957 = vmatprep.subr.mxu1 %v4835_v30 }
 0x762   :  { %3958 = vmatpush3.msra.mxu1 %v4835_v30 }
 0x763   :  { %3959 = vmatprep.subr.mxu1 %v4842_v39 }
 0x764   :  { %3960 = vmatpush3.msra.mxu1 %v4842_v39 }
 0x765   :  { %3961 = vmatprep.subr.mxu1 %v4849_v32 }
 0x766   :  { %3962 = vmatpush3.msra.mxu1 %v4849_v32 }
 0x767   :  { %3963 = vmatprep.subr.mxu1 %v4856_v40 }
 0x768   :  { %3964 = vmatpush3.msra.mxu1 %v4856_v40  ;;  %v3922_v7 = vpop.f32.mrf.mxu0 }
 0x769   :  { %3965 = vmatprep.subr.mxu1 %v4863_v11 }
 0x76a   :  { %3966 = vmatpush3.msra.mxu1 %v4863_v11  ;;  %v1547_v18 = vpop.f32.mrf.mxu0 }
 0x76b   :  { %3967 = vmatprep.subr.mxu1 %v4870_v15 }
 0x76c   :  { %3968 = vmatpush3.msra.mxu1 %v4870_v15 }
 0x76d   :  { %3969 = vmatprep.subr.mxu1 %v4878_v17 }
 0x76e   :  { %3970 = vmatpush3.msra.mxu1 %v4878_v17 }
 0x76f   :  { %3972 = vmatmul.mubr.msk.f32.vlgmr.msra.gmra.mxu1 %vm158_vm2, %v2014_v16 }
 0x770   :  { %v3936_v20 = vpop.f32.mrf.mxu0 }
 0x772   :  { %v1761_v41 = vpop.f32.mrf.mxu0 }
 0x778   :  { %v3954_v49 = vpop.f32.mrf.mxu0 }
 0x779   :  { %v2002_v29 = vadd.f32 %v3954_v49, %v3574_v21 }
 0x77a   :  { %v1996_v52 = vpop.f32.mrf.mxu0 }
 0x77b   :  { %3975 = vmatpush3.xpose.msk.msra.mxu0 %vm158_vm2, %v2002_v29  ;;  %v4887_v36 = vadd.f32 %v3574_v21, %v1996_v52  ;;  %v2240_v57 = vmul.f32 %v2002_v29, %v4518_v42  ;;  %v2292_v19 = vmul.f32 %v2002_v29, %v4525_v45  ;;  %v4898_v23 = vmul.f32 %v2002_v29, %v4529_v48 }
 0x77c   :  { %3976 = vmatprep.subr.mxu0 %v4287_v24 }
 0x77d   :  { %3988 = vmatprep.subr.mxu1 %v2240_v57  ;;  %v2239_v43 = vmul.f32 %v4887_v36, %v4518_v42  ;;  %v2291_v24 = vmul.f32 %v4887_v36, %v4525_v45  ;;  %v4913_v42 = vmul.f32 %v2002_v29, %v4562_v59 }
 0x77e   :  { %3989 = vmatpush3.msra.mxu1 %v2240_v57 }
 0x77f   :  { %3977 = vmatpush3.xpose.msk.msra.mxu0 %vm158_vm2, %v4887_v36  ;;  %3990 = vmatprep.subr.mxu1 %v2239_v43 }
 0x780   :  { %3981 = vmatprep.subr.mxu0 %v2292_v19  ;;  %3991 = vmatpush3.msra.mxu1 %v2239_v43 }
 0x781   :  { %4002 = vmatprep.subr.mxu1 %v4898_v23 }
 0x782   :  { %3979 = vmatmul.mubr.msk.f32.vlgmr.msra.gmra.mxu0 %vm158_vm2, %v2104_v3 }
 0x783   :  { %3982 = vmatpush3.msra.mxu0 %v2292_v19 }
 0x784   :  { %3983 = vmatprep.subr.mxu0 %v2291_v24 }
 0x785   :  { %3984 = vmatpush3.msra.mxu0 %v2291_v24 }
 0x786   :  { %3995 = vmatprep.subr.mxu0 %v4913_v42 }
 0x817   :  { %v3929_v27 = vpop.f32.mrf.mxu1 }
 0x818   :  { %v1634_v34 = vadd.f32 %v3929_v27, %v3922_v7 }
 0x819   :  { %v1628_v4 = vpop.f32.mrf.mxu1 }
 0x81a   :  { %v1629_v31 = vadd.f32 %v1628_v4, %v1547_v18  ;;  %v1771_v61 = vadd.f32 %v3936_v20, %v1634_v34 }
 0x81c   :  { %v1770_v44 = vadd.f32 %v1761_v41, %v1629_v31 }
 0x81f   :  { %v3943_v12 = vpop.f32.mrf.mxu1 }
 0x820   :  { %v1906_v45 = vadd.f32 %v3943_v12, %v1771_v61 }
 0x821   :  { %v1896_v46 = vpop.f32.mrf.mxu1 }
 0x822   :  { %v1908_v2 = vmax.f32 %v1906_v45, 0.0  ;;  %v1905_v37 = vadd.f32 %v1896_v46, %v1770_v44 }
 0x824   :  { %3622 = vst.msk [vmem:[%s5152_s12 + $0x18] sm:$0xff] %vm158_vm2, %v1908_v2  ;;  %v1907_v54 = vmax.f32 %v1905_v37, 0.0 }
 0x826   :  { %3621 = vst.msk [vmem:[%s5152_s12 + $0x10] sm:$0xff] %vm158_vm2, %v1907_v54 }
 0x82f   :  { %v3973_v25 = vpop.f32.mrf.mxu1 }
 0x830   :  { %2246 = vperm.xlu1 %4126, %v3973_v25  }
 0x831   :  { %v2087_v63 = vpop.f32.mrf.mxu1 }
 0x832   :  { %2242 = vperm.xlu0 %4125, %v2087_v63  }
 0x834   :  { %4127 = vset.pattern.permute.xlu1 %v4291_v5 }
 0x835   :  { %2194 = vperm.xlu1 %4127, %v3973_v25  }
 0x836   :  { %4132 = vset.pattern.permute.xlu0 %v4292_v58 }
 0x839   :  { %4128 = vset.pattern.permute.xlu1 %v4289_v62 }
 0x83a   :  { %2460 = vperm.xlu1 %4128, %v3973_v25  }
 0x83e   :  { %4129 = vset.pattern.permute.xlu1 %v4291_v5  ;;  %v3587_v5 = vld [vmem:[%s5147_s7 + $0x28] sm:$0xff] }
 0x83f   :  { %2189 = vperm.xlu1 %4129, %v2087_v63  }
 0x842   :  { %v2180_v55 = vpop.f32.mrf.mxu0 }
 0x843   :  { %4130 = vset.pattern.permute.xlu1 %v4289_v62  ;;  %v2252_v14 = vrot.slane %v2180_v55, %v4501_v35  ;;  %v2200_v60 = vrot.slane %v2180_v55, %v4494_v33  ;;  %v2466_v21 = vrot.slane %v2180_v55, %v4538_v51  ;;  %v2601_v51 = vrot.slane %v2180_v55, %v4509_v38 }
 0x844   :  { %2456 = vperm.xlu1 %4130, %v2087_v63   ;;  %v3980_v56 = vpop.f32.mrf.mxu0 }
 0x848   :  { %4131 = vset.pattern.permute.xlu1 %v4292_v58  ;;  %v3586_v58 = vld [vmem:[%s5147_s7 + $0x20] sm:$0xff] }
 0x849   :  { %2591 = vperm.xlu1 %4131, %v2087_v63  }
 0x84d   :  { %2595 = vperm.xlu1 %4131, %v3973_v25  }
 0x8ab   :  { %v2247_v8 = vpop.permute.xlu1 %2246 }
 0x8ac   :  { %v2254_v6 = vadd.f32 %v2252_v14, %v2247_v8 }
 0x8ad   :  { %v2243_v9 = vpop.permute.xlu0 %2242 }
 0x8ae   :  { %vm2256_vm0 = vcmp.ge.f32.partialorder %v2254_v6, 0.0  ;;  %v2258_v10 = vmul.f32 0.2, %v2254_v6  ;;  %v2253_v1 = vadd.f32 %v2252_v14, %v2243_v9 }
 0x8b0   :  { %vm2255_vm1 = vcmp.ge.f32.partialorder %v2253_v1, 0.0  ;;  %v2257_v62 = vmul.f32 0.2, %v2253_v1  ;;  %v2195_v26 = vpop.permute.xlu1 %2194  ;;  %v2260_v22 = vsel %vm2256_vm0, %v2254_v6, %v2258_v10 }
 0x8b1   :  { %v4937_v28 = vadd.f32 %v3587_v5, %v2260_v22  ;;  %v2202_v41 = vadd.f32 %v2200_v60, %v2195_v26 }
 0x8b2   :  { %v2259_v35 = vsel %vm2255_vm1, %v2253_v1, %v2257_v62 }
 0x8b3   :  { %v2266_v7 = vsel %vm558_vm5, %v4937_v28, -inf  ;;  %v4942_v16 = vadd.f32 %v3586_v58, %v2259_v35  ;;  %v2206_v29 = vmul.f32 0.2, %v2202_v41  ;;  %vm2204_vm12 = vcmp.ge.f32.partialorder %v2202_v41, 0.0 }
 0x8b4   :  { %2267 = vmax.xlane.f32.xlu1 %v2266_v7 }
 0x8b5   :  { %v2461_v18 = vpop.permute.xlu1 %2460  ;;  %v2263_v20 = vsel %vm558_vm5, %v4942_v16, -inf  ;;  %v2208_v3 = vsel %vm2204_vm12, %v2202_v41, %v2206_v29 }
 0x8b6   :  { %2264 = vmax.xlane.f32.xlu0 %v2263_v20  ;;  %v2468_v52 = vadd.f32 %v2466_v21, %v2461_v18  ;;  %v2210_v31 = vadd.f32 %v3587_v5, %v2208_v3 }
 0x8b8   :  { %v2472_v57 = vmul.f32 0.2, %v2468_v52  ;;  %vm2470_vm14 = vcmp.ge.f32.partialorder %v2468_v52, 0.0  ;;  %v2214_v2 = vsel %vm558_vm5, %v2210_v31, -inf }
 0x8ba   :  { %v2190_v49 = vpop.permute.xlu1 %2189  ;;  %v2474_v61 = vsel %vm2470_vm14, %v2468_v52, %v2472_v57 }
 0x8bb   :  { %v2201_v13 = vadd.f32 %v2200_v60, %v2190_v49  ;;  %v4950_v37 = vadd.f32 %v3587_v5, %v2474_v61 }
 0x8bd   :  { %vm2203_vm13 = vcmp.ge.f32.partialorder %v2201_v13, 0.0  ;;  %v2205_v33 = vmul.f32 0.2, %v2201_v13  ;;  %v2480_v38 = vsel %vm558_vm5, %v4950_v37, -inf }
 0x8bf   :  { %v2457_v19 = vpop.permute.xlu1 %2456  ;;  %v2207_v43 = vsel %vm2203_vm13, %v2201_v13, %v2205_v33 }
 0x8c0   :  { %v2467_v24 = vadd.f32 %v2466_v21, %v2457_v19  ;;  %v2209_v27 = vadd.f32 %v3586_v58, %v2207_v43 }
 0x8c2   :  { %vm2469_vm15 = vcmp.ge.f32.partialorder %v2467_v24, 0.0  ;;  %v2471_v4 = vmul.f32 0.2, %v2467_v24  ;;  %v2211_v34 = vsel %vm558_vm5, %v2209_v27, -inf }
 0x8c3   :  { %2212 = vmax.xlane.f32.xlu0 %v2211_v34 }
 0x8c4   :  { %v2592_v12 = vpop.permute.xlu1 %2591  ;;  %v2473_v45 = vsel %vm2469_vm15, %v2467_v24, %v2471_v4 }
 0x8c5   :  { %v2602_v44 = vadd.f32 %v2601_v51, %v2592_v12  ;;  %v2475_v46 = vadd.f32 %v3586_v58, %v2473_v45 }
 0x8c7   :  { %vm2604_vm3 = vcmp.ge.f32.partialorder %v2602_v44, 0.0  ;;  %v2606_v54 = vmul.f32 0.2, %v2602_v44  ;;  %2215 = vmax.xlane.f32.xlu0 %v2214_v2  ;;  %v2477_v25 = vsel %vm558_vm5, %v2475_v46, -inf }
 0x8c8   :  { %2478 = vmax.xlane.f32.xlu1 %v2477_v25  ;;  %v2596_v63 = vpop.permute.xlu1 %2595 }
 0x8c9   :  { %v2603_v56 = vadd.f32 %v2601_v51, %v2596_v63  ;;  %v2608_v14 = vsel %vm2604_vm3, %v2602_v44, %v2606_v54  ;;  %vm2934_vm3 = vcmask 31744  }
 0x8ca   :  { %v2610_v55 = vadd.f32 %v3586_v58, %v2608_v14 }
 0x8cb   :  { %vm2605_vm4 = vcmp.ge.f32.partialorder %v2603_v56, 0.0  ;;  %v2607_v8 = vmul.f32 0.2, %v2603_v56  ;;  %2481 = vmax.xlane.f32.xlu0 %v2480_v38 }
 0x8cc   :  { %v2612_v6 = vsel %vm558_vm5, %v2610_v55, -inf }
 0x8cd   :  { %2613 = vmax.xlane.f32.xlu1 %v2612_v6  ;;  %v2609_v9 = vsel %vm2605_vm4, %v2603_v56, %v2607_v8 }
 0x8ce   :  { %v2611_v10 = vadd.f32 %v3587_v5, %v2609_v9 }
 0x8d0   :  { %v2615_v1 = vsel %vm558_vm5, %v2611_v10, -inf }
 0x8d1   :  { %2616 = vmax.xlane.f32.xlu0 %v2615_v1 }
 0x93d   :  { %v2268_v62 = vpop.xlane.xlu1 %2267 }
 0x93e   :  { %vm2270_vm6 = vcmp.lt.f32.partialorder %v2268_v62, -1e+29 }
 0x93f   :  { %v2272_v26 = vsel %vm2270_vm6, 0.0, %v2268_v62  ;;  %v2265_v22 = vpop.xlane.xlu0 %2264 }
 0x940   :  { %v2274_v35 = vsub.f32 %v4937_v28, %v2272_v26  ;;  %vm2269_vm7 = vcmp.lt.f32.partialorder %v2265_v22, -1e+29 }
 0x941   :  { %v2271_v60 = vsel %vm2269_vm7, 0.0, %v2265_v22 }
 0x942   :  { %v2277_v58 = vmul.f32 1.442695, %v2274_v35  ;;  %v2273_v7 = vsub.f32 %v4942_v16, %v2271_v60 }
 0x944   :  { %4197 = vpow2.f32 %v2277_v58  ;;  %v2275_v18 = vmul.f32 1.442695, %v2273_v7 }
 0x946   :  { %4199 = vpow2.f32 %v2275_v18 }
 0x94c   :  { %v2213_v20 = vpop.xlane.xlu0 %2212 }
 0x94d   :  { %vm2217_vm8 = vcmp.lt.f32.partialorder %v2213_v20, -1e+29 }
 0x94e   :  { %v2219_v5 = vsel %vm2217_vm8, 0.0, %v2213_v20 }
 0x94f   :  { %v2221_v41 = vsub.f32 %v2209_v27, %v2219_v5 }
 0x950   :  { %v2216_v21 = vpop.xlane.xlu0 %2215 }
 0x951   :  { %v4959_v49 = vpop.eup %4197  ;;  %v2223_v29 = vmul.f32 1.442695, %v2221_v41  ;;  %vm2218_vm9 = vcmp.lt.f32.partialorder %v2216_v21, -1e+29  ;;  %v2479_v52 = vpop.xlane.xlu1 %2478 }
 0x952   :  { %v2220_v13 = vsel %vm2218_vm9, 0.0, %v2216_v21  ;;  %vm2483_vm10 = vcmp.lt.f32.partialorder %v2479_v52, -1e+29  ;;  %v2282_v28 = vsel %vm558_vm5, %v4959_v49, 0.0 }
 0x953   :  { %v4200_v33 = vpop.eup %4199  ;;  %4201 = vpow2.f32 %v2223_v29  ;;  %v2222_v16 = vsub.f32 %v2210_v31, %v2220_v13  ;;  %v2485_v57 = vsel %vm2483_vm10, 0.0, %v2479_v52  ;;  %2283 = vadd.xlane.f32.xlu0 %v2282_v28  ;;  %v2505_v13 = vmul.f32 %v4887_v36, %v4562_v59 }
 0x954   :  { %v2487_v19 = vsub.f32 %v2475_v46, %v2485_v57  ;;  %v2482_v43 = vpop.xlane.xlu0 %2481  ;;  %v2279_v3 = vsel %vm558_vm5, %v4200_v33, 0.0 }
 0x955   :  { %v2225_v24 = vmul.f32 1.442695, %v2222_v16  ;;  %vm2484_vm11 = vcmp.lt.f32.partialorder %v2482_v43, -1e+29  ;;  %2280 = vadd.xlane.f32.xlu1 %v2279_v3 }
 0x956   :  { %v2489_v27 = vmul.f32 1.442695, %v2487_v19  ;;  %v2486_v4 = vsel %vm2484_vm11, 0.0, %v2482_v43  ;;  %v2614_v34 = vpop.xlane.xlu1 %2613 }
 0x957   :  { %4203 = vpow2.f32 %v2225_v24  ;;  %v2488_v51 = vsub.f32 %v4950_v37, %v2486_v4  ;;  %vm2618_vm0 = vcmp.lt.f32.partialorder %v2614_v34, -1e+29 }
 0x958   :  { %4205 = vpow2.f32 %v2489_v27  ;;  %v2620_v61 = vsel %vm2618_vm0, 0.0, %v2614_v34  ;;  %v4983_v27 = vmax.f32 %v4719_v53, 0.0  ;;  %v2640_v34 = vmul.f32 %v4887_v36, %v4529_v48 }
 0x959   :  { %v2491_v12 = vmul.f32 1.442695, %v2488_v51  ;;  %v2622_v31 = vsub.f32 %v2610_v55, %v2620_v61  ;;  %v4993_v61 = vld [vmem:[%s5148_s8] ss:$0 sm:$0xff] }
 0x95a   :  { %v2617_v45 = vpop.xlane.xlu0 %2616 }
 0x95b   :  { %4207 = vpow2.f32 %v2491_v12  ;;  %v2624_v44 = vmul.f32 1.442695, %v2622_v31  ;;  %vm2619_vm1 = vcmp.lt.f32.partialorder %v2617_v45, -1e+29  ;;  %v2734_v31 = vmul.f32 %v4993_v61, %v4983_v27 }
 0x95c   :  { %v2621_v46 = vsel %vm2619_vm1, 0.0, %v2617_v45  ;;  %v5016_v45 = vmax.f32 %v4717_v50, 0.0 }
 0x95d   :  { %4209 = vpow2.f32 %v2624_v44  ;;  %v2623_v2 = vsub.f32 %v2611_v10, %v2621_v46 }
 0x95e   :  { %v2735_v50 = vmul.f32 %v4993_v61, %v5016_v45 }
 0x95f   :  { %v2626_v54 = vmul.f32 1.442695, %v2623_v2 }
 0x960   :  { %v4202_v25 = vpop.eup %4201 }
 0x961   :  { %4211 = vpow2.f32 %v2626_v54  ;;  %v2227_v63 = vsel %vm558_vm5, %v4202_v25, 0.0 }
 0x962   :  { %2228 = vadd.xlane.f32.xlu1 %v2227_v63 }
 0x964   :  { %v4204_v56 = vpop.eup %4203 }
 0x965   :  { %v4206_v37 = vpop.eup %4205  ;;  %v2230_v14 = vsel %vm558_vm5, %v4204_v56, 0.0 }
 0x966   :  { %2231 = vadd.xlane.f32.xlu0 %v2230_v14  ;;  %v2493_v38 = vsel %vm558_vm5, %v4206_v37, 0.0 }
 0x967   :  { %2494 = vadd.xlane.f32.xlu1 %v2493_v38 }
 0x968   :  { %v4208_v55 = vpop.eup %4207 }
 0x969   :  { %v2496_v8 = vsel %vm558_vm5, %v4208_v55, 0.0 }
 0x96a   :  { %v4210_v6 = vpop.eup %4209  ;;  %2497 = vadd.xlane.f32.xlu0 %v2496_v8 }
 0x96b   :  { %v2628_v9 = vsel %vm558_vm5, %v4210_v6, 0.0 }
 0x96c   :  { %2629 = vadd.xlane.f32.xlu1 %v2628_v9 }
 0x96e   :  { %v4970_v10 = vpop.eup %4211 }
 0x96f   :  { %v2631_v1 = vsel %vm558_vm5, %v4970_v10, 0.0 }
 0x970   :  { %2632 = vadd.xlane.f32.xlu0 %v2631_v1 }
 0x9dc   :  { %v2284_v62 = vpop.xlane.xlu0 %2283 }
 0x9dd   :  { %v2286_v26 = vmax.f32 %v2284_v62, 1e-20 }
 0x9de   :  { %v2281_v22 = vpop.xlane.xlu1 %2280 }
 0x9df   :  { %v2285_v35 = vmax.f32 %v2281_v22, 1e-20  ;;  %4213 = vrcp.f32 %v2286_v26 }
 0x9e1   :  { %4215 = vrcp.f32 %v2285_v35 }
 0x9eb   :  { %v2229_v60 = vpop.xlane.xlu1 %2228 }
 0x9ec   :  { %v2233_v58 = vmax.f32 %v2229_v60, 1e-20  ;;  %v4214_v7 = vpop.eup %4213 }
 0x9ed   :  { %v2290_v29 = vmul.f32 %v4214_v7, %v4959_v49 }
 0x9ee   :  { %v4216_v18 = vpop.eup %4215  ;;  %4217 = vrcp.f32 %v2233_v58 }
 0x9ef   :  { %v2232_v20 = vpop.xlane.xlu0 %2231  ;;  %v2289_v5 = vmul.f32 %v4216_v18, %v4200_v33 }
 0x9f0   :  { %v2234_v41 = vmax.f32 %v2232_v20, 1e-20  ;;  %v2495_v21 = vpop.xlane.xlu1 %2494 }
 0x9f1   :  { %v2499_v52 = vmax.f32 %v2495_v21, 1e-20  ;;  %3985 = vmatprep.mubr.msk.f32.mxu0 %vm558_vm5, %v2289_v5 }
 0x9f2   :  { %4219 = vrcp.f32 %v2234_v41  ;;  %3986 = vmatmul.mubr.msk.f32.vlgmr.msra.gmra.mxu0 %vm558_vm5, %v2290_v29 }
 0x9f3   :  { %4221 = vrcp.f32 %v2499_v52  ;;  %3996 = vmatpush3.msra.mxu0 %v4913_v42  ;;  %v2498_v28 = vpop.xlane.xlu0 %2497 }
 0x9f4   :  { %3997 = vmatprep.subr.mxu0 %v2505_v13  ;;  %v2500_v16 = vmax.f32 %v2498_v28, 1e-20 }
 0x9f5   :  { %3998 = vmatpush3.msra.mxu0 %v2505_v13  ;;  %v2630_v33 = vpop.xlane.xlu1 %2629 }
 0x9f6   :  { %4223 = vrcp.f32 %v2500_v16  ;;  %v2634_v57 = vmax.f32 %v2630_v33, 1e-20  ;;  %4009 = vmatprep.subr.mxu0 %v4822_v0 }
 0x9f8   :  { %4225 = vrcp.f32 %v2634_v57 }
 0x9f9   :  { %v2633_v49 = vpop.xlane.xlu0 %2632 }
 0x9fa   :  { %v2635_v19 = vmax.f32 %v2633_v49, 1e-20 }
 0x9fb   :  { %v4218_v43 = vpop.eup %4217 }
 0x9fc   :  { %4227 = vrcp.f32 %v2635_v19  ;;  %v2237_v3 = vmul.f32 %v4218_v43, %v4202_v25 }
 0x9fe   :  { %3992 = vmatprep.mubr.msk.f32.mxu1 %vm558_vm5, %v2237_v3 }
 0x9ff   :  { %v4220_v59 = vpop.eup %4219 }
 0xa00   :  { %v4222_v24 = vpop.eup %4221  ;;  %v2238_v42 = vmul.f32 %v4220_v59, %v4204_v56 }
 0xa01   :  { %v2503_v4 = vmul.f32 %v4222_v24, %v4206_v37 }
 0xa02   :  { %3993 = vmatmul.mubr.msk.f32.vlgmr.msra.gmra.mxu1 %vm558_vm5, %v2238_v42 }
 0xa03   :  { %v4224_v51 = vpop.eup %4223  ;;  %4003 = vmatpush3.msra.mxu1 %v4898_v23  ;;  %3999 = vmatprep.mubr.msk.f32.mxu0 %vm558_vm5, %v2503_v4 }
 0xa04   :  { %4004 = vmatprep.subr.mxu1 %v2640_v34  ;;  %v2504_v12 = vmul.f32 %v4224_v51, %v4208_v55 }
 0xa05   :  { %v4226_v53 = vpop.eup %4225  ;;  %4005 = vmatpush3.msra.mxu1 %v2640_v34 }
 0xa06   :  { %4000 = vmatmul.mubr.msk.f32.vlgmr.msra.gmra.mxu0 %vm558_vm5, %v2504_v12  ;;  %v2638_v48 = vmul.f32 %v4226_v53, %v4210_v6  ;;  %4028 = vmatprep.subr.mxu1 %v4822_v0 }
 0xa07   :  { %4010 = vmatpush3.msra.mxu0 %v4822_v0  ;;  %4025 = vmatprep.mubr.msk.f32.mxu0 %vm158_vm2, %v2734_v31 }
 0xa08   :  { %4011 = vmatprep.subr.mxu0 %v4835_v30  ;;  %4006 = vmatprep.mubr.msk.f32.mxu1 %vm558_vm5, %v2638_v48 }
 0xa09   :  { %v4228_v36 = vpop.eup %4227  ;;  %4012 = vmatpush3.msra.mxu0 %v4835_v30 }
 0xa0a   :  { %4013 = vmatprep.subr.mxu0 %v4842_v39  ;;  %v2639_v23 = vmul.f32 %v4228_v36, %v4970_v10 }
 0xa0b   :  { %4014 = vmatpush3.msra.mxu0 %v4842_v39 }
 0xa0c   :  { %4015 = vmatprep.subr.mxu0 %v4849_v32  ;;  %4007 = vmatmul.mubr.msk.f32.vlgmr.msra.gmra.mxu1 %vm558_vm5, %v2639_v23  ;;  %vm2941_vm5 = vcmask 1043456  }
 0xa0d   :  { %4016 = vmatpush3.msra.mxu0 %v4849_v32  ;;  %4029 = vmatpush3.msra.mxu1 %v4822_v0 }
 0xa0e   :  { %4017 = vmatprep.subr.mxu0 %v4856_v40  ;;  %4030 = vmatprep.subr.mxu1 %v4835_v30 }
 0xa0f   :  { %4018 = vmatpush3.msra.mxu0 %v4856_v40  ;;  %4031 = vmatpush3.msra.mxu1 %v4835_v30 }
 0xa10   :  { %4019 = vmatprep.subr.mxu0 %v4863_v11  ;;  %4032 = vmatprep.subr.mxu1 %v4842_v39 }
 0xa11   :  { %4020 = vmatpush3.msra.mxu0 %v4863_v11  ;;  %4033 = vmatpush3.msra.mxu1 %v4842_v39 }
 0xa12   :  { %4021 = vmatprep.subr.mxu0 %v4870_v15  ;;  %4034 = vmatprep.subr.mxu1 %v4849_v32 }
 0xa13   :  { %4022 = vmatpush3.msra.mxu0 %v4870_v15  ;;  %4035 = vmatpush3.msra.mxu1 %v4849_v32 }
 0xa14   :  { %4023 = vmatprep.subr.mxu0 %v4878_v17  ;;  %4036 = vmatprep.subr.mxu1 %v4856_v40 }
 0xa15   :  { %4024 = vmatpush3.msra.mxu0 %v4878_v17  ;;  %4037 = vmatpush3.msra.mxu1 %v4856_v40 }
 0xa16   :  { %4026 = vmatmul.mubr.msk.f32.vlgmr.msra.gmra.mxu0 %vm158_vm2, %v2735_v50  ;;  %4038 = vmatprep.subr.mxu1 %v4863_v11 }
 0xa17   :  { %4039 = vmatpush3.msra.mxu1 %v4863_v11  ;;  %4047 = vmatprep.subr.msk.mxu0 %vm2941_vm5, %v4903_v47 }
 0xa18   :  { %4040 = vmatprep.subr.mxu1 %v4870_v15  ;;  %4048 = vmatpush3.msk.msra.mxu0 %vm2941_vm5, %v4903_v47 }
 0xa19   :  { %4041 = vmatpush3.msra.mxu1 %v4870_v15  ;;  %4057 = vmatprep.subr.mxu0 %v4822_v0 }
 0xa1a   :  { %4042 = vmatprep.subr.mxu1 %v4878_v17 }
 0xa1b   :  { %4043 = vmatpush3.msra.mxu1 %v4878_v17 }
 0xa1c   :  { %4052 = vmatprep.subr.msk.mxu1 %vm2941_vm5, %v4903_v47 }
 0xab2   :  { %v3987_v44 = vpop.f32.mrf.mxu0 }
 0xab4   :  { %v2365_v46 = vpop.f32.mrf.mxu0 }
 0xac2   :  { %v3994_v2 = vpop.f32.mrf.mxu1 }
 0xac3   :  { %v2452_v63 = vadd.f32 %v3994_v2, %v3987_v44 }
 0xac4   :  { %v2446_v25 = vpop.f32.mrf.mxu1 }
 0xac5   :  { %v2447_v37 = vadd.f32 %v2446_v25, %v2365_v46  ;;  %v3608_v46 = vld [vmem:[%s5148_s8 + $0x2] ss:$0 sm:$0xff] }
 0xac6   :  { %v4001_v54 = vpop.f32.mrf.mxu0  ;;  %v3121_v2 = vmul.f32 %v3608_v46, %v4983_v27 }
 0xac7   :  { %v2589_v14 = vadd.f32 %v4001_v54, %v2452_v63 }
 0xac8   :  { %v2579_v56 = vpop.f32.mrf.mxu0 }
 0xac9   :  { %v2588_v55 = vadd.f32 %v2579_v56, %v2447_v37 }
 0xacc   :  { %v4008_v38 = vpop.f32.mrf.mxu1 }
 0xacd   :  { %v2724_v8 = vadd.f32 %v4008_v38, %v2589_v14 }
 0xace   :  { %v2714_v6 = vpop.f32.mrf.mxu1 }
 0xacf   :  { %v2723_v9 = vadd.f32 %v2714_v6, %v2588_v55  ;;  %v5039_v10 = vmax.f32 %v2724_v8, 0.0 }
 0xad1   :  { %v5041_v1 = vmax.f32 %v2723_v9, 0.0  ;;  %v2824_v26 = vmul.f32 %v4993_v61, %v5039_v10 }
 0xad3   :  { %v2823_v62 = vmul.f32 %v4993_v61, %v5041_v1  ;;  %v3210_v54 = vmul.f32 %v3608_v46, %v5041_v1 }
 0xad5   :  { %4044 = vmatprep.mubr.msk.f32.mxu1 %vm158_vm2, %v2823_v62 }
 0xad6   :  { %4045 = vmatmul.mubr.msk.f32.vlgmr.msra.gmra.mxu1 %vm158_vm2, %v2824_v26  ;;  %v4027_v22 = vpop.f32.mrf.mxu0 }
 0xad7   :  { %4053 = vmatpush3.msk.msra.mxu1 %vm2941_vm5, %v4903_v47  ;;  %v2820_v60 = vmul.f32 0.2, %v4027_v22  ;;  %vm2818_vm12 = vcmp.ge.f32.partialorder %v4027_v22, 0.0 }
 0xad8   :  { %4076 = vmatprep.subr.mxu1 %v4822_v0  ;;  %v2808_v35 = vpop.f32.mrf.mxu0 }
 0xad9   :  { %v2819_v7 = vmul.f32 0.2, %v2808_v35  ;;  %vm2817_vm14 = vcmp.ge.f32.partialorder %v2808_v35, 0.0  ;;  %v2822_v5 = vsel %vm2818_vm12, %v4027_v22, %v2820_v60 }
 0xadb   :  { %v2821_v52 = vsel %vm2817_vm14, %v2808_v35, %v2819_v7 }
 0xb96   :  { %v4046_v58 = vpop.f32.mrf.mxu1 }
 0xb97   :  { %vm2907_vm13 = vcmp.ge.f32.partialorder %v4046_v58, 0.0  ;;  %v2909_v18 = vmul.f32 0.2, %v4046_v58 }
 0xb98   :  { %v2897_v20 = vpop.f32.mrf.mxu1 }
 0xb99   :  { %v2911_v41 = vsel %vm2907_vm13, %v4046_v58, %v2909_v18  ;;  %vm2906_vm15 = vcmp.ge.f32.partialorder %v2897_v20, 0.0  ;;  %v2908_v21 = vmul.f32 0.2, %v2897_v20 }
 0xb9a   :  { %v2913_v29 = vmax.f32 %v2822_v5, %v2911_v41 }
 0xb9b   :  { %v2910_v13 = vsel %vm2906_vm15, %v2897_v20, %v2908_v21 }
 0xb9c   :  { %v2915_v28 = vsub.f32 %v2822_v5, %v2913_v29  ;;  %v2921_v16 = vsub.f32 %v2911_v41, %v2913_v29  ;;  %v2912_v33 = vmax.f32 %v2821_v52, %v2910_v13 }
 0xb9e   :  { %v2918_v57 = vmul.f32 1.442695, %v2915_v28  ;;  %v2924_v49 = vmul.f32 1.442695, %v2921_v16  ;;  %v2914_v19 = vsub.f32 %v2821_v52, %v2912_v33  ;;  %v2920_v43 = vsub.f32 %v2910_v13, %v2912_v33 }
 0xba0   :  { %4229 = vpow2.f32 %v2918_v57  ;;  %v2916_v3 = vmul.f32 1.442695, %v2914_v19  ;;  %v2922_v59 = vmul.f32 1.442695, %v2920_v43 }
 0xba1   :  { %4231 = vpow2.f32 %v2924_v49 }
 0xba2   :  { %4233 = vpow2.f32 %v2916_v3 }
 0xba3   :  { %4235 = vpow2.f32 %v2922_v59 }
 0xbad   :  { %v4230_v24 = vpop.eup %4229 }
 0xbae   :  { %v4232_v42 = vpop.eup %4231 }
 0xbaf   :  { %v4234_v4 = vpop.eup %4233  ;;  %v2927_v34 = vadd.f32 %v4232_v42, %v4230_v24 }
 0xbb0   :  { %v4236_v51 = vpop.eup %4235 }
 0xbb1   :  { %v2929_v61 = vmax.f32 %v2927_v34, 1e-20  ;;  %v2926_v12 = vadd.f32 %v4236_v51, %v4234_v4 }
 0xbb3   :  { %v2928_v53 = vmax.f32 %v2926_v12, 1e-20  ;;  %4237 = vrcp.f32 %v2929_v61 }
 0xbb5   :  { %4239 = vrcp.f32 %v2928_v53 }
 0xbc0   :  { %v4238_v31 = vpop.eup %4237 }
 0xbc1   :  { %v2933_v50 = vmul.f32 %v4238_v31, %v4230_v24  ;;  %v3025_v44 = vmul.f32 %v4238_v31, %v4232_v42 }
 0xbc2   :  { %v4240_v48 = vpop.eup %4239 }
 0xbc3   :  { %v2932_v36 = vmul.f32 %v4240_v48, %v4234_v4  ;;  %v3024_v23 = vmul.f32 %v4240_v48, %v4236_v51 }
 0xbc5   :  { %4049 = vmatprep.mubr.msk.f32.mxu0 %vm2934_vm3, %v2932_v36  ;;  %4054 = vmatprep.mubr.msk.f32.mxu1 %vm2934_vm3, %v3024_v23 }
 0xbc6   :  { %4050 = vmatmul.mubr.msk.f32.vlgmr.msra.gmra.mxu0 %vm2934_vm3, %v2933_v50  ;;  %4055 = vmatmul.mubr.msk.f32.vlgmr.msra.gmra.mxu1 %vm2934_vm3, %v3025_v44 }
 0xbc7   :  { %4058 = vmatpush3.msra.mxu0 %v4822_v0  ;;  %4077 = vmatpush3.msra.mxu1 %v4822_v0  ;;  %v3122_v0 = vmul.f32 %v3608_v46, %v5016_v45 }
 0xbc8   :  { %4059 = vmatprep.subr.mxu0 %v4835_v30  ;;  %4073 = vmatprep.mubr.msk.f32.mxu0 %vm158_vm2, %v3121_v2 }
 0xbc9   :  { %4078 = vmatprep.subr.mxu1 %v4835_v30  ;;  %4092 = vmatprep.mubr.msk.f32.mxu1 %vm158_vm2, %v3210_v54 }
 0xbca   :  { %4060 = vmatpush3.msra.mxu0 %v4835_v30  ;;  %4079 = vmatpush3.msra.mxu1 %v4835_v30  ;;  %v3211_v30 = vmul.f32 %v3608_v46, %v5039_v10 }
 0xbcb   :  { %4061 = vmatprep.subr.mxu0 %v4842_v39  ;;  %4080 = vmatprep.subr.mxu1 %v4842_v39 }
 0xbcc   :  { %4062 = vmatpush3.msra.mxu0 %v4842_v39  ;;  %4081 = vmatpush3.msra.mxu1 %v4842_v39 }
 0xbcd   :  { %4063 = vmatprep.subr.mxu0 %v4849_v32  ;;  %4082 = vmatprep.subr.mxu1 %v4849_v32 }
 0xbce   :  { %4064 = vmatpush3.msra.mxu0 %v4849_v32  ;;  %4083 = vmatpush3.msra.mxu1 %v4849_v32 }
 0xbcf   :  { %4065 = vmatprep.subr.mxu0 %v4856_v40  ;;  %4084 = vmatprep.subr.mxu1 %v4856_v40 }
 0xbd0   :  { %4066 = vmatpush3.msra.mxu0 %v4856_v40  ;;  %4085 = vmatpush3.msra.mxu1 %v4856_v40 }
 0xbd1   :  { %4067 = vmatprep.subr.mxu0 %v4863_v11  ;;  %4086 = vmatprep.subr.mxu1 %v4863_v11 }
 0xbd2   :  { %4068 = vmatpush3.msra.mxu0 %v4863_v11  ;;  %4087 = vmatpush3.msra.mxu1 %v4863_v11 }
 0xbd3   :  { %4069 = vmatprep.subr.mxu0 %v4870_v15  ;;  %4088 = vmatprep.subr.mxu1 %v4870_v15 }
 0xbd4   :  { %4070 = vmatpush3.msra.mxu0 %v4870_v15  ;;  %4089 = vmatpush3.msra.mxu1 %v4870_v15 }
 0xbd5   :  { %4071 = vmatprep.subr.mxu0 %v4878_v17  ;;  %4090 = vmatprep.subr.mxu1 %v4878_v17 }
 0xbd6   :  { %4072 = vmatpush3.msra.mxu0 %v4878_v17  ;;  %4091 = vmatpush3.msra.mxu1 %v4878_v17 }
 0xbd7   :  { %4074 = vmatmul.mubr.msk.f32.vlgmr.msra.gmra.mxu0 %vm158_vm2, %v3122_v0  ;;  %4093 = vmatmul.mubr.msk.f32.vlgmr.msra.gmra.mxu1 %vm158_vm2, %v3211_v30 }
 0xbd8   :  { %4095 = vmatprep.subr.msk.mxu0 %vm2941_vm5, %v4903_v47  ;;  %4100 = vmatprep.subr.msk.mxu1 %vm2941_vm5, %v4903_v47 }
 0xbd9   :  { %4096 = vmatpush3.msk.msra.mxu0 %vm2941_vm5, %v4903_v47  ;;  %4101 = vmatpush3.msk.msra.mxu1 %vm2941_vm5, %v4903_v47 }
 0xc86   :  { %v4051_v39 = vpop.f32.mrf.mxu0  ;;  %v4056_v32 = vpop.f32.mrf.mxu1 }
 0xc87   :  { %v3021_v40 = vmul.f32 %v4051_v39, %v5016_v45  ;;  %v3108_v11 = vmul.f32 %v4056_v32, %v5039_v10 }
 0xc88   :  { %v3011_v15 = vpop.f32.mrf.mxu0  ;;  %v3098_v17 = vpop.f32.mrf.mxu1 }
 0xc89   :  { %v3110_v25 = vadd.f32 %v3108_v11, %v3021_v40  ;;  %v3020_v63 = vmul.f32 %v3011_v15, %v4983_v27  ;;  %v3107_v56 = vmul.f32 %v3098_v17, %v5041_v1 }
 0xc8b   :  { %3112 = vst.msk [vmem:[%s5152_s12 + $0x8] sm:$0xff] %vm158_vm2, %v3110_v25  ;;  %v3109_v37 = vadd.f32 %v3107_v56, %v3020_v63 }
 0xc8d   :  { %3111 = vst.msk [vmem:[%s5152_s12] sm:$0xff] %vm158_vm2, %v3109_v37 }
 0xc97   :  { %v4075_v47 = vpop.f32.mrf.mxu0  ;;  %v4094_v14 = vpop.f32.mrf.mxu1 }
 0xc98   :  { %vm3205_vm4 = vcmp.ge.f32.partialorder %v4075_v47, 0.0  ;;  %v3207_v38 = vmul.f32 0.2, %v4075_v47  ;;  %vm3294_vm6 = vcmp.ge.f32.partialorder %v4094_v14, 0.0  ;;  %v3296_v55 = vmul.f32 0.2, %v4094_v14 }
 0xc99   :  { %v3195_v8 = vpop.f32.mrf.mxu0  ;;  %v3284_v6 = vpop.f32.mrf.mxu1 }
 0xc9a   :  { %v3209_v9 = vsel %vm3205_vm4, %v4075_v47, %v3207_v38  ;;  %v3298_v62 = vsel %vm3294_vm6, %v4094_v14, %v3296_v55  ;;  %vm3204_vm7 = vcmp.ge.f32.partialorder %v3195_v8, 0.0  ;;  %v3206_v26 = vmul.f32 0.2, %v3195_v8 }
 0xc9b   :  { %v3300_v22 = vmax.f32 %v3209_v9, %v3298_v62  ;;  %vm3293_vm8 = vcmp.ge.f32.partialorder %v3284_v6, 0.0  ;;  %v3295_v35 = vmul.f32 0.2, %v3284_v6 }
 0xc9c   :  { %v3208_v60 = vsel %vm3204_vm7, %v3195_v8, %v3206_v26 }
 0xc9d   :  { %v3302_v58 = vsub.f32 %v3209_v9, %v3300_v22  ;;  %v3308_v7 = vsub.f32 %v3298_v62, %v3300_v22  ;;  %v3297_v18 = vsel %vm3293_vm8, %v3284_v6, %v3295_v35 }
 0xc9e   :  { %v3299_v20 = vmax.f32 %v3208_v60, %v3297_v18 }
 0xc9f   :  { %v3305_v5 = vmul.f32 1.442695, %v3302_v58  ;;  %v3311_v41 = vmul.f32 1.442695, %v3308_v7 }
 0xca0   :  { %v3301_v21 = vsub.f32 %v3208_v60, %v3299_v20  ;;  %v3307_v29 = vsub.f32 %v3297_v18, %v3299_v20 }
 0xca1   :  { %4241 = vpow2.f32 %v3305_v5 }
 0xca2   :  { %4243 = vpow2.f32 %v3311_v41  ;;  %v3303_v52 = vmul.f32 1.442695, %v3301_v21  ;;  %v3309_v13 = vmul.f32 1.442695, %v3307_v29 }
 0xca4   :  { %4245 = vpow2.f32 %v3303_v52 }
 0xca5   :  { %4247 = vpow2.f32 %v3309_v13 }
 0xcae   :  { %v4242_v28 = vpop.eup %4241 }
 0xcaf   :  { %v4244_v16 = vpop.eup %4243 }
 0xcb0   :  { %v3314_v33 = vadd.f32 %v4244_v16, %v4242_v28 }
 0xcb1   :  { %v4246_v57 = vpop.eup %4245 }
 0xcb2   :  { %v4248_v49 = vpop.eup %4247  ;;  %v3316_v19 = vmax.f32 %v3314_v33, 1e-20 }
 0xcb3   :  { %v3313_v43 = vadd.f32 %v4248_v49, %v4246_v57 }
 0xcb4   :  { %4249 = vrcp.f32 %v3316_v19 }
 0xcb5   :  { %v3315_v3 = vmax.f32 %v3313_v43, 1e-20 }
 0xcb7   :  { %4251 = vrcp.f32 %v3315_v3 }
 0xcc1   :  { %v4250_v59 = vpop.eup %4249 }
 0xcc2   :  { %v3320_v34 = vmul.f32 %v4250_v59, %v4242_v28  ;;  %v3407_v51 = vmul.f32 %v4250_v59, %v4244_v16 }
 0xcc4   :  { %v4252_v24 = vpop.eup %4251 }
 0xcc5   :  { %v3319_v42 = vmul.f32 %v4252_v24, %v4246_v57  ;;  %v3406_v4 = vmul.f32 %v4252_v24, %v4248_v49 }
 0xcc7   :  { %4097 = vmatprep.mubr.msk.f32.mxu0 %vm2934_vm3, %v3319_v42  ;;  %4102 = vmatprep.mubr.msk.f32.mxu1 %vm2934_vm3, %v3406_v4 }
 0xcc8   :  { %4098 = vmatmul.mubr.msk.f32.vlgmr.msra.gmra.mxu0 %vm2934_vm3, %v3320_v34  ;;  %4103 = vmatmul.mubr.msk.f32.vlgmr.msra.gmra.mxu1 %vm2934_vm3, %v3407_v51 }
 0xd88   :  { %v4099_v61 = vpop.f32.mrf.mxu0  ;;  %v4104_v12 = vpop.f32.mrf.mxu1 }
 0xd89   :  { %v3403_v53 = vmul.f32 %v4099_v61, %v5016_v45  ;;  %v3490_v31 = vmul.f32 %v4104_v12, %v5039_v10 }
 0xd8a   :  { %v3393_v48 = vpop.f32.mrf.mxu0  ;;  %v3480_v36 = vpop.f32.mrf.mxu1 }
 0xd8b   :  { %v3492_v23 = vadd.f32 %v3490_v31, %v3403_v53  ;;  %v3402_v50 = vmul.f32 %v3393_v48, %v4983_v27  ;;  %v3489_v44 = vmul.f32 %v3480_v36, %v5041_v1 }
 0xd8d   :  { %3620 = vst.msk [vmem:[%s5152_s12 + $0x28] sm:$0xff] %vm158_vm2, %v3492_v23  ;;  %v3491_v46 = vadd.f32 %v3489_v44, %v3402_v50 }
 0xd8f   :  { %3619 = vst.msk [vmem:[%s5152_s12 + $0x20] sm:$0xff] %vm158_vm2, %v3491_v46 }
 0xd90   :  { %3507 = vsyncpa [#allocation3], 1 }

</bundles_post_ra>
